<compile_context>
chip_gen: v6e
topology: v6e:2x2x1
jax: 0.10.0
libtpu: 0.0.40
codegen_flags: <defaults>
</compile_context>

<pallas_src>
import jax
import jax.numpy as jnp
from jax import lax
from jax.experimental import pallas as pl
from jax.experimental.pallas import tpu as pltpu

KSIZE = 7
PAD = 3


def _round_up(x, m):
    return (x + m - 1) // m * m


def _sublane(itemsize):
    return {4: 8, 2: 16, 1: 32}.get(itemsize, 8)


def _divisors(n):
    return [d for d in range(1, n + 1) if n % d == 0]


def _chip_budgets():
    """(target bytes for one x block, vmem_limit_bytes) by TPU generation."""
    vmem_cap = 64 * 1024 * 1024                    # conservative (v7x-sized) default
    try:
        vmem_cap = int(pltpu.get_tpu_info().vmem_capacity_bytes)
    except Exception:
        pass
    if vmem_cap >= 96 * 1024 * 1024:               # v5e / v6e: 128 MiB physical VMEM
        return 16 * 1024 * 1024, 64 * 1024 * 1024
    return 12 * 1024 * 1024, 48 * 1024 * 1024      # v7x (64 MiB) or unknown


def _pick_tiles(n, c, hw, hp, wp, itemsize, target_block_bytes, vmem_limit_bytes):
    """Pick (nb batch-fold, tc channel-tile) with (8,128)-padding-aware VMEM math."""
    sub_in = _sublane(itemsize)
    lane_hw = _round_up(hw, 128)

    def x_block(nb, tc):                           # one input block (pre double-buffer)
        return nb * _round_up(tc, sub_in) * lane_hw * itemsize

    def fixed(nb):                                 # everything that is not the x block
        out_blk = 2 * nb * _sublane(itemsize) * lane_hw * itemsize        # (nb,1,hw) x2
        accs = 2 * _round_up(nb, 8) * lane_hw * 4                         # sum + max
        pads = 2 * nb * _round_up(hp, 8) * _round_up(wp, 128) * 4         # halo'd maps
        return out_blk + accs + pads

    headroom = 2 * 1024 * 1024

    def fits(nb, tc):
        xb = x_block(nb, tc)
        return (xb <= target_block_bytes
                and 2 * xb + fixed(nb) + headroom <= vmem_limit_bytes)

    # Channel tile: full C, or a multiple-of-8 divisor (keeps the block's
    # second-minor dim layout-legal and the DMA dense).
    cand = [d for d in _divisors(c) if d == c or d % 8 == 0]
    tc_ok = [d for d in cand if fits(1, d)]
    tc = max(tc_ok) if tc_ok else min(cand)

    nb = 1
    if tc == c and n > 1:
        # Fold batch to amortize per-step overhead, but keep >= 2 steps on the
        # "parallel" axis so v7x's second TensorCore gets work.
        max_nb = max(1, n // 2)
        nb_ok = [d for d in _divisors(n) if d <= max_nb and fits(d, c)]
        if nb_ok:
            nb = max(nb_ok)
    return nb, tc


def _make_kernel(total_c, tc, csub, nb, h, w):
    hw = h * w
    inv_c = 1.0 / float(total_c)
    nsub = tc // csub
    rem = tc - nsub * csub

    def kernel(w_ref, x_ref, o_ref, sum_acc, max_acc, pad_avg, pad_max):
        cb = pl.program_id(1)
        n_cb = pl.num_programs(1)

        # ---- init accumulator scratch at the first channel block -------------
        @pl.when(cb == 0)
        def _():
            sum_acc[...] = jnp.zeros_like(sum_acc)
            max_acc[...] = jnp.full_like(max_acc, -jnp.inf)

        # ---- channel reduce: loop-carried registers, f32 accumulation --------
        def chunk(start, size, carry):
            s, m = carry
            xs = x_ref[:, pl.ds(start, size), :].astype(jnp.float32)
            return s + jnp.sum(xs, axis=1), jnp.maximum(m, jnp.max(xs, axis=1))

        carry = (sum_acc[...], max_acc[...])
        if nsub == 1:
            carry = chunk(0, csub, carry)
        else:
            def body(i, acc):
                start = pl.multiple_of(i * csub, csub)
                return chunk(start, csub, acc)
            carry = lax.fori_loop(0, nsub, body, carry,
                                  unroll=True if nsub <= 8 else 4)
        if rem:
            carry = chunk(nsub * csub, rem, carry)
        s, m = carry

        # Spill the running sum/max only when another channel block needs them.
        @pl.when(cb < n_cb - 1)
        def _():
            sum_acc[...] = s
            max_acc[...] = m

        # ---- finalize: halo'd maps, 7x7 VPU conv, sigmoid, lane-dense store --
        @pl.when(cb == n_cb - 1)
        def _():
            avg_flat = s * inv_c                      # (nb, hw) f32
            max_flat = m

            # Zero borders == PyTorch zero padding of the concatenated
            # [avg, max] tensor (conv has no bias).  The flat -> 2D relayout is
            # done with small static row stores (no in-kernel reshape).
            pad_avg[...] = jnp.zeros_like(pad_avg)
            pad_max[...] = jnp.zeros_like(pad_max)
            for r in range(h):
                pad_avg[:, PAD + r, PAD:PAD + w] = avg_flat[:, r * w:(r + 1) * w]
                pad_max[:, PAD + r, PAD:PAD + w] = max_flat[:, r * w:(r + 1) * w]

            avg_p = pad_avg[...]
            max_p = pad_max[...]

            # Hoist the 98 SMEM scalar reads out of the tap loop.
            wts = [w_ref[i] for i in range(2 * KSIZE * KSIZE)]

            acc = jnp.zeros((nb, h, w), dtype=jnp.float32)
            for dw in range(KSIZE):                   # 7 lane shifts per map
                a_col = avg_p[:, :, dw:dw + w]
                m_col = max_p[:, :, dw:dw + w]
                for dh in range(KSIZE):               # sublane shifts inside
                    wa = wts[dh * KSIZE + dw]
                    wm = wts[KSIZE * KSIZE + dh * KSIZE + dw]
                    acc = acc + wa * a_col[:, dh:dh + h, :] \
                              + wm * m_col[:, dh:dh + h, :]

            y = jax.nn.sigmoid(acc)                   # (nb, h, w) f32
            for r in range(h):                        # lane-dense output rows
                o_ref[:, 0, r * w:(r + 1) * w] = y[:, r, :].astype(o_ref.dtype)

    return kernel


def spatial_attention(x, conv_weight, *, target_block_bytes=None,
                      vmem_limit_bytes=None):
    """x: (N, C, H, W); conv_weight: (1, 2, 7, 7).  Returns (N, 1, H, W)."""
    n, c, h, w = x.shape
    hw = h * w
    hp, wp = h + 2 * PAD, w + 2 * PAD
    itemsize = jnp.dtype(x.dtype).itemsize

    default_blk, default_limit = _chip_budgets()
    if target_block_bytes is None:
        target_block_bytes = default_blk
    if vmem_limit_bytes is None:
        vmem_limit_bytes = default_limit

    nb, tc = _pick_tiles(n, c, hw, hp, wp, itemsize,
                         target_block_bytes, vmem_limit_bytes)

    # ~8-16 channels per reduce chunk, bounded so one chunk stays a few vregs.
    lane_hw = _round_up(hw, 128)
    csub = max(1, min(16, tc, 8192 // max(1, nb * lane_hw)))

    x_flat = x.reshape(n, c, hw)                       # free: trailing dims contiguous
    w_flat = conv_weight.astype(jnp.float32).reshape(-1)          # (2*49,)

    kernel = _make_kernel(c, tc, csub, nb, h, w)

    out = pl.pallas_call(
        kernel,
        out_shape=jax.ShapeDtypeStruct((n, 1, hw), x.dtype),
        grid=(n // nb, c // tc),
        in_specs=[
            pl.BlockSpec(memory_space=pltpu.MemorySpace.SMEM),             # conv weights
            pl.BlockSpec((nb, tc, hw), lambda bi, ci: (bi, ci, 0)),        # x, lane-dense
        ],
        out_specs=pl.BlockSpec((nb, 1, hw), lambda bi, ci: (bi, 0, 0)),
        scratch_shapes=[
            pltpu.VMEM((nb, hw), jnp.float32),        # channel-sum accumulator
            pltpu.VMEM((nb, hw), jnp.float32),        # running channel max
            pltpu.VMEM((nb, hp, wp), jnp.float32),    # zero-padded avg map
            pltpu.VMEM((nb, hp, wp), jnp.float32),    # zero-padded max map
        ],
        compiler_params=pltpu.CompilerParams(
            dimension_semantics=("parallel", "arbitrary"),
            vmem_limit_bytes=vmem_limit_bytes,
        ),
    )(w_flat, x_flat)

    return out.reshape(n, 1, h, w)


def _reference(x, conv_weight):
    avg = jnp.mean(x, axis=1, keepdims=True)
    mx = jnp.max(x, axis=1, keepdims=True)
    cat = jnp.concatenate([avg, mx], axis=1)
    y = lax.conv_general_dilated(
        cat, conv_weight, window_strides=(1, 1),
        padding=((PAD, PAD), (PAD, PAD)),
        dimension_numbers=("NCHW", "OIHW", "NCHW"))
    return jax.nn.sigmoid(y)


if __name__ == "__main__":
    key = jax.random.PRNGKey(0)
    kx, kw, kx2, kx3 = jax.random.split(key, 4)

    # Primary small test (matches the module's typical CBAM usage).
    N, C, H, W = 2, 4, 16, 16
    x = jax.random.normal(kx, (N, C, H, W), dtype=jnp.float32)
    conv_weight = jax.random.normal(kw, (1, 2, KSIZE, KSIZE), dtype=jnp.float32) * 0.1

    out = spatial_attention(x, conv_weight)
    out = jax.block_until_ready(out)
    ref = _reference(x, conv_weight)
    assert out.shape == (N, 1, H, W)
    assert jnp.allclose(out, ref, rtol=1e-4, atol=1e-5), "mismatch vs reference (test 1)"

    # Channel-tiled grid path: small block budget -> C split over the
    # "arbitrary" grid axis, register-carried fori_loop reduce (nsub > 1).
    N2, C2, H2, W2 = 1, 32, 8, 128
    x2 = jax.random.normal(kx2, (N2, C2, H2, W2), dtype=jnp.float32)
    out2 = spatial_attention(x2, conv_weight, target_block_bytes=64 * 1024)
    out2 = jax.block_until_ready(out2)
    ref2 = _reference(x2, conv_weight)
    assert out2.shape == (N2, 1, H2, W2)
    assert jnp.allclose(out2, ref2, rtol=1e-4, atol=1e-5), "mismatch vs reference (test 2)"

    # Remainder-chunk path: tc = 20 with csub = 8 -> 2 full chunks + 4-channel tail.
    N3, C3, H3, W3 = 1, 20, 8, 128
    x3 = jax.random.normal(kx3, (N3, C3, H3, W3), dtype=jnp.float32)
    out3 = spatial_attention(x3, conv_weight, target_block_bytes=128 * 1024)
    out3 = jax.block_until_ready(out3)
    ref3 = _reference(x3, conv_weight)
    assert out3.shape == (N3, 1, H3, W3)
    assert jnp.allclose(out3, ref3, rtol=1e-4, atol=1e-5), "mismatch vs reference (test 3)"

    print("KERNEL_OK")
</pallas_src>

<mosaic_0001>
module attributes {stable_mosaic.version = 11 : i64} {
  func.func @kernel(%arg0: i32, %arg1: i32, %arg2: memref<98xf32, #tpu.memory_space<smem>>, %arg3: memref<1x4x256xf32, #tpu.memory_space<vmem>>, %arg4: memref<1x1x256xf32, #tpu.memory_space<vmem>>, %arg5: memref<1x256xf32, #tpu.memory_space<vmem>>, %arg6: memref<1x256xf32, #tpu.memory_space<vmem>>, %arg7: memref<1x22x22xf32, #tpu.memory_space<vmem>>, %arg8: memref<1x22x22xf32, #tpu.memory_space<vmem>>) attributes {dimension_semantics = [#tpu.dimension_semantics<parallel>, #tpu.dimension_semantics<arbitrary>], iteration_bounds = array<i64: 2, 1>, scalar_prefetch = 0 : i64, scratch_operands = 4 : i64, tpu.core_type = #tpu.core_type<tc>, window_params = [{transform_indices = @transform_0, window_bounds = array<i64: 98>}, {transform_indices = @transform_1, window_bounds = array<i64: 1, 4, 256>}, {transform_indices = @transform_2, window_bounds = array<i64: 1, 1, 256>}]} {
    %c0_i32 = arith.constant 0 : i32
    %0 = arith.cmpi eq, %arg1, %c0_i32 : i32
    %1 = arith.extui %0 : i1 to i32
    %c0_i32_0 = arith.constant 0 : i32
    %2 = arith.cmpi ne, %1, %c0_i32_0 : i32
    scf.if %2 {
      %cst_12 = arith.constant 0.000000e+00 : f32
      %16 = vector.broadcast %cst_12 : f32 to vector<1x256xf32>
      %c0_13 = arith.constant 0 : index
      %c0_14 = arith.constant 0 : index
      %17 = vector.load %arg5[%c0_13, %c0_14] : memref<1x256xf32, #tpu.memory_space<vmem>>, vector<1x256xf32>
      tpu.vector_store %arg5[%c0_13, %c0_14], %16 {strides = array<i32>} : memref<1x256xf32, #tpu.memory_space<vmem>>, vector<1x256xf32>,
      %cst_15 = arith.constant 0xFF800000 : f32
      %18 = vector.broadcast %cst_15 : f32 to vector<1x256xf32>
      %c0_16 = arith.constant 0 : index
      %c0_17 = arith.constant 0 : index
      %19 = vector.load %arg6[%c0_16, %c0_17] : memref<1x256xf32, #tpu.memory_space<vmem>>, vector<1x256xf32>
      tpu.vector_store %arg6[%c0_16, %c0_17], %18 {strides = array<i32>} : memref<1x256xf32, #tpu.memory_space<vmem>>, vector<1x256xf32>,
    } else {
    }
    %c0 = arith.constant 0 : index
    %c0_1 = arith.constant 0 : index
    %3 = vector.load %arg5[%c0, %c0_1] : memref<1x256xf32, #tpu.memory_space<vmem>>, vector<1x256xf32>
    %c0_2 = arith.constant 0 : index
    %c0_3 = arith.constant 0 : index
    %4 = vector.load %arg6[%c0_2, %c0_3] : memref<1x256xf32, #tpu.memory_space<vmem>>, vector<1x256xf32>
    %c0_4 = arith.constant 0 : index
    %c0_5 = arith.constant 0 : index
    %c0_6 = arith.constant 0 : index
    %5 = vector.load %arg3[%c0_4, %c0_5, %c0_6] : memref<1x4x256xf32, #tpu.memory_space<vmem>>, vector<1x4x256xf32>
    %cst = arith.constant dense<0.000000e+00> : vector<1x256xf32>
    %6 = vector.multi_reduction <add>, %5, %cst [1] : vector<1x4x256xf32> to vector<1x256xf32>
    %7 = arith.addf %3, %6 : vector<1x256xf32>
    %cst_7 = arith.constant dense<0xFF800000> : vector<1x256xf32>
    %8 = vector.multi_reduction <maximumf>, %5, %cst_7 [1] : vector<1x4x256xf32> to vector<1x256xf32>
    %9 = arith.maximumf %4, %8 : vector<1x256xf32>
    %c0_i32_8 = arith.constant 0 : i32
    %10 = arith.cmpi slt, %arg1, %c0_i32_8 : i32
    %11 = arith.extui %10 : i1 to i32
    %c0_i32_9 = arith.constant 0 : i32
    %12 = arith.cmpi ne, %11, %c0_i32_9 : i32
    scf.if %12 {
      %c0_12 = arith.constant 0 : index
      %c0_13 = arith.constant 0 : index
      %16 = vector.load %arg5[%c0_12, %c0_13] : memref<1x256xf32, #tpu.memory_space<vmem>>, vector<1x256xf32>
      tpu.vector_store %arg5[%c0_12, %c0_13], %7 {strides = array<i32>} : memref<1x256xf32, #tpu.memory_space<vmem>>, vector<1x256xf32>,
      %c0_14 = arith.constant 0 : index
      %c0_15 = arith.constant 0 : index
      %17 = vector.load %arg6[%c0_14, %c0_15] : memref<1x256xf32, #tpu.memory_space<vmem>>, vector<1x256xf32>
      tpu.vector_store %arg6[%c0_14, %c0_15], %9 {strides = array<i32>} : memref<1x256xf32, #tpu.memory_space<vmem>>, vector<1x256xf32>,
    } else {
    }
    %c0_i32_10 = arith.constant 0 : i32
    %13 = arith.cmpi eq, %arg1, %c0_i32_10 : i32
    %14 = arith.extui %13 : i1 to i32
    %c0_i32_11 = arith.constant 0 : i32
    %15 = arith.cmpi ne, %14, %c0_i32_11 : i32
    scf.if %15 {
      %cst_12 = arith.constant 2.500000e-01 : f32
      %16 = vector.broadcast %cst_12 : f32 to vector<1x256xf32>
      %17 = arith.mulf %7, %16 : vector<1x256xf32>
      %cst_13 = arith.constant 0.000000e+00 : f32
      %18 = vector.broadcast %cst_13 : f32 to vector<1x22x22xf32>
      %c0_14 = arith.constant 0 : index
      %c0_15 = arith.constant 0 : index
      %c0_16 = arith.constant 0 : index
      %19 = vector.load %arg7[%c0_14, %c0_15, %c0_16] : memref<1x22x22xf32, #tpu.memory_space<vmem>>, vector<1x22x22xf32>
      tpu.vector_store %arg7[%c0_14, %c0_15, %c0_16], %18 {strides = array<i32>} : memref<1x22x22xf32, #tpu.memory_space<vmem>>, vector<1x22x22xf32>,
      %cst_17 = arith.constant 0.000000e+00 : f32
      %20 = vector.broadcast %cst_17 : f32 to vector<1x22x22xf32>
      %c0_18 = arith.constant 0 : index
      %c0_19 = arith.constant 0 : index
      %c0_20 = arith.constant 0 : index
      %21 = vector.load %arg8[%c0_18, %c0_19, %c0_20] : memref<1x22x22xf32, #tpu.memory_space<vmem>>, vector<1x22x22xf32>
      tpu.vector_store %arg8[%c0_18, %c0_19, %c0_20], %20 {strides = array<i32>} : memref<1x22x22xf32, #tpu.memory_space<vmem>>, vector<1x22x22xf32>,
      %22 = vector.extract_strided_slice %17 {offsets = [0, 0], sizes = [1, 16], strides = [1, 1]} : vector<1x256xf32> to vector<1x16xf32>
      %c0_21 = arith.constant 0 : index
      %c3 = arith.constant 3 : index
      %c3_22 = arith.constant 3 : index
      %23 = vector.load %arg7[%c0_21, %c3, %c3_22] : memref<1x22x22xf32, #tpu.memory_space<vmem>>, vector<1x1x16xf32>
      %24 = vector.shape_cast %23 : vector<1x1x16xf32> to vector<1x16xf32>
      %25 = vector.shape_cast %22 : vector<1x16xf32> to vector<1x1x16xf32>
      tpu.vector_store %arg7[%c0_21, %c3, %c3_22], %25 {strides = array<i32>} : memref<1x22x22xf32, #tpu.memory_space<vmem>>, vector<1x1x16xf32>,
      %26 = vector.extract_strided_slice %9 {offsets = [0, 0], sizes = [1, 16], strides = [1, 1]} : vector<1x256xf32> to vector<1x16xf32>
      %c0_23 = arith.constant 0 : index
      %c3_24 = arith.constant 3 : index
      %c3_25 = arith.constant 3 : index
      %27 = vector.load %arg8[%c0_23, %c3_24, %c3_25] : memref<1x22x22xf32, #tpu.memory_space<vmem>>, vector<1x1x16xf32>
      %28 = vector.shape_cast %27 : vector<1x1x16xf32> to vector<1x16xf32>
      %29 = vector.shape_cast %26 : vector<1x16xf32> to vector<1x1x16xf32>
      tpu.vector_store %arg8[%c0_23, %c3_24, %c3_25], %29 {strides = array<i32>} : memref<1x22x22xf32, #tpu.memory_space<vmem>>, vector<1x1x16xf32>,
      %30 = vector.extract_strided_slice %17 {offsets = [0, 16], sizes = [1, 16], strides = [1, 1]} : vector<1x256xf32> to vector<1x16xf32>
      %c0_26 = arith.constant 0 : index
      %c4 = arith.constant 4 : index
      %c3_27 = arith.constant 3 : index
      %31 = vector.load %arg7[%c0_26, %c4, %c3_27] : memref<1x22x22xf32, #tpu.memory_space<vmem>>, vector<1x1x16xf32>
      %32 = vector.shape_cast %31 : vector<1x1x16xf32> to vector<1x16xf32>
      %33 = vector.shape_cast %30 : vector<1x16xf32> to vector<1x1x16xf32>
      tpu.vector_store %arg7[%c0_26, %c4, %c3_27], %33 {strides = array<i32>} : memref<1x22x22xf32, #tpu.memory_space<vmem>>, vector<1x1x16xf32>,
      %34 = vector.extract_strided_slice %9 {offsets = [0, 16], sizes = [1, 16], strides = [1, 1]} : vector<1x256xf32> to vector<1x16xf32>
      %c0_28 = arith.constant 0 : index
      %c4_29 = arith.constant 4 : index
      %c3_30 = arith.constant 3 : index
      %35 = vector.load %arg8[%c0_28, %c4_29, %c3_30] : memref<1x22x22xf32, #tpu.memory_space<vmem>>, vector<1x1x16xf32>
      %36 = vector.shape_cast %35 : vector<1x1x16xf32> to vector<1x16xf32>
      %37 = vector.shape_cast %34 : vector<1x16xf32> to vector<1x1x16xf32>
      tpu.vector_store %arg8[%c0_28, %c4_29, %c3_30], %37 {strides = array<i32>} : memref<1x22x22xf32, #tpu.memory_space<vmem>>, vector<1x1x16xf32>,
      %38 = vector.extract_strided_slice %17 {offsets = [0, 32], sizes = [1, 16], strides = [1, 1]} : vector<1x256xf32> to vector<1x16xf32>
      %c0_31 = arith.constant 0 : index
      %c5 = arith.constant 5 : index
      %c3_32 = arith.constant 3 : index
      %39 = vector.load %arg7[%c0_31, %c5, %c3_32] : memref<1x22x22xf32, #tpu.memory_space<vmem>>, vector<1x1x16xf32>
      %40 = vector.shape_cast %39 : vector<1x1x16xf32> to vector<1x16xf32>
      %41 = vector.shape_cast %38 : vector<1x16xf32> to vector<1x1x16xf32>
      tpu.vector_store %arg7[%c0_31, %c5, %c3_32], %41 {strides = array<i32>} : memref<1x22x22xf32, #tpu.memory_space<vmem>>, vector<1x1x16xf32>,
      %42 = vector.extract_strided_slice %9 {offsets = [0, 32], sizes = [1, 16], strides = [1, 1]} : vector<1x256xf32> to vector<1x16xf32>
      %c0_33 = arith.constant 0 : index
      %c5_34 = arith.constant 5 : index
      %c3_35 = arith.constant 3 : index
      %43 = vector.load %arg8[%c0_33, %c5_34, %c3_35] : memref<1x22x22xf32, #tpu.memory_space<vmem>>, vector<1x1x16xf32>
      %44 = vector.shape_cast %43 : vector<1x1x16xf32> to vector<1x16xf32>
      %45 = vector.shape_cast %42 : vector<1x16xf32> to vector<1x1x16xf32>
      tpu.vector_store %arg8[%c0_33, %c5_34, %c3_35], %45 {strides = array<i32>} : memref<1x22x22xf32, #tpu.memory_space<vmem>>, vector<1x1x16xf32>,
      %46 = vector.extract_strided_slice %17 {offsets = [0, 48], sizes = [1, 16], strides = [1, 1]} : vector<1x256xf32> to vector<1x16xf32>
      %c0_36 = arith.constant 0 : index
      %c6 = arith.constant 6 : index
      %c3_37 = arith.constant 3 : index
      %47 = vector.load %arg7[%c0_36, %c6, %c3_37] : memref<1x22x22xf32, #tpu.memory_space<vmem>>, vector<1x1x16xf32>
      %48 = vector.shape_cast %47 : vector<1x1x16xf32> to vector<1x16xf32>
      %49 = vector.shape_cast %46 : vector<1x16xf32> to vector<1x1x16xf32>
      tpu.vector_store %arg7[%c0_36, %c6, %c3_37], %49 {strides = array<i32>} : memref<1x22x22xf32, #tpu.memory_space<vmem>>, vector<1x1x16xf32>,
      %50 = vector.extract_strided_slice %9 {offsets = [0, 48], sizes = [1, 16], strides = [1, 1]} : vector<1x256xf32> to vector<1x16xf32>
      %c0_38 = arith.constant 0 : index
      %c6_39 = arith.constant 6 : index
      %c3_40 = arith.constant 3 : index
      %51 = vector.load %arg8[%c0_38, %c6_39, %c3_40] : memref<1x22x22xf32, #tpu.memory_space<vmem>>, vector<1x1x16xf32>
      %52 = vector.shape_cast %51 : vector<1x1x16xf32> to vector<1x16xf32>
      %53 = vector.shape_cast %50 : vector<1x16xf32> to vector<1x1x16xf32>
      tpu.vector_store %arg8[%c0_38, %c6_39, %c3_40], %53 {strides = array<i32>} : memref<1x22x22xf32, #tpu.memory_space<vmem>>, vector<1x1x16xf32>,
      %54 = vector.extract_strided_slice %17 {offsets = [0, 64], sizes = [1, 16], strides = [1, 1]} : vector<1x256xf32> to vector<1x16xf32>
      %c0_41 = arith.constant 0 : index
      %c7 = arith.constant 7 : index
      %c3_42 = arith.constant 3 : index
      %55 = vector.load %arg7[%c0_41, %c7, %c3_42] : memref<1x22x22xf32, #tpu.memory_space<vmem>>, vector<1x1x16xf32>
      %56 = vector.shape_cast %55 : vector<1x1x16xf32> to vector<1x16xf32>
      %57 = vector.shape_cast %54 : vector<1x16xf32> to vector<1x1x16xf32>
      tpu.vector_store %arg7[%c0_41, %c7, %c3_42], %57 {strides = array<i32>} : memref<1x22x22xf32, #tpu.memory_space<vmem>>, vector<1x1x16xf32>,
      %58 = vector.extract_strided_slice %9 {offsets = [0, 64], sizes = [1, 16], strides = [1, 1]} : vector<1x256xf32> to vector<1x16xf32>
      %c0_43 = arith.constant 0 : index
      %c7_44 = arith.constant 7 : index
      %c3_45 = arith.constant 3 : index
      %59 = vector.load %arg8[%c0_43, %c7_44, %c3_45] : memref<1x22x22xf32, #tpu.memory_space<vmem>>, vector<1x1x16xf32>
      %60 = vector.shape_cast %59 : vector<1x1x16xf32> to vector<1x16xf32>
      %61 = vector.shape_cast %58 : vector<1x16xf32> to vector<1x1x16xf32>
      tpu.vector_store %arg8[%c0_43, %c7_44, %c3_45], %61 {strides = array<i32>} : memref<1x22x22xf32, #tpu.memory_space<vmem>>, vector<1x1x16xf32>,
      %62 = vector.extract_strided_slice %17 {offsets = [0, 80], sizes = [1, 16], strides = [1, 1]} : vector<1x256xf32> to vector<1x16xf32>
      %c0_46 = arith.constant 0 : index
      %c8 = arith.constant 8 : index
      %c3_47 = arith.constant 3 : index
      %63 = vector.load %arg7[%c0_46, %c8, %c3_47] : memref<1x22x22xf32, #tpu.memory_space<vmem>>, vector<1x1x16xf32>
      %64 = vector.shape_cast %63 : vector<1x1x16xf32> to vector<1x16xf32>
      %65 = vector.shape_cast %62 : vector<1x16xf32> to vector<1x1x16xf32>
      tpu.vector_store %arg7[%c0_46, %c8, %c3_47], %65 {strides = array<i32>} : memref<1x22x22xf32, #tpu.memory_space<vmem>>, vector<1x1x16xf32>,
      %66 = vector.extract_strided_slice %9 {offsets = [0, 80], sizes = [1, 16], strides = [1, 1]} : vector<1x256xf32> to vector<1x16xf32>
      %c0_48 = arith.constant 0 : index
      %c8_49 = arith.constant 8 : index
      %c3_50 = arith.constant 3 : index
      %67 = vector.load %arg8[%c0_48, %c8_49, %c3_50] : memref<1x22x22xf32, #tpu.memory_space<vmem>>, vector<1x1x16xf32>
      %68 = vector.shape_cast %67 : vector<1x1x16xf32> to vector<1x16xf32>
      %69 = vector.shape_cast %66 : vector<1x16xf32> to vector<1x1x16xf32>
      tpu.vector_store %arg8[%c0_48, %c8_49, %c3_50], %69 {strides = array<i32>} : memref<1x22x22xf32, #tpu.memory_space<vmem>>, vector<1x1x16xf32>,
      %70 = vector.extract_strided_slice %17 {offsets = [0, 96], sizes = [1, 16], strides = [1, 1]} : vector<1x256xf32> to vector<1x16xf32>
      %c0_51 = arith.constant 0 : index
      %c9 = arith.constant 9 : index
      %c3_52 = arith.constant 3 : index
      %71 = vector.load %arg7[%c0_51, %c9, %c3_52] : memref<1x22x22xf32, #tpu.memory_space<vmem>>, vector<1x1x16xf32>
      %72 = vector.shape_cast %71 : vector<1x1x16xf32> to vector<1x16xf32>
      %73 = vector.shape_cast %70 : vector<1x16xf32> to vector<1x1x16xf32>
      tpu.vector_store %arg7[%c0_51, %c9, %c3_52], %73 {strides = array<i32>} : memref<1x22x22xf32, #tpu.memory_space<vmem>>, vector<1x1x16xf32>,
      %74 = vector.extract_strided_slice %9 {offsets = [0, 96], sizes = [1, 16], strides = [1, 1]} : vector<1x256xf32> to vector<1x16xf32>
      %c0_53 = arith.constant 0 : index
      %c9_54 = arith.constant 9 : index
      %c3_55 = arith.constant 3 : index
      %75 = vector.load %arg8[%c0_53, %c9_54, %c3_55] : memref<1x22x22xf32, #tpu.memory_space<vmem>>, vector<1x1x16xf32>
      %76 = vector.shape_cast %75 : vector<1x1x16xf32> to vector<1x16xf32>
      %77 = vector.shape_cast %74 : vector<1x16xf32> to vector<1x1x16xf32>
      tpu.vector_store %arg8[%c0_53, %c9_54, %c3_55], %77 {strides = array<i32>} : memref<1x22x22xf32, #tpu.memory_space<vmem>>, vector<1x1x16xf32>,
      %78 = vector.extract_strided_slice %17 {offsets = [0, 112], sizes = [1, 16], strides = [1, 1]} : vector<1x256xf32> to vector<1x16xf32>
      %c0_56 = arith.constant 0 : index
      %c10 = arith.constant 10 : index
      %c3_57 = arith.constant 3 : index
      %79 = vector.load %arg7[%c0_56, %c10, %c3_57] : memref<1x22x22xf32, #tpu.memory_space<vmem>>, vector<1x1x16xf32>
      %80 = vector.shape_cast %79 : vector<1x1x16xf32> to vector<1x16xf32>
      %81 = vector.shape_cast %78 : vector<1x16xf32> to vector<1x1x16xf32>
      tpu.vector_store %arg7[%c0_56, %c10, %c3_57], %81 {strides = array<i32>} : memref<1x22x22xf32, #tpu.memory_space<vmem>>, vector<1x1x16xf32>,
      %82 = vector.extract_strided_slice %9 {offsets = [0, 112], sizes = [1, 16], strides = [1, 1]} : vector<1x256xf32> to vector<1x16xf32>
      %c0_58 = arith.constant 0 : index
      %c10_59 = arith.constant 10 : index
      %c3_60 = arith.constant 3 : index
      %83 = vector.load %arg8[%c0_58, %c10_59, %c3_60] : memref<1x22x22xf32, #tpu.memory_space<vmem>>, vector<1x1x16xf32>
      %84 = vector.shape_cast %83 : vector<1x1x16xf32> to vector<1x16xf32>
      %85 = vector.shape_cast %82 : vector<1x16xf32> to vector<1x1x16xf32>
      tpu.vector_store %arg8[%c0_58, %c10_59, %c3_60], %85 {strides = array<i32>} : memref<1x22x22xf32, #tpu.memory_space<vmem>>, vector<1x1x16xf32>,
      %86 = vector.extract_strided_slice %17 {offsets = [0, 128], sizes = [1, 16], strides = [1, 1]} : vector<1x256xf32> to vector<1x16xf32>
      %c0_61 = arith.constant 0 : index
      %c11 = arith.constant 11 : index
      %c3_62 = arith.constant 3 : index
      %87 = vector.load %arg7[%c0_61, %c11, %c3_62] : memref<1x22x22xf32, #tpu.memory_space<vmem>>, vector<1x1x16xf32>
      %88 = vector.shape_cast %87 : vector<1x1x16xf32> to vector<1x16xf32>
      %89 = vector.shape_cast %86 : vector<1x16xf32> to vector<1x1x16xf32>
      tpu.vector_store %arg7[%c0_61, %c11, %c3_62], %89 {strides = array<i32>} : memref<1x22x22xf32, #tpu.memory_space<vmem>>, vector<1x1x16xf32>,
      %90 = vector.extract_strided_slice %9 {offsets = [0, 128], sizes = [1, 16], strides = [1, 1]} : vector<1x256xf32> to vector<1x16xf32>
      %c0_63 = arith.constant 0 : index
      %c11_64 = arith.constant 11 : index
      %c3_65 = arith.constant 3 : index
      %91 = vector.load %arg8[%c0_63, %c11_64, %c3_65] : memref<1x22x22xf32, #tpu.memory_space<vmem>>, vector<1x1x16xf32>
      %92 = vector.shape_cast %91 : vector<1x1x16xf32> to vector<1x16xf32>
      %93 = vector.shape_cast %90 : vector<1x16xf32> to vector<1x1x16xf32>
      tpu.vector_store %arg8[%c0_63, %c11_64, %c3_65], %93 {strides = array<i32>} : memref<1x22x22xf32, #tpu.memory_space<vmem>>, vector<1x1x16xf32>,
      %94 = vector.extract_strided_slice %17 {offsets = [0, 144], sizes = [1, 16], strides = [1, 1]} : vector<1x256xf32> to vector<1x16xf32>
      %c0_66 = arith.constant 0 : index
      %c12 = arith.constant 12 : index
      %c3_67 = arith.constant 3 : index
      %95 = vector.load %arg7[%c0_66, %c12, %c3_67] : memref<1x22x22xf32, #tpu.memory_space<vmem>>, vector<1x1x16xf32>
      %96 = vector.shape_cast %95 : vector<1x1x16xf32> to vector<1x16xf32>
      %97 = vector.shape_cast %94 : vector<1x16xf32> to vector<1x1x16xf32>
      tpu.vector_store %arg7[%c0_66, %c12, %c3_67], %97 {strides = array<i32>} : memref<1x22x22xf32, #tpu.memory_space<vmem>>, vector<1x1x16xf32>,
      %98 = vector.extract_strided_slice %9 {offsets = [0, 144], sizes = [1, 16], strides = [1, 1]} : vector<1x256xf32> to vector<1x16xf32>
      %c0_68 = arith.constant 0 : index
      %c12_69 = arith.constant 12 : index
      %c3_70 = arith.constant 3 : index
      %99 = vector.load %arg8[%c0_68, %c12_69, %c3_70] : memref<1x22x22xf32, #tpu.memory_space<vmem>>, vector<1x1x16xf32>
      %100 = vector.shape_cast %99 : vector<1x1x16xf32> to vector<1x16xf32>
      %101 = vector.shape_cast %98 : vector<1x16xf32> to vector<1x1x16xf32>
      tpu.vector_store %arg8[%c0_68, %c12_69, %c3_70], %101 {strides = array<i32>} : memref<1x22x22xf32, #tpu.memory_space<vmem>>, vector<1x1x16xf32>,
      %102 = vector.extract_strided_slice %17 {offsets = [0, 160], sizes = [1, 16], strides = [1, 1]} : vector<1x256xf32> to vector<1x16xf32>
      %c0_71 = arith.constant 0 : index
      %c13 = arith.constant 13 : index
      %c3_72 = arith.constant 3 : index
      %103 = vector.load %arg7[%c0_71, %c13, %c3_72] : memref<1x22x22xf32, #tpu.memory_space<vmem>>, vector<1x1x16xf32>
      %104 = vector.shape_cast %103 : vector<1x1x16xf32> to vector<1x16xf32>
      %105 = vector.shape_cast %102 : vector<1x16xf32> to vector<1x1x16xf32>
      tpu.vector_store %arg7[%c0_71, %c13, %c3_72], %105 {strides = array<i32>} : memref<1x22x22xf32, #tpu.memory_space<vmem>>, vector<1x1x16xf32>,
      %106 = vector.extract_strided_slice %9 {offsets = [0, 160], sizes = [1, 16], strides = [1, 1]} : vector<1x256xf32> to vector<1x16xf32>
      %c0_73 = arith.constant 0 : index
      %c13_74 = arith.constant 13 : index
      %c3_75 = arith.constant 3 : index
      %107 = vector.load %arg8[%c0_73, %c13_74, %c3_75] : memref<1x22x22xf32, #tpu.memory_space<vmem>>, vector<1x1x16xf32>
      %108 = vector.shape_cast %107 : vector<1x1x16xf32> to vector<1x16xf32>
      %109 = vector.shape_cast %106 : vector<1x16xf32> to vector<1x1x16xf32>
      tpu.vector_store %arg8[%c0_73, %c13_74, %c3_75], %109 {strides = array<i32>} : memref<1x22x22xf32, #tpu.memory_space<vmem>>, vector<1x1x16xf32>,
      %110 = vector.extract_strided_slice %17 {offsets = [0, 176], sizes = [1, 16], strides = [1, 1]} : vector<1x256xf32> to vector<1x16xf32>
      %c0_76 = arith.constant 0 : index
      %c14 = arith.constant 14 : index
      %c3_77 = arith.constant 3 : index
      %111 = vector.load %arg7[%c0_76, %c14, %c3_77] : memref<1x22x22xf32, #tpu.memory_space<vmem>>, vector<1x1x16xf32>
      %112 = vector.shape_cast %111 : vector<1x1x16xf32> to vector<1x16xf32>
      %113 = vector.shape_cast %110 : vector<1x16xf32> to vector<1x1x16xf32>
      tpu.vector_store %arg7[%c0_76, %c14, %c3_77], %113 {strides = array<i32>} : memref<1x22x22xf32, #tpu.memory_space<vmem>>, vector<1x1x16xf32>,
      %114 = vector.extract_strided_slice %9 {offsets = [0, 176], sizes = [1, 16], strides = [1, 1]} : vector<1x256xf32> to vector<1x16xf32>
      %c0_78 = arith.constant 0 : index
      %c14_79 = arith.constant 14 : index
      %c3_80 = arith.constant 3 : index
      %115 = vector.load %arg8[%c0_78, %c14_79, %c3_80] : memref<1x22x22xf32, #tpu.memory_space<vmem>>, vector<1x1x16xf32>
      %116 = vector.shape_cast %115 : vector<1x1x16xf32> to vector<1x16xf32>
      %117 = vector.shape_cast %114 : vector<1x16xf32> to vector<1x1x16xf32>
      tpu.vector_store %arg8[%c0_78, %c14_79, %c3_80], %117 {strides = array<i32>} : memref<1x22x22xf32, #tpu.memory_space<vmem>>, vector<1x1x16xf32>,
      %118 = vector.extract_strided_slice %17 {offsets = [0, 192], sizes = [1, 16], strides = [1, 1]} : vector<1x256xf32> to vector<1x16xf32>
      %c0_81 = arith.constant 0 : index
      %c15 = arith.constant 15 : index
      %c3_82 = arith.constant 3 : index
      %119 = vector.load %arg7[%c0_81, %c15, %c3_82] : memref<1x22x22xf32, #tpu.memory_space<vmem>>, vector<1x1x16xf32>
      %120 = vector.shape_cast %119 : vector<1x1x16xf32> to vector<1x16xf32>
      %121 = vector.shape_cast %118 : vector<1x16xf32> to vector<1x1x16xf32>
      tpu.vector_store %arg7[%c0_81, %c15, %c3_82], %121 {strides = array<i32>} : memref<1x22x22xf32, #tpu.memory_space<vmem>>, vector<1x1x16xf32>,
      %122 = vector.extract_strided_slice %9 {offsets = [0, 192], sizes = [1, 16], strides = [1, 1]} : vector<1x256xf32> to vector<1x16xf32>
      %c0_83 = arith.constant 0 : index
      %c15_84 = arith.constant 15 : index
      %c3_85 = arith.constant 3 : index
      %123 = vector.load %arg8[%c0_83, %c15_84, %c3_85] : memref<1x22x22xf32, #tpu.memory_space<vmem>>, vector<1x1x16xf32>
      %124 = vector.shape_cast %123 : vector<1x1x16xf32> to vector<1x16xf32>
      %125 = vector.shape_cast %122 : vector<1x16xf32> to vector<1x1x16xf32>
      tpu.vector_store %arg8[%c0_83, %c15_84, %c3_85], %125 {strides = array<i32>} : memref<1x22x22xf32, #tpu.memory_space<vmem>>, vector<1x1x16xf32>,
      %126 = vector.extract_strided_slice %17 {offsets = [0, 208], sizes = [1, 16], strides = [1, 1]} : vector<1x256xf32> to vector<1x16xf32>
      %c0_86 = arith.constant 0 : index
      %c16 = arith.constant 16 : index
      %c3_87 = arith.constant 3 : index
      %127 = vector.load %arg7[%c0_86, %c16, %c3_87] : memref<1x22x22xf32, #tpu.memory_space<vmem>>, vector<1x1x16xf32>
      %128 = vector.shape_cast %127 : vector<1x1x16xf32> to vector<1x16xf32>
      %129 = vector.shape_cast %126 : vector<1x16xf32> to vector<1x1x16xf32>
      tpu.vector_store %arg7[%c0_86, %c16, %c3_87], %129 {strides = array<i32>} : memref<1x22x22xf32, #tpu.memory_space<vmem>>, vector<1x1x16xf32>,
      %130 = vector.extract_strided_slice %9 {offsets = [0, 208], sizes = [1, 16], strides = [1, 1]} : vector<1x256xf32> to vector<1x16xf32>
      %c0_88 = arith.constant 0 : index
      %c16_89 = arith.constant 16 : index
      %c3_90 = arith.constant 3 : index
      %131 = vector.load %arg8[%c0_88, %c16_89, %c3_90] : memref<1x22x22xf32, #tpu.memory_space<vmem>>, vector<1x1x16xf32>
      %132 = vector.shape_cast %131 : vector<1x1x16xf32> to vector<1x16xf32>
      %133 = vector.shape_cast %130 : vector<1x16xf32> to vector<1x1x16xf32>
      tpu.vector_store %arg8[%c0_88, %c16_89, %c3_90], %133 {strides = array<i32>} : memref<1x22x22xf32, #tpu.memory_space<vmem>>, vector<1x1x16xf32>,
      %134 = vector.extract_strided_slice %17 {offsets = [0, 224], sizes = [1, 16], strides = [1, 1]} : vector<1x256xf32> to vector<1x16xf32>
      %c0_91 = arith.constant 0 : index
      %c17 = arith.constant 17 : index
      %c3_92 = arith.constant 3 : index
      %135 = vector.load %arg7[%c0_91, %c17, %c3_92] : memref<1x22x22xf32, #tpu.memory_space<vmem>>, vector<1x1x16xf32>
      %136 = vector.shape_cast %135 : vector<1x1x16xf32> to vector<1x16xf32>
      %137 = vector.shape_cast %134 : vector<1x16xf32> to vector<1x1x16xf32>
      tpu.vector_store %arg7[%c0_91, %c17, %c3_92], %137 {strides = array<i32>} : memref<1x22x22xf32, #tpu.memory_space<vmem>>, vector<1x1x16xf32>,
      %138 = vector.extract_strided_slice %9 {offsets = [0, 224], sizes = [1, 16], strides = [1, 1]} : vector<1x256xf32> to vector<1x16xf32>
      %c0_93 = arith.constant 0 : index
      %c17_94 = arith.constant 17 : index
      %c3_95 = arith.constant 3 : index
      %139 = vector.load %arg8[%c0_93, %c17_94, %c3_95] : memref<1x22x22xf32, #tpu.memory_space<vmem>>, vector<1x1x16xf32>
      %140 = vector.shape_cast %139 : vector<1x1x16xf32> to vector<1x16xf32>
      %141 = vector.shape_cast %138 : vector<1x16xf32> to vector<1x1x16xf32>
      tpu.vector_store %arg8[%c0_93, %c17_94, %c3_95], %141 {strides = array<i32>} : memref<1x22x22xf32, #tpu.memory_space<vmem>>, vector<1x1x16xf32>,
      %142 = vector.extract_strided_slice %17 {offsets = [0, 240], sizes = [1, 16], strides = [1, 1]} : vector<1x256xf32> to vector<1x16xf32>
      %c0_96 = arith.constant 0 : index
      %c18 = arith.constant 18 : index
      %c3_97 = arith.constant 3 : index
      %143 = vector.load %arg7[%c0_96, %c18, %c3_97] : memref<1x22x22xf32, #tpu.memory_space<vmem>>, vector<1x1x16xf32>
      %144 = vector.shape_cast %143 : vector<1x1x16xf32> to vector<1x16xf32>
      %145 = vector.shape_cast %142 : vector<1x16xf32> to vector<1x1x16xf32>
      tpu.vector_store %arg7[%c0_96, %c18, %c3_97], %145 {strides = array<i32>} : memref<1x22x22xf32, #tpu.memory_space<vmem>>, vector<1x1x16xf32>,
      %146 = vector.extract_strided_slice %9 {offsets = [0, 240], sizes = [1, 16], strides = [1, 1]} : vector<1x256xf32> to vector<1x16xf32>
      %c0_98 = arith.constant 0 : index
      %c18_99 = arith.constant 18 : index
      %c3_100 = arith.constant 3 : index
      %147 = vector.load %arg8[%c0_98, %c18_99, %c3_100] : memref<1x22x22xf32, #tpu.memory_space<vmem>>, vector<1x1x16xf32>
      %148 = vector.shape_cast %147 : vector<1x1x16xf32> to vector<1x16xf32>
      %149 = vector.shape_cast %146 : vector<1x16xf32> to vector<1x1x16xf32>
      tpu.vector_store %arg8[%c0_98, %c18_99, %c3_100], %149 {strides = array<i32>} : memref<1x22x22xf32, #tpu.memory_space<vmem>>, vector<1x1x16xf32>,
      %c0_101 = arith.constant 0 : index
      %c0_102 = arith.constant 0 : index
      %c0_103 = arith.constant 0 : index
      %150 = vector.load %arg7[%c0_101, %c0_102, %c0_103] : memref<1x22x22xf32, #tpu.memory_space<vmem>>, vector<1x22x22xf32>
      %c0_104 = arith.constant 0 : index
      %c0_105 = arith.constant 0 : index
      %c0_106 = arith.constant 0 : index
      %151 = vector.load %arg8[%c0_104, %c0_105, %c0_106] : memref<1x22x22xf32, #tpu.memory_space<vmem>>, vector<1x22x22xf32>
      %c0_107 = arith.constant 0 : index
      %152 = memref.load %arg2[%c0_107] : memref<98xf32, #tpu.memory_space<smem>>
      %c1 = arith.constant 1 : index
      %153 = memref.load %arg2[%c1] : memref<98xf32, #tpu.memory_space<smem>>
      %c2 = arith.constant 2 : index
      %154 = memref.load %arg2[%c2] : memref<98xf32, #tpu.memory_space<smem>>
      %c3_108 = arith.constant 3 : index
      %155 = memref.load %arg2[%c3_108] : memref<98xf32, #tpu.memory_space<smem>>
      %c4_109 = arith.constant 4 : index
      %156 = memref.load %arg2[%c4_109] : memref<98xf32, #tpu.memory_space<smem>>
      %c5_110 = arith.constant 5 : index
      %157 = memref.load %arg2[%c5_110] : memref<98xf32, #tpu.memory_space<smem>>
      %c6_111 = arith.constant 6 : index
      %158 = memref.load %arg2[%c6_111] : memref<98xf32, #tpu.memory_space<smem>>
      %c7_112 = arith.constant 7 : index
      %159 = memref.load %arg2[%c7_112] : memref<98xf32, #tpu.memory_space<smem>>
      %c8_113 = arith.constant 8 : index
      %160 = memref.load %arg2[%c8_113] : memref<98xf32, #tpu.memory_space<smem>>
      %c9_114 = arith.constant 9 : index
      %161 = memref.load %arg2[%c9_114] : memref<98xf32, #tpu.memory_space<smem>>
      %c10_115 = arith.constant 10 : index
      %162 = memref.load %arg2[%c10_115] : memref<98xf32, #tpu.memory_space<smem>>
      %c11_116 = arith.constant 11 : index
      %163 = memref.load %arg2[%c11_116] : memref<98xf32, #tpu.memory_space<smem>>
      %c12_117 = arith.constant 12 : index
      %164 = memref.load %arg2[%c12_117] : memref<98xf32, #tpu.memory_space<smem>>
      %c13_118 = arith.constant 13 : index
      %165 = memref.load %arg2[%c13_118] : memref<98xf32, #tpu.memory_space<smem>>
      %c14_119 = arith.constant 14 : index
      %166 = memref.load %arg2[%c14_119] : memref<98xf32, #tpu.memory_space<smem>>
      %c15_120 = arith.constant 15 : index
      %167 = memref.load %arg2[%c15_120] : memref<98xf32, #tpu.memory_space<smem>>
      %c16_121 = arith.constant 16 : index
      %168 = memref.load %arg2[%c16_121] : memref<98xf32, #tpu.memory_space<smem>>
      %c17_122 = arith.constant 17 : index
      %169 = memref.load %arg2[%c17_122] : memref<98xf32, #tpu.memory_space<smem>>
      %c18_123 = arith.constant 18 : index
      %170 = memref.load %arg2[%c18_123] : memref<98xf32, #tpu.memory_space<smem>>
      %c19 = arith.constant 19 : index
      %171 = memref.load %arg2[%c19] : memref<98xf32, #tpu.memory_space<smem>>
      %c20 = arith.constant 20 : index
      %172 = memref.load %arg2[%c20] : memref<98xf32, #tpu.memory_space<smem>>
      %c21 = arith.constant 21 : index
      %173 = memref.load %arg2[%c21] : memref<98xf32, #tpu.memory_space<smem>>
      %c22 = arith.constant 22 : index
      %174 = memref.load %arg2[%c22] : memref<98xf32, #tpu.memory_space<smem>>
      %c23 = arith.constant 23 : index
      %175 = memref.load %arg2[%c23] : memref<98xf32, #tpu.memory_space<smem>>
      %c24 = arith.constant 24 : index
      %176 = memref.load %arg2[%c24] : memref<98xf32, #tpu.memory_space<smem>>
      %c25 = arith.constant 25 : index
      %177 = memref.load %arg2[%c25] : memref<98xf32, #tpu.memory_space<smem>>
      %c26 = arith.constant 26 : index
      %178 = memref.load %arg2[%c26] : memref<98xf32, #tpu.memory_space<smem>>
      %c27 = arith.constant 27 : index
      %179 = memref.load %arg2[%c27] : memref<98xf32, #tpu.memory_space<smem>>
      %c28 = arith.constant 28 : index
      %180 = memref.load %arg2[%c28] : memref<98xf32, #tpu.memory_space<smem>>
      %c29 = arith.constant 29 : index
      %181 = memref.load %arg2[%c29] : memref<98xf32, #tpu.memory_space<smem>>
      %c30 = arith.constant 30 : index
      %182 = memref.load %arg2[%c30] : memref<98xf32, #tpu.memory_space<smem>>
      %c31 = arith.constant 31 : index
      %183 = memref.load %arg2[%c31] : memref<98xf32, #tpu.memory_space<smem>>
      %c32 = arith.constant 32 : index
      %184 = memref.load %arg2[%c32] : memref<98xf32, #tpu.memory_space<smem>>
      %c33 = arith.constant 33 : index
      %185 = memref.load %arg2[%c33] : memref<98xf32, #tpu.memory_space<smem>>
      %c34 = arith.constant 34 : index
      %186 = memref.load %arg2[%c34] : memref<98xf32, #tpu.memory_space<smem>>
      %c35 = arith.constant 35 : index
      %187 = memref.load %arg2[%c35] : memref<98xf32, #tpu.memory_space<smem>>
      %c36 = arith.constant 36 : index
      %188 = memref.load %arg2[%c36] : memref<98xf32, #tpu.memory_space<smem>>
      %c37 = arith.constant 37 : index
      %189 = memref.load %arg2[%c37] : memref<98xf32, #tpu.memory_space<smem>>
      %c38 = arith.constant 38 : index
      %190 = memref.load %arg2[%c38] : memref<98xf32, #tpu.memory_space<smem>>
      %c39 = arith.constant 39 : index
      %191 = memref.load %arg2[%c39] : memref<98xf32, #tpu.memory_space<smem>>
      %c40 = arith.constant 40 : index
      %192 = memref.load %arg2[%c40] : memref<98xf32, #tpu.memory_space<smem>>
      %c41 = arith.constant 41 : index
      %193 = memref.load %arg2[%c41] : memref<98xf32, #tpu.memory_space<smem>>
      %c42 = arith.constant 42 : index
      %194 = memref.load %arg2[%c42] : memref<98xf32, #tpu.memory_space<smem>>
      %c43 = arith.constant 43 : index
      %195 = memref.load %arg2[%c43] : memref<98xf32, #tpu.memory_space<smem>>
      %c44 = arith.constant 44 : index
      %196 = memref.load %arg2[%c44] : memref<98xf32, #tpu.memory_space<smem>>
      %c45 = arith.constant 45 : index
      %197 = memref.load %arg2[%c45] : memref<98xf32, #tpu.memory_space<smem>>
      %c46 = arith.constant 46 : index
      %198 = memref.load %arg2[%c46] : memref<98xf32, #tpu.memory_space<smem>>
      %c47 = arith.constant 47 : index
      %199 = memref.load %arg2[%c47] : memref<98xf32, #tpu.memory_space<smem>>
      %c48 = arith.constant 48 : index
      %200 = memref.load %arg2[%c48] : memref<98xf32, #tpu.memory_space<smem>>
      %c49 = arith.constant 49 : index
      %201 = memref.load %arg2[%c49] : memref<98xf32, #tpu.memory_space<smem>>
      %c50 = arith.constant 50 : index
      %202 = memref.load %arg2[%c50] : memref<98xf32, #tpu.memory_space<smem>>
      %c51 = arith.constant 51 : index
      %203 = memref.load %arg2[%c51] : memref<98xf32, #tpu.memory_space<smem>>
      %c52 = arith.constant 52 : index
      %204 = memref.load %arg2[%c52] : memref<98xf32, #tpu.memory_space<smem>>
      %c53 = arith.constant 53 : index
      %205 = memref.load %arg2[%c53] : memref<98xf32, #tpu.memory_space<smem>>
      %c54 = arith.constant 54 : index
      %206 = memref.load %arg2[%c54] : memref<98xf32, #tpu.memory_space<smem>>
      %c55 = arith.constant 55 : index
      %207 = memref.load %arg2[%c55] : memref<98xf32, #tpu.memory_space<smem>>
      %c56 = arith.constant 56 : index
      %208 = memref.load %arg2[%c56] : memref<98xf32, #tpu.memory_space<smem>>
      %c57 = arith.constant 57 : index
      %209 = memref.load %arg2[%c57] : memref<98xf32, #tpu.memory_space<smem>>
      %c58 = arith.constant 58 : index
      %210 = memref.load %arg2[%c58] : memref<98xf32, #tpu.memory_space<smem>>
      %c59 = arith.constant 59 : index
      %211 = memref.load %arg2[%c59] : memref<98xf32, #tpu.memory_space<smem>>
      %c60 = arith.constant 60 : index
      %212 = memref.load %arg2[%c60] : memref<98xf32, #tpu.memory_space<smem>>
      %c61 = arith.constant 61 : index
      %213 = memref.load %arg2[%c61] : memref<98xf32, #tpu.memory_space<smem>>
      %c62 = arith.constant 62 : index
      %214 = memref.load %arg2[%c62] : memref<98xf32, #tpu.memory_space<smem>>
      %c63 = arith.constant 63 : index
      %215 = memref.load %arg2[%c63] : memref<98xf32, #tpu.memory_space<smem>>
      %c64 = arith.constant 64 : index
      %216 = memref.load %arg2[%c64] : memref<98xf32, #tpu.memory_space<smem>>
      %c65 = arith.constant 65 : index
      %217 = memref.load %arg2[%c65] : memref<98xf32, #tpu.memory_space<smem>>
      %c66 = arith.constant 66 : index
      %218 = memref.load %arg2[%c66] : memref<98xf32, #tpu.memory_space<smem>>
      %c67 = arith.constant 67 : index
      %219 = memref.load %arg2[%c67] : memref<98xf32, #tpu.memory_space<smem>>
      %c68 = arith.constant 68 : index
      %220 = memref.load %arg2[%c68] : memref<98xf32, #tpu.memory_space<smem>>
      %c69 = arith.constant 69 : index
      %221 = memref.load %arg2[%c69] : memref<98xf32, #tpu.memory_space<smem>>
      %c70 = arith.constant 70 : index
      %222 = memref.load %arg2[%c70] : memref<98xf32, #tpu.memory_space<smem>>
      %c71 = arith.constant 71 : index
      %223 = memref.load %arg2[%c71] : memref<98xf32, #tpu.memory_space<smem>>
      %c72 = arith.constant 72 : index
      %224 = memref.load %arg2[%c72] : memref<98xf32, #tpu.memory_space<smem>>
      %c73 = arith.constant 73 : index
      %225 = memref.load %arg2[%c73] : memref<98xf32, #tpu.memory_space<smem>>
      %c74 = arith.constant 74 : index
      %226 = memref.load %arg2[%c74] : memref<98xf32, #tpu.memory_space<smem>>
      %c75 = arith.constant 75 : index
      %227 = memref.load %arg2[%c75] : memref<98xf32, #tpu.memory_space<smem>>
      %c76 = arith.constant 76 : index
      %228 = memref.load %arg2[%c76] : memref<98xf32, #tpu.memory_space<smem>>
      %c77 = arith.constant 77 : index
      %229 = memref.load %arg2[%c77] : memref<98xf32, #tpu.memory_space<smem>>
      %c78 = arith.constant 78 : index
      %230 = memref.load %arg2[%c78] : memref<98xf32, #tpu.memory_space<smem>>
      %c79 = arith.constant 79 : index
      %231 = memref.load %arg2[%c79] : memref<98xf32, #tpu.memory_space<smem>>
      %c80 = arith.constant 80 : index
      %232 = memref.load %arg2[%c80] : memref<98xf32, #tpu.memory_space<smem>>
      %c81 = arith.constant 81 : index
      %233 = memref.load %arg2[%c81] : memref<98xf32, #tpu.memory_space<smem>>
      %c82 = arith.constant 82 : index
      %234 = memref.load %arg2[%c82] : memref<98xf32, #tpu.memory_space<smem>>
      %c83 = arith.constant 83 : index
      %235 = memref.load %arg2[%c83] : memref<98xf32, #tpu.memory_space<smem>>
      %c84 = arith.constant 84 : index
      %236 = memref.load %arg2[%c84] : memref<98xf32, #tpu.memory_space<smem>>
      %c85 = arith.constant 85 : index
      %237 = memref.load %arg2[%c85] : memref<98xf32, #tpu.memory_space<smem>>
      %c86 = arith.constant 86 : index
      %238 = memref.load %arg2[%c86] : memref<98xf32, #tpu.memory_space<smem>>
      %c87 = arith.constant 87 : index
      %239 = memref.load %arg2[%c87] : memref<98xf32, #tpu.memory_space<smem>>
      %c88 = arith.constant 88 : index
      %240 = memref.load %arg2[%c88] : memref<98xf32, #tpu.memory_space<smem>>
      %c89 = arith.constant 89 : index
      %241 = memref.load %arg2[%c89] : memref<98xf32, #tpu.memory_space<smem>>
      %c90 = arith.constant 90 : index
      %242 = memref.load %arg2[%c90] : memref<98xf32, #tpu.memory_space<smem>>
      %c91 = arith.constant 91 : index
      %243 = memref.load %arg2[%c91] : memref<98xf32, #tpu.memory_space<smem>>
      %c92 = arith.constant 92 : index
      %244 = memref.load %arg2[%c92] : memref<98xf32, #tpu.memory_space<smem>>
      %c93 = arith.constant 93 : index
      %245 = memref.load %arg2[%c93] : memref<98xf32, #tpu.memory_space<smem>>
      %c94 = arith.constant 94 : index
      %246 = memref.load %arg2[%c94] : memref<98xf32, #tpu.memory_space<smem>>
      %c95 = arith.constant 95 : index
      %247 = memref.load %arg2[%c95] : memref<98xf32, #tpu.memory_space<smem>>
      %c96 = arith.constant 96 : index
      %248 = memref.load %arg2[%c96] : memref<98xf32, #tpu.memory_space<smem>>
      %c97 = arith.constant 97 : index
      %249 = memref.load %arg2[%c97] : memref<98xf32, #tpu.memory_space<smem>>
      %cst_124 = arith.constant 0.000000e+00 : f32
      %250 = vector.broadcast %cst_124 : f32 to vector<1x16x16xf32>
      %251 = vector.extract_strided_slice %150 {offsets = [0, 0, 0], sizes = [1, 22, 16], strides = [1, 1, 1]} : vector<1x22x22xf32> to vector<1x22x16xf32>
      %252 = vector.extract_strided_slice %151 {offsets = [0, 0, 0], sizes = [1, 22, 16], strides = [1, 1, 1]} : vector<1x22x22xf32> to vector<1x22x16xf32>
      %253 = vector.extract_strided_slice %251 {offsets = [0, 0, 0], sizes = [1, 16, 16], strides = [1, 1, 1]} : vector<1x22x16xf32> to vector<1x16x16xf32>
      %254 = vector.broadcast %152 : f32 to vector<1x16x16xf32>
      %255 = arith.mulf %254, %253 : vector<1x16x16xf32>
      %256 = arith.addf %250, %255 : vector<1x16x16xf32>
      %257 = vector.extract_strided_slice %252 {offsets = [0, 0, 0], sizes = [1, 16, 16], strides = [1, 1, 1]} : vector<1x22x16xf32> to vector<1x16x16xf32>
      %258 = vector.broadcast %201 : f32 to vector<1x16x16xf32>
      %259 = arith.mulf %258, %257 : vector<1x16x16xf32>
      %260 = arith.addf %256, %259 : vector<1x16x16xf32>
      %261 = vector.extract_strided_slice %251 {offsets = [0, 1, 0], sizes = [1, 16, 16], strides = [1, 1, 1]} : vector<1x22x16xf32> to vector<1x16x16xf32>
      %262 = vector.broadcast %159 : f32 to vector<1x16x16xf32>
      %263 = arith.mulf %262, %261 : vector<1x16x16xf32>
      %264 = arith.addf %260, %263 : vector<1x16x16xf32>
      %265 = vector.extract_strided_slice %252 {offsets = [0, 1, 0], sizes = [1, 16, 16], strides = [1, 1, 1]} : vector<1x22x16xf32> to vector<1x16x16xf32>
      %266 = vector.broadcast %208 : f32 to vector<1x16x16xf32>
      %267 = arith.mulf %266, %265 : vector<1x16x16xf32>
      %268 = arith.addf %264, %267 : vector<1x16x16xf32>
      %269 = vector.extract_strided_slice %251 {offsets = [0, 2, 0], sizes = [1, 16, 16], strides = [1, 1, 1]} : vector<1x22x16xf32> to vector<1x16x16xf32>
      %270 = vector.broadcast %166 : f32 to vector<1x16x16xf32>
      %271 = arith.mulf %270, %269 : vector<1x16x16xf32>
      %272 = arith.addf %268, %271 : vector<1x16x16xf32>
      %273 = vector.extract_strided_slice %252 {offsets = [0, 2, 0], sizes = [1, 16, 16], strides = [1, 1, 1]} : vector<1x22x16xf32> to vector<1x16x16xf32>
      %274 = vector.broadcast %215 : f32 to vector<1x16x16xf32>
      %275 = arith.mulf %274, %273 : vector<1x16x16xf32>
      %276 = arith.addf %272, %275 : vector<1x16x16xf32>
      %277 = vector.extract_strided_slice %251 {offsets = [0, 3, 0], sizes = [1, 16, 16], strides = [1, 1, 1]} : vector<1x22x16xf32> to vector<1x16x16xf32>
      %278 = vector.broadcast %173 : f32 to vector<1x16x16xf32>
      %279 = arith.mulf %278, %277 : vector<1x16x16xf32>
      %280 = arith.addf %276, %279 : vector<1x16x16xf32>
      %281 = vector.extract_strided_slice %252 {offsets = [0, 3, 0], sizes = [1, 16, 16], strides = [1, 1, 1]} : vector<1x22x16xf32> to vector<1x16x16xf32>
      %282 = vector.broadcast %222 : f32 to vector<1x16x16xf32>
      %283 = arith.mulf %282, %281 : vector<1x16x16xf32>
      %284 = arith.addf %280, %283 : vector<1x16x16xf32>
      %285 = vector.extract_strided_slice %251 {offsets = [0, 4, 0], sizes = [1, 16, 16], strides = [1, 1, 1]} : vector<1x22x16xf32> to vector<1x16x16xf32>
      %286 = vector.broadcast %180 : f32 to vector<1x16x16xf32>
      %287 = arith.mulf %286, %285 : vector<1x16x16xf32>
      %288 = arith.addf %284, %287 : vector<1x16x16xf32>
      %289 = vector.extract_strided_slice %252 {offsets = [0, 4, 0], sizes = [1, 16, 16], strides = [1, 1, 1]} : vector<1x22x16xf32> to vector<1x16x16xf32>
      %290 = vector.broadcast %229 : f32 to vector<1x16x16xf32>
      %291 = arith.mulf %290, %289 : vector<1x16x16xf32>
      %292 = arith.addf %288, %291 : vector<1x16x16xf32>
      %293 = vector.extract_strided_slice %251 {offsets = [0, 5, 0], sizes = [1, 16, 16], strides = [1, 1, 1]} : vector<1x22x16xf32> to vector<1x16x16xf32>
      %294 = vector.broadcast %187 : f32 to vector<1x16x16xf32>
      %295 = arith.mulf %294, %293 : vector<1x16x16xf32>
      %296 = arith.addf %292, %295 : vector<1x16x16xf32>
      %297 = vector.extract_strided_slice %252 {offsets = [0, 5, 0], sizes = [1, 16, 16], strides = [1, 1, 1]} : vector<1x22x16xf32> to vector<1x16x16xf32>
      %298 = vector.broadcast %236 : f32 to vector<1x16x16xf32>
      %299 = arith.mulf %298, %297 : vector<1x16x16xf32>
      %300 = arith.addf %296, %299 : vector<1x16x16xf32>
      %301 = vector.extract_strided_slice %251 {offsets = [0, 6, 0], sizes = [1, 16, 16], strides = [1, 1, 1]} : vector<1x22x16xf32> to vector<1x16x16xf32>
      %302 = vector.broadcast %194 : f32 to vector<1x16x16xf32>
      %303 = arith.mulf %302, %301 : vector<1x16x16xf32>
      %304 = arith.addf %300, %303 : vector<1x16x16xf32>
      %305 = vector.extract_strided_slice %252 {offsets = [0, 6, 0], sizes = [1, 16, 16], strides = [1, 1, 1]} : vector<1x22x16xf32> to vector<1x16x16xf32>
      %306 = vector.broadcast %243 : f32 to vector<1x16x16xf32>
      %307 = arith.mulf %306, %305 : vector<1x16x16xf32>
      %308 = arith.addf %304, %307 : vector<1x16x16xf32>
      %309 = vector.extract_strided_slice %150 {offsets = [0, 0, 1], sizes = [1, 22, 16], strides = [1, 1, 1]} : vector<1x22x22xf32> to vector<1x22x16xf32>
      %310 = vector.extract_strided_slice %151 {offsets = [0, 0, 1], sizes = [1, 22, 16], strides = [1, 1, 1]} : vector<1x22x22xf32> to vector<1x22x16xf32>
      %311 = vector.extract_strided_slice %309 {offsets = [0, 0, 0], sizes = [1, 16, 16], strides = [1, 1, 1]} : vector<1x22x16xf32> to vector<1x16x16xf32>
      %312 = vector.broadcast %153 : f32 to vector<1x16x16xf32>
      %313 = arith.mulf %312, %311 : vector<1x16x16xf32>
      %314 = arith.addf %308, %313 : vector<1x16x16xf32>
      %315 = vector.extract_strided_slice %310 {offsets = [0, 0, 0], sizes = [1, 16, 16], strides = [1, 1, 1]} : vector<1x22x16xf32> to vector<1x16x16xf32>
      %316 = vector.broadcast %202 : f32 to vector<1x16x16xf32>
      %317 = arith.mulf %316, %315 : vector<1x16x16xf32>
      %318 = arith.addf %314, %317 : vector<1x16x16xf32>
      %319 = vector.extract_strided_slice %309 {offsets = [0, 1, 0], sizes = [1, 16, 16], strides = [1, 1, 1]} : vector<1x22x16xf32> to vector<1x16x16xf32>
      %320 = vector.broadcast %160 : f32 to vector<1x16x16xf32>
      %321 = arith.mulf %320, %319 : vector<1x16x16xf32>
      %322 = arith.addf %318, %321 : vector<1x16x16xf32>
      %323 = vector.extract_strided_slice %310 {offsets = [0, 1, 0], sizes = [1, 16, 16], strides = [1, 1, 1]} : vector<1x22x16xf32> to vector<1x16x16xf32>
      %324 = vector.broadcast %209 : f32 to vector<1x16x16xf32>
      %325 = arith.mulf %324, %323 : vector<1x16x16xf32>
      %326 = arith.addf %322, %325 : vector<1x16x16xf32>
      %327 = vector.extract_strided_slice %309 {offsets = [0, 2, 0], sizes = [1, 16, 16], strides = [1, 1, 1]} : vector<1x22x16xf32> to vector<1x16x16xf32>
      %328 = vector.broadcast %167 : f32 to vector<1x16x16xf32>
      %329 = arith.mulf %328, %327 : vector<1x16x16xf32>
      %330 = arith.addf %326, %329 : vector<1x16x16xf32>
      %331 = vector.extract_strided_slice %310 {offsets = [0, 2, 0], sizes = [1, 16, 16], strides = [1, 1, 1]} : vector<1x22x16xf32> to vector<1x16x16xf32>
      %332 = vector.broadcast %216 : f32 to vector<1x16x16xf32>
      %333 = arith.mulf %332, %331 : vector<1x16x16xf32>
      %334 = arith.addf %330, %333 : vector<1x16x16xf32>
      %335 = vector.extract_strided_slice %309 {offsets = [0, 3, 0], sizes = [1, 16, 16], strides = [1, 1, 1]} : vector<1x22x16xf32> to vector<1x16x16xf32>
      %336 = vector.broadcast %174 : f32 to vector<1x16x16xf32>
      %337 = arith.mulf %336, %335 : vector<1x16x16xf32>
      %338 = arith.addf %334, %337 : vector<1x16x16xf32>
      %339 = vector.extract_strided_slice %310 {offsets = [0, 3, 0], sizes = [1, 16, 16], strides = [1, 1, 1]} : vector<1x22x16xf32> to vector<1x16x16xf32>
      %340 = vector.broadcast %223 : f32 to vector<1x16x16xf32>
      %341 = arith.mulf %340, %339 : vector<1x16x16xf32>
      %342 = arith.addf %338, %341 : vector<1x16x16xf32>
      %343 = vector.extract_strided_slice %309 {offsets = [0, 4, 0], sizes = [1, 16, 16], strides = [1, 1, 1]} : vector<1x22x16xf32> to vector<1x16x16xf32>
      %344 = vector.broadcast %181 : f32 to vector<1x16x16xf32>
      %345 = arith.mulf %344, %343 : vector<1x16x16xf32>
      %346 = arith.addf %342, %345 : vector<1x16x16xf32>
      %347 = vector.extract_strided_slice %310 {offsets = [0, 4, 0], sizes = [1, 16, 16], strides = [1, 1, 1]} : vector<1x22x16xf32> to vector<1x16x16xf32>
      %348 = vector.broadcast %230 : f32 to vector<1x16x16xf32>
      %349 = arith.mulf %348, %347 : vector<1x16x16xf32>
      %350 = arith.addf %346, %349 : vector<1x16x16xf32>
      %351 = vector.extract_strided_slice %309 {offsets = [0, 5, 0], sizes = [1, 16, 16], strides = [1, 1, 1]} : vector<1x22x16xf32> to vector<1x16x16xf32>
      %352 = vector.broadcast %188 : f32 to vector<1x16x16xf32>
      %353 = arith.mulf %352, %351 : vector<1x16x16xf32>
      %354 = arith.addf %350, %353 : vector<1x16x16xf32>
      %355 = vector.extract_strided_slice %310 {offsets = [0, 5, 0], sizes = [1, 16, 16], strides = [1, 1, 1]} : vector<1x22x16xf32> to vector<1x16x16xf32>
      %356 = vector.broadcast %237 : f32 to vector<1x16x16xf32>
      %357 = arith.mulf %356, %355 : vector<1x16x16xf32>
      %358 = arith.addf %354, %357 : vector<1x16x16xf32>
      %359 = vector.extract_strided_slice %309 {offsets = [0, 6, 0], sizes = [1, 16, 16], strides = [1, 1, 1]} : vector<1x22x16xf32> to vector<1x16x16xf32>
      %360 = vector.broadcast %195 : f32 to vector<1x16x16xf32>
      %361 = arith.mulf %360, %359 : vector<1x16x16xf32>
      %362 = arith.addf %358, %361 : vector<1x16x16xf32>
      %363 = vector.extract_strided_slice %310 {offsets = [0, 6, 0], sizes = [1, 16, 16], strides = [1, 1, 1]} : vector<1x22x16xf32> to vector<1x16x16xf32>
      %364 = vector.broadcast %244 : f32 to vector<1x16x16xf32>
      %365 = arith.mulf %364, %363 : vector<1x16x16xf32>
      %366 = arith.addf %362, %365 : vector<1x16x16xf32>
      %367 = vector.extract_strided_slice %150 {offsets = [0, 0, 2], sizes = [1, 22, 16], strides = [1, 1, 1]} : vector<1x22x22xf32> to vector<1x22x16xf32>
      %368 = vector.extract_strided_slice %151 {offsets = [0, 0, 2], sizes = [1, 22, 16], strides = [1, 1, 1]} : vector<1x22x22xf32> to vector<1x22x16xf32>
      %369 = vector.extract_strided_slice %367 {offsets = [0, 0, 0], sizes = [1, 16, 16], strides = [1, 1, 1]} : vector<1x22x16xf32> to vector<1x16x16xf32>
      %370 = vector.broadcast %154 : f32 to vector<1x16x16xf32>
      %371 = arith.mulf %370, %369 : vector<1x16x16xf32>
      %372 = arith.addf %366, %371 : vector<1x16x16xf32>
      %373 = vector.extract_strided_slice %368 {offsets = [0, 0, 0], sizes = [1, 16, 16], strides = [1, 1, 1]} : vector<1x22x16xf32> to vector<1x16x16xf32>
      %374 = vector.broadcast %203 : f32 to vector<1x16x16xf32>
      %375 = arith.mulf %374, %373 : vector<1x16x16xf32>
      %376 = arith.addf %372, %375 : vector<1x16x16xf32>
      %377 = vector.extract_strided_slice %367 {offsets = [0, 1, 0], sizes = [1, 16, 16], strides = [1, 1, 1]} : vector<1x22x16xf32> to vector<1x16x16xf32>
      %378 = vector.broadcast %161 : f32 to vector<1x16x16xf32>
      %379 = arith.mulf %378, %377 : vector<1x16x16xf32>
      %380 = arith.addf %376, %379 : vector<1x16x16xf32>
      %381 = vector.extract_strided_slice %368 {offsets = [0, 1, 0], sizes = [1, 16, 16], strides = [1, 1, 1]} : vector<1x22x16xf32> to vector<1x16x16xf32>
      %382 = vector.broadcast %210 : f32 to vector<1x16x16xf32>
      %383 = arith.mulf %382, %381 : vector<1x16x16xf32>
      %384 = arith.addf %380, %383 : vector<1x16x16xf32>
      %385 = vector.extract_strided_slice %367 {offsets = [0, 2, 0], sizes = [1, 16, 16], strides = [1, 1, 1]} : vector<1x22x16xf32> to vector<1x16x16xf32>
      %386 = vector.broadcast %168 : f32 to vector<1x16x16xf32>
      %387 = arith.mulf %386, %385 : vector<1x16x16xf32>
      %388 = arith.addf %384, %387 : vector<1x16x16xf32>
      %389 = vector.extract_strided_slice %368 {offsets = [0, 2, 0], sizes = [1, 16, 16], strides = [1, 1, 1]} : vector<1x22x16xf32> to vector<1x16x16xf32>
      %390 = vector.broadcast %217 : f32 to vector<1x16x16xf32>
      %391 = arith.mulf %390, %389 : vector<1x16x16xf32>
      %392 = arith.addf %388, %391 : vector<1x16x16xf32>
      %393 = vector.extract_strided_slice %367 {offsets = [0, 3, 0], sizes = [1, 16, 16], strides = [1, 1, 1]} : vector<1x22x16xf32> to vector<1x16x16xf32>
      %394 = vector.broadcast %175 : f32 to vector<1x16x16xf32>
      %395 = arith.mulf %394, %393 : vector<1x16x16xf32>
      %396 = arith.addf %392, %395 : vector<1x16x16xf32>
      %397 = vector.extract_strided_slice %368 {offsets = [0, 3, 0], sizes = [1, 16, 16], strides = [1, 1, 1]} : vector<1x22x16xf32> to vector<1x16x16xf32>
      %398 = vector.broadcast %224 : f32 to vector<1x16x16xf32>
      %399 = arith.mulf %398, %397 : vector<1x16x16xf32>
      %400 = arith.addf %396, %399 : vector<1x16x16xf32>
      %401 = vector.extract_strided_slice %367 {offsets = [0, 4, 0], sizes = [1, 16, 16], strides = [1, 1, 1]} : vector<1x22x16xf32> to vector<1x16x16xf32>
      %402 = vector.broadcast %182 : f32 to vector<1x16x16xf32>
      %403 = arith.mulf %402, %401 : vector<1x16x16xf32>
      %404 = arith.addf %400, %403 : vector<1x16x16xf32>
      %405 = vector.extract_strided_slice %368 {offsets = [0, 4, 0], sizes = [1, 16, 16], strides = [1, 1, 1]} : vector<1x22x16xf32> to vector<1x16x16xf32>
      %406 = vector.broadcast %231 : f32 to vector<1x16x16xf32>
      %407 = arith.mulf %406, %405 : vector<1x16x16xf32>
      %408 = arith.addf %404, %407 : vector<1x16x16xf32>
      %409 = vector.extract_strided_slice %367 {offsets = [0, 5, 0], sizes = [1, 16, 16], strides = [1, 1, 1]} : vector<1x22x16xf32> to vector<1x16x16xf32>
      %410 = vector.broadcast %189 : f32 to vector<1x16x16xf32>
      %411 = arith.mulf %410, %409 : vector<1x16x16xf32>
      %412 = arith.addf %408, %411 : vector<1x16x16xf32>
      %413 = vector.extract_strided_slice %368 {offsets = [0, 5, 0], sizes = [1, 16, 16], strides = [1, 1, 1]} : vector<1x22x16xf32> to vector<1x16x16xf32>
      %414 = vector.broadcast %238 : f32 to vector<1x16x16xf32>
      %415 = arith.mulf %414, %413 : vector<1x16x16xf32>
      %416 = arith.addf %412, %415 : vector<1x16x16xf32>
      %417 = vector.extract_strided_slice %367 {offsets = [0, 6, 0], sizes = [1, 16, 16], strides = [1, 1, 1]} : vector<1x22x16xf32> to vector<1x16x16xf32>
      %418 = vector.broadcast %196 : f32 to vector<1x16x16xf32>
      %419 = arith.mulf %418, %417 : vector<1x16x16xf32>
      %420 = arith.addf %416, %419 : vector<1x16x16xf32>
      %421 = vector.extract_strided_slice %368 {offsets = [0, 6, 0], sizes = [1, 16, 16], strides = [1, 1, 1]} : vector<1x22x16xf32> to vector<1x16x16xf32>
      %422 = vector.broadcast %245 : f32 to vector<1x16x16xf32>
      %423 = arith.mulf %422, %421 : vector<1x16x16xf32>
      %424 = arith.addf %420, %423 : vector<1x16x16xf32>
      %425 = vector.extract_strided_slice %150 {offsets = [0, 0, 3], sizes = [1, 22, 16], strides = [1, 1, 1]} : vector<1x22x22xf32> to vector<1x22x16xf32>
      %426 = vector.extract_strided_slice %151 {offsets = [0, 0, 3], sizes = [1, 22, 16], strides = [1, 1, 1]} : vector<1x22x22xf32> to vector<1x22x16xf32>
      %427 = vector.extract_strided_slice %425 {offsets = [0, 0, 0], sizes = [1, 16, 16], strides = [1, 1, 1]} : vector<1x22x16xf32> to vector<1x16x16xf32>
      %428 = vector.broadcast %155 : f32 to vector<1x16x16xf32>
      %429 = arith.mulf %428, %427 : vector<1x16x16xf32>
      %430 = arith.addf %424, %429 : vector<1x16x16xf32>
      %431 = vector.extract_strided_slice %426 {offsets = [0, 0, 0], sizes = [1, 16, 16], strides = [1, 1, 1]} : vector<1x22x16xf32> to vector<1x16x16xf32>
      %432 = vector.broadcast %204 : f32 to vector<1x16x16xf32>
      %433 = arith.mulf %432, %431 : vector<1x16x16xf32>
      %434 = arith.addf %430, %433 : vector<1x16x16xf32>
      %435 = vector.extract_strided_slice %425 {offsets = [0, 1, 0], sizes = [1, 16, 16], strides = [1, 1, 1]} : vector<1x22x16xf32> to vector<1x16x16xf32>
      %436 = vector.broadcast %162 : f32 to vector<1x16x16xf32>
      %437 = arith.mulf %436, %435 : vector<1x16x16xf32>
      %438 = arith.addf %434, %437 : vector<1x16x16xf32>
      %439 = vector.extract_strided_slice %426 {offsets = [0, 1, 0], sizes = [1, 16, 16], strides = [1, 1, 1]} : vector<1x22x16xf32> to vector<1x16x16xf32>
      %440 = vector.broadcast %211 : f32 to vector<1x16x16xf32>
      %441 = arith.mulf %440, %439 : vector<1x16x16xf32>
      %442 = arith.addf %438, %441 : vector<1x16x16xf32>
      %443 = vector.extract_strided_slice %425 {offsets = [0, 2, 0], sizes = [1, 16, 16], strides = [1, 1, 1]} : vector<1x22x16xf32> to vector<1x16x16xf32>
      %444 = vector.broadcast %169 : f32 to vector<1x16x16xf32>
      %445 = arith.mulf %444, %443 : vector<1x16x16xf32>
      %446 = arith.addf %442, %445 : vector<1x16x16xf32>
      %447 = vector.extract_strided_slice %426 {offsets = [0, 2, 0], sizes = [1, 16, 16], strides = [1, 1, 1]} : vector<1x22x16xf32> to vector<1x16x16xf32>
      %448 = vector.broadcast %218 : f32 to vector<1x16x16xf32>
      %449 = arith.mulf %448, %447 : vector<1x16x16xf32>
      %450 = arith.addf %446, %449 : vector<1x16x16xf32>
      %451 = vector.extract_strided_slice %425 {offsets = [0, 3, 0], sizes = [1, 16, 16], strides = [1, 1, 1]} : vector<1x22x16xf32> to vector<1x16x16xf32>
      %452 = vector.broadcast %176 : f32 to vector<1x16x16xf32>
      %453 = arith.mulf %452, %451 : vector<1x16x16xf32>
      %454 = arith.addf %450, %453 : vector<1x16x16xf32>
      %455 = vector.extract_strided_slice %426 {offsets = [0, 3, 0], sizes = [1, 16, 16], strides = [1, 1, 1]} : vector<1x22x16xf32> to vector<1x16x16xf32>
      %456 = vector.broadcast %225 : f32 to vector<1x16x16xf32>
      %457 = arith.mulf %456, %455 : vector<1x16x16xf32>
      %458 = arith.addf %454, %457 : vector<1x16x16xf32>
      %459 = vector.extract_strided_slice %425 {offsets = [0, 4, 0], sizes = [1, 16, 16], strides = [1, 1, 1]} : vector<1x22x16xf32> to vector<1x16x16xf32>
      %460 = vector.broadcast %183 : f32 to vector<1x16x16xf32>
      %461 = arith.mulf %460, %459 : vector<1x16x16xf32>
      %462 = arith.addf %458, %461 : vector<1x16x16xf32>
      %463 = vector.extract_strided_slice %426 {offsets = [0, 4, 0], sizes = [1, 16, 16], strides = [1, 1, 1]} : vector<1x22x16xf32> to vector<1x16x16xf32>
      %464 = vector.broadcast %232 : f32 to vector<1x16x16xf32>
      %465 = arith.mulf %464, %463 : vector<1x16x16xf32>
      %466 = arith.addf %462, %465 : vector<1x16x16xf32>
      %467 = vector.extract_strided_slice %425 {offsets = [0, 5, 0], sizes = [1, 16, 16], strides = [1, 1, 1]} : vector<1x22x16xf32> to vector<1x16x16xf32>
      %468 = vector.broadcast %190 : f32 to vector<1x16x16xf32>
      %469 = arith.mulf %468, %467 : vector<1x16x16xf32>
      %470 = arith.addf %466, %469 : vector<1x16x16xf32>
      %471 = vector.extract_strided_slice %426 {offsets = [0, 5, 0], sizes = [1, 16, 16], strides = [1, 1, 1]} : vector<1x22x16xf32> to vector<1x16x16xf32>
      %472 = vector.broadcast %239 : f32 to vector<1x16x16xf32>
      %473 = arith.mulf %472, %471 : vector<1x16x16xf32>
      %474 = arith.addf %470, %473 : vector<1x16x16xf32>
      %475 = vector.extract_strided_slice %425 {offsets = [0, 6, 0], sizes = [1, 16, 16], strides = [1, 1, 1]} : vector<1x22x16xf32> to vector<1x16x16xf32>
      %476 = vector.broadcast %197 : f32 to vector<1x16x16xf32>
      %477 = arith.mulf %476, %475 : vector<1x16x16xf32>
      %478 = arith.addf %474, %477 : vector<1x16x16xf32>
      %479 = vector.extract_strided_slice %426 {offsets = [0, 6, 0], sizes = [1, 16, 16], strides = [1, 1, 1]} : vector<1x22x16xf32> to vector<1x16x16xf32>
      %480 = vector.broadcast %246 : f32 to vector<1x16x16xf32>
      %481 = arith.mulf %480, %479 : vector<1x16x16xf32>
      %482 = arith.addf %478, %481 : vector<1x16x16xf32>
      %483 = vector.extract_strided_slice %150 {offsets = [0, 0, 4], sizes = [1, 22, 16], strides = [1, 1, 1]} : vector<1x22x22xf32> to vector<1x22x16xf32>
      %484 = vector.extract_strided_slice %151 {offsets = [0, 0, 4], sizes = [1, 22, 16], strides = [1, 1, 1]} : vector<1x22x22xf32> to vector<1x22x16xf32>
      %485 = vector.extract_strided_slice %483 {offsets = [0, 0, 0], sizes = [1, 16, 16], strides = [1, 1, 1]} : vector<1x22x16xf32> to vector<1x16x16xf32>
      %486 = vector.broadcast %156 : f32 to vector<1x16x16xf32>
      %487 = arith.mulf %486, %485 : vector<1x16x16xf32>
      %488 = arith.addf %482, %487 : vector<1x16x16xf32>
      %489 = vector.extract_strided_slice %484 {offsets = [0, 0, 0], sizes = [1, 16, 16], strides = [1, 1, 1]} : vector<1x22x16xf32> to vector<1x16x16xf32>
      %490 = vector.broadcast %205 : f32 to vector<1x16x16xf32>
      %491 = arith.mulf %490, %489 : vector<1x16x16xf32>
      %492 = arith.addf %488, %491 : vector<1x16x16xf32>
      %493 = vector.extract_strided_slice %483 {offsets = [0, 1, 0], sizes = [1, 16, 16], strides = [1, 1, 1]} : vector<1x22x16xf32> to vector<1x16x16xf32>
      %494 = vector.broadcast %163 : f32 to vector<1x16x16xf32>
      %495 = arith.mulf %494, %493 : vector<1x16x16xf32>
      %496 = arith.addf %492, %495 : vector<1x16x16xf32>
      %497 = vector.extract_strided_slice %484 {offsets = [0, 1, 0], sizes = [1, 16, 16], strides = [1, 1, 1]} : vector<1x22x16xf32> to vector<1x16x16xf32>
      %498 = vector.broadcast %212 : f32 to vector<1x16x16xf32>
      %499 = arith.mulf %498, %497 : vector<1x16x16xf32>
      %500 = arith.addf %496, %499 : vector<1x16x16xf32>
      %501 = vector.extract_strided_slice %483 {offsets = [0, 2, 0], sizes = [1, 16, 16], strides = [1, 1, 1]} : vector<1x22x16xf32> to vector<1x16x16xf32>
      %502 = vector.broadcast %170 : f32 to vector<1x16x16xf32>
      %503 = arith.mulf %502, %501 : vector<1x16x16xf32>
      %504 = arith.addf %500, %503 : vector<1x16x16xf32>
      %505 = vector.extract_strided_slice %484 {offsets = [0, 2, 0], sizes = [1, 16, 16], strides = [1, 1, 1]} : vector<1x22x16xf32> to vector<1x16x16xf32>
      %506 = vector.broadcast %219 : f32 to vector<1x16x16xf32>
      %507 = arith.mulf %506, %505 : vector<1x16x16xf32>
      %508 = arith.addf %504, %507 : vector<1x16x16xf32>
      %509 = vector.extract_strided_slice %483 {offsets = [0, 3, 0], sizes = [1, 16, 16], strides = [1, 1, 1]} : vector<1x22x16xf32> to vector<1x16x16xf32>
      %510 = vector.broadcast %177 : f32 to vector<1x16x16xf32>
      %511 = arith.mulf %510, %509 : vector<1x16x16xf32>
      %512 = arith.addf %508, %511 : vector<1x16x16xf32>
      %513 = vector.extract_strided_slice %484 {offsets = [0, 3, 0], sizes = [1, 16, 16], strides = [1, 1, 1]} : vector<1x22x16xf32> to vector<1x16x16xf32>
      %514 = vector.broadcast %226 : f32 to vector<1x16x16xf32>
      %515 = arith.mulf %514, %513 : vector<1x16x16xf32>
      %516 = arith.addf %512, %515 : vector<1x16x16xf32>
      %517 = vector.extract_strided_slice %483 {offsets = [0, 4, 0], sizes = [1, 16, 16], strides = [1, 1, 1]} : vector<1x22x16xf32> to vector<1x16x16xf32>
      %518 = vector.broadcast %184 : f32 to vector<1x16x16xf32>
      %519 = arith.mulf %518, %517 : vector<1x16x16xf32>
      %520 = arith.addf %516, %519 : vector<1x16x16xf32>
      %521 = vector.extract_strided_slice %484 {offsets = [0, 4, 0], sizes = [1, 16, 16], strides = [1, 1, 1]} : vector<1x22x16xf32> to vector<1x16x16xf32>
      %522 = vector.broadcast %233 : f32 to vector<1x16x16xf32>
      %523 = arith.mulf %522, %521 : vector<1x16x16xf32>
      %524 = arith.addf %520, %523 : vector<1x16x16xf32>
      %525 = vector.extract_strided_slice %483 {offsets = [0, 5, 0], sizes = [1, 16, 16], strides = [1, 1, 1]} : vector<1x22x16xf32> to vector<1x16x16xf32>
      %526 = vector.broadcast %191 : f32 to vector<1x16x16xf32>
      %527 = arith.mulf %526, %525 : vector<1x16x16xf32>
      %528 = arith.addf %524, %527 : vector<1x16x16xf32>
      %529 = vector.extract_strided_slice %484 {offsets = [0, 5, 0], sizes = [1, 16, 16], strides = [1, 1, 1]} : vector<1x22x16xf32> to vector<1x16x16xf32>
      %530 = vector.broadcast %240 : f32 to vector<1x16x16xf32>
      %531 = arith.mulf %530, %529 : vector<1x16x16xf32>
      %532 = arith.addf %528, %531 : vector<1x16x16xf32>
      %533 = vector.extract_strided_slice %483 {offsets = [0, 6, 0], sizes = [1, 16, 16], strides = [1, 1, 1]} : vector<1x22x16xf32> to vector<1x16x16xf32>
      %534 = vector.broadcast %198 : f32 to vector<1x16x16xf32>
      %535 = arith.mulf %534, %533 : vector<1x16x16xf32>
      %536 = arith.addf %532, %535 : vector<1x16x16xf32>
      %537 = vector.extract_strided_slice %484 {offsets = [0, 6, 0], sizes = [1, 16, 16], strides = [1, 1, 1]} : vector<1x22x16xf32> to vector<1x16x16xf32>
      %538 = vector.broadcast %247 : f32 to vector<1x16x16xf32>
      %539 = arith.mulf %538, %537 : vector<1x16x16xf32>
      %540 = arith.addf %536, %539 : vector<1x16x16xf32>
      %541 = vector.extract_strided_slice %150 {offsets = [0, 0, 5], sizes = [1, 22, 16], strides = [1, 1, 1]} : vector<1x22x22xf32> to vector<1x22x16xf32>
      %542 = vector.extract_strided_slice %151 {offsets = [0, 0, 5], sizes = [1, 22, 16], strides = [1, 1, 1]} : vector<1x22x22xf32> to vector<1x22x16xf32>
      %543 = vector.extract_strided_slice %541 {offsets = [0, 0, 0], sizes = [1, 16, 16], strides = [1, 1, 1]} : vector<1x22x16xf32> to vector<1x16x16xf32>
      %544 = vector.broadcast %157 : f32 to vector<1x16x16xf32>
      %545 = arith.mulf %544, %543 : vector<1x16x16xf32>
      %546 = arith.addf %540, %545 : vector<1x16x16xf32>
      %547 = vector.extract_strided_slice %542 {offsets = [0, 0, 0], sizes = [1, 16, 16], strides = [1, 1, 1]} : vector<1x22x16xf32> to vector<1x16x16xf32>
      %548 = vector.broadcast %206 : f32 to vector<1x16x16xf32>
      %549 = arith.mulf %548, %547 : vector<1x16x16xf32>
      %550 = arith.addf %546, %549 : vector<1x16x16xf32>
      %551 = vector.extract_strided_slice %541 {offsets = [0, 1, 0], sizes = [1, 16, 16], strides = [1, 1, 1]} : vector<1x22x16xf32> to vector<1x16x16xf32>
      %552 = vector.broadcast %164 : f32 to vector<1x16x16xf32>
      %553 = arith.mulf %552, %551 : vector<1x16x16xf32>
      %554 = arith.addf %550, %553 : vector<1x16x16xf32>
      %555 = vector.extract_strided_slice %542 {offsets = [0, 1, 0], sizes = [1, 16, 16], strides = [1, 1, 1]} : vector<1x22x16xf32> to vector<1x16x16xf32>
      %556 = vector.broadcast %213 : f32 to vector<1x16x16xf32>
      %557 = arith.mulf %556, %555 : vector<1x16x16xf32>
      %558 = arith.addf %554, %557 : vector<1x16x16xf32>
      %559 = vector.extract_strided_slice %541 {offsets = [0, 2, 0], sizes = [1, 16, 16], strides = [1, 1, 1]} : vector<1x22x16xf32> to vector<1x16x16xf32>
      %560 = vector.broadcast %171 : f32 to vector<1x16x16xf32>
      %561 = arith.mulf %560, %559 : vector<1x16x16xf32>
      %562 = arith.addf %558, %561 : vector<1x16x16xf32>
      %563 = vector.extract_strided_slice %542 {offsets = [0, 2, 0], sizes = [1, 16, 16], strides = [1, 1, 1]} : vector<1x22x16xf32> to vector<1x16x16xf32>
      %564 = vector.broadcast %220 : f32 to vector<1x16x16xf32>
      %565 = arith.mulf %564, %563 : vector<1x16x16xf32>
      %566 = arith.addf %562, %565 : vector<1x16x16xf32>
      %567 = vector.extract_strided_slice %541 {offsets = [0, 3, 0], sizes = [1, 16, 16], strides = [1, 1, 1]} : vector<1x22x16xf32> to vector<1x16x16xf32>
      %568 = vector.broadcast %178 : f32 to vector<1x16x16xf32>
      %569 = arith.mulf %568, %567 : vector<1x16x16xf32>
      %570 = arith.addf %566, %569 : vector<1x16x16xf32>
      %571 = vector.extract_strided_slice %542 {offsets = [0, 3, 0], sizes = [1, 16, 16], strides = [1, 1, 1]} : vector<1x22x16xf32> to vector<1x16x16xf32>
      %572 = vector.broadcast %227 : f32 to vector<1x16x16xf32>
      %573 = arith.mulf %572, %571 : vector<1x16x16xf32>
      %574 = arith.addf %570, %573 : vector<1x16x16xf32>
      %575 = vector.extract_strided_slice %541 {offsets = [0, 4, 0], sizes = [1, 16, 16], strides = [1, 1, 1]} : vector<1x22x16xf32> to vector<1x16x16xf32>
      %576 = vector.broadcast %185 : f32 to vector<1x16x16xf32>
      %577 = arith.mulf %576, %575 : vector<1x16x16xf32>
      %578 = arith.addf %574, %577 : vector<1x16x16xf32>
      %579 = vector.extract_strided_slice %542 {offsets = [0, 4, 0], sizes = [1, 16, 16], strides = [1, 1, 1]} : vector<1x22x16xf32> to vector<1x16x16xf32>
      %580 = vector.broadcast %234 : f32 to vector<1x16x16xf32>
      %581 = arith.mulf %580, %579 : vector<1x16x16xf32>
      %582 = arith.addf %578, %581 : vector<1x16x16xf32>
      %583 = vector.extract_strided_slice %541 {offsets = [0, 5, 0], sizes = [1, 16, 16], strides = [1, 1, 1]} : vector<1x22x16xf32> to vector<1x16x16xf32>
      %584 = vector.broadcast %192 : f32 to vector<1x16x16xf32>
      %585 = arith.mulf %584, %583 : vector<1x16x16xf32>
      %586 = arith.addf %582, %585 : vector<1x16x16xf32>
      %587 = vector.extract_strided_slice %542 {offsets = [0, 5, 0], sizes = [1, 16, 16], strides = [1, 1, 1]} : vector<1x22x16xf32> to vector<1x16x16xf32>
      %588 = vector.broadcast %241 : f32 to vector<1x16x16xf32>
      %589 = arith.mulf %588, %587 : vector<1x16x16xf32>
      %590 = arith.addf %586, %589 : vector<1x16x16xf32>
      %591 = vector.extract_strided_slice %541 {offsets = [0, 6, 0], sizes = [1, 16, 16], strides = [1, 1, 1]} : vector<1x22x16xf32> to vector<1x16x16xf32>
      %592 = vector.broadcast %199 : f32 to vector<1x16x16xf32>
      %593 = arith.mulf %592, %591 : vector<1x16x16xf32>
      %594 = arith.addf %590, %593 : vector<1x16x16xf32>
      %595 = vector.extract_strided_slice %542 {offsets = [0, 6, 0], sizes = [1, 16, 16], strides = [1, 1, 1]} : vector<1x22x16xf32> to vector<1x16x16xf32>
      %596 = vector.broadcast %248 : f32 to vector<1x16x16xf32>
      %597 = arith.mulf %596, %595 : vector<1x16x16xf32>
      %598 = arith.addf %594, %597 : vector<1x16x16xf32>
      %599 = vector.extract_strided_slice %150 {offsets = [0, 0, 6], sizes = [1, 22, 16], strides = [1, 1, 1]} : vector<1x22x22xf32> to vector<1x22x16xf32>
      %600 = vector.extract_strided_slice %151 {offsets = [0, 0, 6], sizes = [1, 22, 16], strides = [1, 1, 1]} : vector<1x22x22xf32> to vector<1x22x16xf32>
      %601 = vector.extract_strided_slice %599 {offsets = [0, 0, 0], sizes = [1, 16, 16], strides = [1, 1, 1]} : vector<1x22x16xf32> to vector<1x16x16xf32>
      %602 = vector.broadcast %158 : f32 to vector<1x16x16xf32>
      %603 = arith.mulf %602, %601 : vector<1x16x16xf32>
      %604 = arith.addf %598, %603 : vector<1x16x16xf32>
      %605 = vector.extract_strided_slice %600 {offsets = [0, 0, 0], sizes = [1, 16, 16], strides = [1, 1, 1]} : vector<1x22x16xf32> to vector<1x16x16xf32>
      %606 = vector.broadcast %207 : f32 to vector<1x16x16xf32>
      %607 = arith.mulf %606, %605 : vector<1x16x16xf32>
      %608 = arith.addf %604, %607 : vector<1x16x16xf32>
      %609 = vector.extract_strided_slice %599 {offsets = [0, 1, 0], sizes = [1, 16, 16], strides = [1, 1, 1]} : vector<1x22x16xf32> to vector<1x16x16xf32>
      %610 = vector.broadcast %165 : f32 to vector<1x16x16xf32>
      %611 = arith.mulf %610, %609 : vector<1x16x16xf32>
      %612 = arith.addf %608, %611 : vector<1x16x16xf32>
      %613 = vector.extract_strided_slice %600 {offsets = [0, 1, 0], sizes = [1, 16, 16], strides = [1, 1, 1]} : vector<1x22x16xf32> to vector<1x16x16xf32>
      %614 = vector.broadcast %214 : f32 to vector<1x16x16xf32>
      %615 = arith.mulf %614, %613 : vector<1x16x16xf32>
      %616 = arith.addf %612, %615 : vector<1x16x16xf32>
      %617 = vector.extract_strided_slice %599 {offsets = [0, 2, 0], sizes = [1, 16, 16], strides = [1, 1, 1]} : vector<1x22x16xf32> to vector<1x16x16xf32>
      %618 = vector.broadcast %172 : f32 to vector<1x16x16xf32>
      %619 = arith.mulf %618, %617 : vector<1x16x16xf32>
      %620 = arith.addf %616, %619 : vector<1x16x16xf32>
      %621 = vector.extract_strided_slice %600 {offsets = [0, 2, 0], sizes = [1, 16, 16], strides = [1, 1, 1]} : vector<1x22x16xf32> to vector<1x16x16xf32>
      %622 = vector.broadcast %221 : f32 to vector<1x16x16xf32>
      %623 = arith.mulf %622, %621 : vector<1x16x16xf32>
      %624 = arith.addf %620, %623 : vector<1x16x16xf32>
      %625 = vector.extract_strided_slice %599 {offsets = [0, 3, 0], sizes = [1, 16, 16], strides = [1, 1, 1]} : vector<1x22x16xf32> to vector<1x16x16xf32>
      %626 = vector.broadcast %179 : f32 to vector<1x16x16xf32>
      %627 = arith.mulf %626, %625 : vector<1x16x16xf32>
      %628 = arith.addf %624, %627 : vector<1x16x16xf32>
      %629 = vector.extract_strided_slice %600 {offsets = [0, 3, 0], sizes = [1, 16, 16], strides = [1, 1, 1]} : vector<1x22x16xf32> to vector<1x16x16xf32>
      %630 = vector.broadcast %228 : f32 to vector<1x16x16xf32>
      %631 = arith.mulf %630, %629 : vector<1x16x16xf32>
      %632 = arith.addf %628, %631 : vector<1x16x16xf32>
      %633 = vector.extract_strided_slice %599 {offsets = [0, 4, 0], sizes = [1, 16, 16], strides = [1, 1, 1]} : vector<1x22x16xf32> to vector<1x16x16xf32>
      %634 = vector.broadcast %186 : f32 to vector<1x16x16xf32>
      %635 = arith.mulf %634, %633 : vector<1x16x16xf32>
      %636 = arith.addf %632, %635 : vector<1x16x16xf32>
      %637 = vector.extract_strided_slice %600 {offsets = [0, 4, 0], sizes = [1, 16, 16], strides = [1, 1, 1]} : vector<1x22x16xf32> to vector<1x16x16xf32>
      %638 = vector.broadcast %235 : f32 to vector<1x16x16xf32>
      %639 = arith.mulf %638, %637 : vector<1x16x16xf32>
      %640 = arith.addf %636, %639 : vector<1x16x16xf32>
      %641 = vector.extract_strided_slice %599 {offsets = [0, 5, 0], sizes = [1, 16, 16], strides = [1, 1, 1]} : vector<1x22x16xf32> to vector<1x16x16xf32>
      %642 = vector.broadcast %193 : f32 to vector<1x16x16xf32>
      %643 = arith.mulf %642, %641 : vector<1x16x16xf32>
      %644 = arith.addf %640, %643 : vector<1x16x16xf32>
      %645 = vector.extract_strided_slice %600 {offsets = [0, 5, 0], sizes = [1, 16, 16], strides = [1, 1, 1]} : vector<1x22x16xf32> to vector<1x16x16xf32>
      %646 = vector.broadcast %242 : f32 to vector<1x16x16xf32>
      %647 = arith.mulf %646, %645 : vector<1x16x16xf32>
      %648 = arith.addf %644, %647 : vector<1x16x16xf32>
      %649 = vector.extract_strided_slice %599 {offsets = [0, 6, 0], sizes = [1, 16, 16], strides = [1, 1, 1]} : vector<1x22x16xf32> to vector<1x16x16xf32>
      %650 = vector.broadcast %200 : f32 to vector<1x16x16xf32>
      %651 = arith.mulf %650, %649 : vector<1x16x16xf32>
      %652 = arith.addf %648, %651 : vector<1x16x16xf32>
      %653 = vector.extract_strided_slice %600 {offsets = [0, 6, 0], sizes = [1, 16, 16], strides = [1, 1, 1]} : vector<1x22x16xf32> to vector<1x16x16xf32>
      %654 = vector.broadcast %249 : f32 to vector<1x16x16xf32>
      %655 = arith.mulf %654, %653 : vector<1x16x16xf32>
      %656 = arith.addf %652, %655 : vector<1x16x16xf32>
      %657 = arith.negf %656 : vector<1x16x16xf32>
      %658 = math.exp %657 : vector<1x16x16xf32>
      %cst_125 = arith.constant 1.000000e+00 : f32
      %659 = vector.broadcast %cst_125 : f32 to vector<1x16x16xf32>
      %660 = arith.addf %659, %658 : vector<1x16x16xf32>
      %661 = arith.divf %659, %660 : vector<1x16x16xf32>
      %662 = vector.extract_strided_slice %661 {offsets = [0, 0, 0], sizes = [1, 1, 16], strides = [1, 1, 1]} : vector<1x16x16xf32> to vector<1x1x16xf32>
      %663 = vector.shape_cast %662 : vector<1x1x16xf32> to vector<1x16xf32>
      %c0_126 = arith.constant 0 : index
      %c0_127 = arith.constant 0 : index
      %c0_128 = arith.constant 0 : index
      %664 = vector.load %arg4[%c0_126, %c0_127, %c0_128] : memref<1x1x256xf32, #tpu.memory_space<vmem>>, vector<1x1x16xf32>
      %665 = vector.shape_cast %664 : vector<1x1x16xf32> to vector<1x16xf32>
      %666 = vector.shape_cast %663 : vector<1x16xf32> to vector<1x1x16xf32>
      tpu.vector_store %arg4[%c0_126, %c0_127, %c0_128], %666 {strides = array<i32>} : memref<1x1x256xf32, #tpu.memory_space<vmem>>, vector<1x1x16xf32>,
      %667 = vector.extract_strided_slice %661 {offsets = [0, 1, 0], sizes = [1, 1, 16], strides = [1, 1, 1]} : vector<1x16x16xf32> to vector<1x1x16xf32>
      %668 = vector.shape_cast %667 : vector<1x1x16xf32> to vector<1x16xf32>
      %c0_129 = arith.constant 0 : index
      %c0_130 = arith.constant 0 : index
      %c16_131 = arith.constant 16 : index
      %669 = vector.load %arg4[%c0_129, %c0_130, %c16_131] : memref<1x1x256xf32, #tpu.memory_space<vmem>>, vector<1x1x16xf32>
      %670 = vector.shape_cast %669 : vector<1x1x16xf32> to vector<1x16xf32>
      %671 = vector.shape_cast %668 : vector<1x16xf32> to vector<1x1x16xf32>
      tpu.vector_store %arg4[%c0_129, %c0_130, %c16_131], %671 {strides = array<i32>} : memref<1x1x256xf32, #tpu.memory_space<vmem>>, vector<1x1x16xf32>,
      %672 = vector.extract_strided_slice %661 {offsets = [0, 2, 0], sizes = [1, 1, 16], strides = [1, 1, 1]} : vector<1x16x16xf32> to vector<1x1x16xf32>
      %673 = vector.shape_cast %672 : vector<1x1x16xf32> to vector<1x16xf32>
      %c0_132 = arith.constant 0 : index
      %c0_133 = arith.constant 0 : index
      %c32_134 = arith.constant 32 : index
      %674 = vector.load %arg4[%c0_132, %c0_133, %c32_134] : memref<1x1x256xf32, #tpu.memory_space<vmem>>, vector<1x1x16xf32>
      %675 = vector.shape_cast %674 : vector<1x1x16xf32> to vector<1x16xf32>
      %676 = vector.shape_cast %673 : vector<1x16xf32> to vector<1x1x16xf32>
      tpu.vector_store %arg4[%c0_132, %c0_133, %c32_134], %676 {strides = array<i32>} : memref<1x1x256xf32, #tpu.memory_space<vmem>>, vector<1x1x16xf32>,
      %677 = vector.extract_strided_slice %661 {offsets = [0, 3, 0], sizes = [1, 1, 16], strides = [1, 1, 1]} : vector<1x16x16xf32> to vector<1x1x16xf32>
      %678 = vector.shape_cast %677 : vector<1x1x16xf32> to vector<1x16xf32>
      %c0_135 = arith.constant 0 : index
      %c0_136 = arith.constant 0 : index
      %c48_137 = arith.constant 48 : index
      %679 = vector.load %arg4[%c0_135, %c0_136, %c48_137] : memref<1x1x256xf32, #tpu.memory_space<vmem>>, vector<1x1x16xf32>
      %680 = vector.shape_cast %679 : vector<1x1x16xf32> to vector<1x16xf32>
      %681 = vector.shape_cast %678 : vector<1x16xf32> to vector<1x1x16xf32>
      tpu.vector_store %arg4[%c0_135, %c0_136, %c48_137], %681 {strides = array<i32>} : memref<1x1x256xf32, #tpu.memory_space<vmem>>, vector<1x1x16xf32>,
      %682 = vector.extract_strided_slice %661 {offsets = [0, 4, 0], sizes = [1, 1, 16], strides = [1, 1, 1]} : vector<1x16x16xf32> to vector<1x1x16xf32>
      %683 = vector.shape_cast %682 : vector<1x1x16xf32> to vector<1x16xf32>
      %c0_138 = arith.constant 0 : index
      %c0_139 = arith.constant 0 : index
      %c64_140 = arith.constant 64 : index
      %684 = vector.load %arg4[%c0_138, %c0_139, %c64_140] : memref<1x1x256xf32, #tpu.memory_space<vmem>>, vector<1x1x16xf32>
      %685 = vector.shape_cast %684 : vector<1x1x16xf32> to vector<1x16xf32>
      %686 = vector.shape_cast %683 : vector<1x16xf32> to vector<1x1x16xf32>
      tpu.vector_store %arg4[%c0_138, %c0_139, %c64_140], %686 {strides = array<i32>} : memref<1x1x256xf32, #tpu.memory_space<vmem>>, vector<1x1x16xf32>,
      %687 = vector.extract_strided_slice %661 {offsets = [0, 5, 0], sizes = [1, 1, 16], strides = [1, 1, 1]} : vector<1x16x16xf32> to vector<1x1x16xf32>
      %688 = vector.shape_cast %687 : vector<1x1x16xf32> to vector<1x16xf32>
      %c0_141 = arith.constant 0 : index
      %c0_142 = arith.constant 0 : index
      %c80_143 = arith.constant 80 : index
      %689 = vector.load %arg4[%c0_141, %c0_142, %c80_143] : memref<1x1x256xf32, #tpu.memory_space<vmem>>, vector<1x1x16xf32>
      %690 = vector.shape_cast %689 : vector<1x1x16xf32> to vector<1x16xf32>
      %691 = vector.shape_cast %688 : vector<1x16xf32> to vector<1x1x16xf32>
      tpu.vector_store %arg4[%c0_141, %c0_142, %c80_143], %691 {strides = array<i32>} : memref<1x1x256xf32, #tpu.memory_space<vmem>>, vector<1x1x16xf32>,
      %692 = vector.extract_strided_slice %661 {offsets = [0, 6, 0], sizes = [1, 1, 16], strides = [1, 1, 1]} : vector<1x16x16xf32> to vector<1x1x16xf32>
      %693 = vector.shape_cast %692 : vector<1x1x16xf32> to vector<1x16xf32>
      %c0_144 = arith.constant 0 : index
      %c0_145 = arith.constant 0 : index
      %c96_146 = arith.constant 96 : index
      %694 = vector.load %arg4[%c0_144, %c0_145, %c96_146] : memref<1x1x256xf32, #tpu.memory_space<vmem>>, vector<1x1x16xf32>
      %695 = vector.shape_cast %694 : vector<1x1x16xf32> to vector<1x16xf32>
      %696 = vector.shape_cast %693 : vector<1x16xf32> to vector<1x1x16xf32>
      tpu.vector_store %arg4[%c0_144, %c0_145, %c96_146], %696 {strides = array<i32>} : memref<1x1x256xf32, #tpu.memory_space<vmem>>, vector<1x1x16xf32>,
      %697 = vector.extract_strided_slice %661 {offsets = [0, 7, 0], sizes = [1, 1, 16], strides = [1, 1, 1]} : vector<1x16x16xf32> to vector<1x1x16xf32>
      %698 = vector.shape_cast %697 : vector<1x1x16xf32> to vector<1x16xf32>
      %c0_147 = arith.constant 0 : index
      %c0_148 = arith.constant 0 : index
      %c112 = arith.constant 112 : index
      %699 = vector.load %arg4[%c0_147, %c0_148, %c112] : memref<1x1x256xf32, #tpu.memory_space<vmem>>, vector<1x1x16xf32>
      %700 = vector.shape_cast %699 : vector<1x1x16xf32> to vector<1x16xf32>
      %701 = vector.shape_cast %698 : vector<1x16xf32> to vector<1x1x16xf32>
      tpu.vector_store %arg4[%c0_147, %c0_148, %c112], %701 {strides = array<i32>} : memref<1x1x256xf32, #tpu.memory_space<vmem>>, vector<1x1x16xf32>,
      %702 = vector.extract_strided_slice %661 {offsets = [0, 8, 0], sizes = [1, 1, 16], strides = [1, 1, 1]} : vector<1x16x16xf32> to vector<1x1x16xf32>
      %703 = vector.shape_cast %702 : vector<1x1x16xf32> to vector<1x16xf32>
      %c0_149 = arith.constant 0 : index
      %c0_150 = arith.constant 0 : index
      %c128 = arith.constant 128 : index
      %704 = vector.load %arg4[%c0_149, %c0_150, %c128] : memref<1x1x256xf32, #tpu.memory_space<vmem>>, vector<1x1x16xf32>
      %705 = vector.shape_cast %704 : vector<1x1x16xf32> to vector<1x16xf32>
      %706 = vector.shape_cast %703 : vector<1x16xf32> to vector<1x1x16xf32>
      tpu.vector_store %arg4[%c0_149, %c0_150, %c128], %706 {strides = array<i32>} : memref<1x1x256xf32, #tpu.memory_space<vmem>>, vector<1x1x16xf32>,
      %707 = vector.extract_strided_slice %661 {offsets = [0, 9, 0], sizes = [1, 1, 16], strides = [1, 1, 1]} : vector<1x16x16xf32> to vector<1x1x16xf32>
      %708 = vector.shape_cast %707 : vector<1x1x16xf32> to vector<1x16xf32>
      %c0_151 = arith.constant 0 : index
      %c0_152 = arith.constant 0 : index
      %c144 = arith.constant 144 : index
      %709 = vector.load %arg4[%c0_151, %c0_152, %c144] : memref<1x1x256xf32, #tpu.memory_space<vmem>>, vector<1x1x16xf32>
      %710 = vector.shape_cast %709 : vector<1x1x16xf32> to vector<1x16xf32>
      %711 = vector.shape_cast %708 : vector<1x16xf32> to vector<1x1x16xf32>
      tpu.vector_store %arg4[%c0_151, %c0_152, %c144], %711 {strides = array<i32>} : memref<1x1x256xf32, #tpu.memory_space<vmem>>, vector<1x1x16xf32>,
      %712 = vector.extract_strided_slice %661 {offsets = [0, 10, 0], sizes = [1, 1, 16], strides = [1, 1, 1]} : vector<1x16x16xf32> to vector<1x1x16xf32>
      %713 = vector.shape_cast %712 : vector<1x1x16xf32> to vector<1x16xf32>
      %c0_153 = arith.constant 0 : index
      %c0_154 = arith.constant 0 : index
      %c160 = arith.constant 160 : index
      %714 = vector.load %arg4[%c0_153, %c0_154, %c160] : memref<1x1x256xf32, #tpu.memory_space<vmem>>, vector<1x1x16xf32>
      %715 = vector.shape_cast %714 : vector<1x1x16xf32> to vector<1x16xf32>
      %716 = vector.shape_cast %713 : vector<1x16xf32> to vector<1x1x16xf32>
      tpu.vector_store %arg4[%c0_153, %c0_154, %c160], %716 {strides = array<i32>} : memref<1x1x256xf32, #tpu.memory_space<vmem>>, vector<1x1x16xf32>,
      %717 = vector.extract_strided_slice %661 {offsets = [0, 11, 0], sizes = [1, 1, 16], strides = [1, 1, 1]} : vector<1x16x16xf32> to vector<1x1x16xf32>
      %718 = vector.shape_cast %717 : vector<1x1x16xf32> to vector<1x16xf32>
      %c0_155 = arith.constant 0 : index
      %c0_156 = arith.constant 0 : index
      %c176 = arith.constant 176 : index
      %719 = vector.load %arg4[%c0_155, %c0_156, %c176] : memref<1x1x256xf32, #tpu.memory_space<vmem>>, vector<1x1x16xf32>
      %720 = vector.shape_cast %719 : vector<1x1x16xf32> to vector<1x16xf32>
      %721 = vector.shape_cast %718 : vector<1x16xf32> to vector<1x1x16xf32>
      tpu.vector_store %arg4[%c0_155, %c0_156, %c176], %721 {strides = array<i32>} : memref<1x1x256xf32, #tpu.memory_space<vmem>>, vector<1x1x16xf32>,
      %722 = vector.extract_strided_slice %661 {offsets = [0, 12, 0], sizes = [1, 1, 16], strides = [1, 1, 1]} : vector<1x16x16xf32> to vector<1x1x16xf32>
      %723 = vector.shape_cast %722 : vector<1x1x16xf32> to vector<1x16xf32>
      %c0_157 = arith.constant 0 : index
      %c0_158 = arith.constant 0 : index
      %c192 = arith.constant 192 : index
      %724 = vector.load %arg4[%c0_157, %c0_158, %c192] : memref<1x1x256xf32, #tpu.memory_space<vmem>>, vector<1x1x16xf32>
      %725 = vector.shape_cast %724 : vector<1x1x16xf32> to vector<1x16xf32>
      %726 = vector.shape_cast %723 : vector<1x16xf32> to vector<1x1x16xf32>
      tpu.vector_store %arg4[%c0_157, %c0_158, %c192], %726 {strides = array<i32>} : memref<1x1x256xf32, #tpu.memory_space<vmem>>, vector<1x1x16xf32>,
      %727 = vector.extract_strided_slice %661 {offsets = [0, 13, 0], sizes = [1, 1, 16], strides = [1, 1, 1]} : vector<1x16x16xf32> to vector<1x1x16xf32>
      %728 = vector.shape_cast %727 : vector<1x1x16xf32> to vector<1x16xf32>
      %c0_159 = arith.constant 0 : index
      %c0_160 = arith.constant 0 : index
      %c208 = arith.constant 208 : index
      %729 = vector.load %arg4[%c0_159, %c0_160, %c208] : memref<1x1x256xf32, #tpu.memory_space<vmem>>, vector<1x1x16xf32>
      %730 = vector.shape_cast %729 : vector<1x1x16xf32> to vector<1x16xf32>
      %731 = vector.shape_cast %728 : vector<1x16xf32> to vector<1x1x16xf32>
      tpu.vector_store %arg4[%c0_159, %c0_160, %c208], %731 {strides = array<i32>} : memref<1x1x256xf32, #tpu.memory_space<vmem>>, vector<1x1x16xf32>,
      %732 = vector.extract_strided_slice %661 {offsets = [0, 14, 0], sizes = [1, 1, 16], strides = [1, 1, 1]} : vector<1x16x16xf32> to vector<1x1x16xf32>
      %733 = vector.shape_cast %732 : vector<1x1x16xf32> to vector<1x16xf32>
      %c0_161 = arith.constant 0 : index
      %c0_162 = arith.constant 0 : index
      %c224 = arith.constant 224 : index
      %734 = vector.load %arg4[%c0_161, %c0_162, %c224] : memref<1x1x256xf32, #tpu.memory_space<vmem>>, vector<1x1x16xf32>
      %735 = vector.shape_cast %734 : vector<1x1x16xf32> to vector<1x16xf32>
      %736 = vector.shape_cast %733 : vector<1x16xf32> to vector<1x1x16xf32>
      tpu.vector_store %arg4[%c0_161, %c0_162, %c224], %736 {strides = array<i32>} : memref<1x1x256xf32, #tpu.memory_space<vmem>>, vector<1x1x16xf32>,
      %737 = vector.extract_strided_slice %661 {offsets = [0, 15, 0], sizes = [1, 1, 16], strides = [1, 1, 1]} : vector<1x16x16xf32> to vector<1x1x16xf32>
      %738 = vector.shape_cast %737 : vector<1x1x16xf32> to vector<1x16xf32>
      %c0_163 = arith.constant 0 : index
      %c0_164 = arith.constant 0 : index
      %c240 = arith.constant 240 : index
      %739 = vector.load %arg4[%c0_163, %c0_164, %c240] : memref<1x1x256xf32, #tpu.memory_space<vmem>>, vector<1x1x16xf32>
      %740 = vector.shape_cast %739 : vector<1x1x16xf32> to vector<1x16xf32>
      %741 = vector.shape_cast %738 : vector<1x16xf32> to vector<1x1x16xf32>
      tpu.vector_store %arg4[%c0_163, %c0_164, %c240], %741 {strides = array<i32>} : memref<1x1x256xf32, #tpu.memory_space<vmem>>, vector<1x1x16xf32>,
    } else {
    }
    return
  }
  func.func @transform_0(%arg0: i32, %arg1: i32) -> i32 {
    %c0_i32 = arith.constant 0 : i32
    %c0_i32_0 = arith.constant 0 : i32
    return %c0_i32 : i32
  }
  func.func @transform_1(%arg0: i32, %arg1: i32) -> (i32, i32, i32) {
    %c0_i32 = arith.constant 0 : i32
    %c0_i32_0 = arith.constant 0 : i32
    return %arg0, %arg1, %c0_i32 : i32, i32, i32
  }
  func.func @transform_2(%arg0: i32, %arg1: i32) -> (i32, i32, i32) {
    %c0_i32 = arith.constant 0 : i32
    %c0_i32_0 = arith.constant 0 : i32
    %c0_i32_1 = arith.constant 0 : i32
    return %arg0, %c0_i32, %c0_i32_0 : i32, i32, i32
  }
}

</mosaic_0001>

<bundles_post_ra>
// kernel: tpu_custom_call.1
= control target key start
LH: loop header
LB: loop body
LE: loop exit
PB: predicated region body
PF: predicated region fallthrough
CT: control target
= control target key end

     0   :  { %s5781_s0 = inlined_call_operand.hbm [shape: f32[98], index: 0, kind: input, shape index: {}]   ;;  %s5782_s1 = inlined_call_operand.hbm [shape: f32[2,4,256], index: 1, kind: input, shape index: {}]   ;;  %s5783_s2 = inlined_call_operand.hbm [shape: f32[2,1,256], index: 2, kind: output, shape index: {}]  }
   0x1   :  { %5866 = sst [smem:[#allocation61_spill]] %s5781_s0 }
   0x2   :  { %5867 = sst [smem:[#allocation62_spill]] %s5782_s1 }
   0x3   :  { %5868 = sst [smem:[#allocation63_spill]] %s5783_s2 }
   0x4   :  { %7 = vsyncpa [#allocation9], 0 }
   0x5   :  { %8 = vsyncpa [#allocation7], 0 }
   0x6   :  { %10 = vsyncpa [#allocation7 + $0x1], 0 }
   0x7   :  { %11 = vsyncpa [#allocation8], 0 }
   0x8   :  { %13 = vsyncpa [#allocation8 + $0x1], 0  ;;  %s3152_s9 = smov 0   ;;  %s3154_s10 = smov 0  }
   0x9   :  { %s3156_s11 = smov 0   ;;  %s3158_s12 = smov 0  }
   0xa   :  { %s3160_s13 = smov 0   ;;  %s3162_s14 = smov 0  }
   0xb LB: > { %5869 = sst [smem:[#allocation15_spill]] %s3088_s9  ;;  %s2750_s15 = sadd.s32 4294967295, %s3108_s14   ;;  %s3108_s14 = sphi %s3162_s14, %s19_s14   ;;  %s3104_s13 = sphi %s3160_s13, %s6111_s13   ;;  %s3100_s12 = sphi %s3158_s12, %s6110_s12   ;;  %s3096_s11 = sphi %s3156_s11, %s6109_s11   ;;  %s3092_s10 = sphi %s3154_s10, %s6108_s10   ;;  %s3088_s9 = sphi %s3152_s9, %s6107_s9  }
   0xc   : > { %5870 = sst [smem:[#allocation16_spill]] %s3092_s10  ;;  %s2751_s16 = sadd.s32 4294967294, %s3108_s14  }
   0xd   : > { %5871 = sst [smem:[#allocation17_spill]] %s3096_s11  ;;  %p74_p0 = scmp.ne.s32.totalorder %s3092_s10, %s3088_s9 }
   0xe   : > { %5872 = sst [smem:[#allocation18_spill]] %s3100_s12  ;;  %p3186_p1 = scmp.eq.s32.totalorder %s2750_s15, 0 }
   0xf   : > { %5873 = sst [smem:[#allocation19_spill]] %s3104_s13  ;;  %p3190_p2 = scmp.eq.s32.totalorder %s2750_s15, 1 }
  0x10   : > { %5874 = sst [smem:[#allocation20_spill]] %s3108_s14  ;;  %p104_p3 = scmp.eq.s32.totalorder %s2751_s16, 1 }
  0x11   : > { %p3196_p4 = por %p3186_p1, %p74_p0  ;;  %p2752_p5 = scmp.ge.s32.totalorder %s3108_s14, 1 }
  0x12   : > { %p3201_p6 = por %p104_p3, %p74_p0  ;;  %p111_p7 = scmp.lt.s32.totalorder %s3108_s14, 3 }
  0x13   : > { %s31_s22 = sadd.s32 1, %s3104_s13  ;;  %s61_s23 = sadd.s32 1, %s3096_s11 }
  0x14   : > { %s5878_s20 = scalar_select %p3201_p6, 1, 0 }
  0x15   : > { %p3206_p8 = pnand %p2752_p5, %p111_p7  ;;  %p33_p12 = scmp.ge.s32.totalorder %s31_s22, 2 }
  0x16   : > { %5879 = sst [smem:[#allocation21_spill]] %s5878_s20  ;;  %p68_p13 = scmp.ne.s32.totalorder %s3096_s11, %s3092_s10 }
  0x17   : > { %p2876_p10 = pneg %p3206_p8  ;;  %p69_p0 = scmp.eq.s32.totalorder %s3108_s14, 0 }
  0x18   : > { %s3110_s24 = smov [#allocation6]   ;;  %s5881_s0 = sld [smem:[#allocation61_spill]] }
  0x19   : > { %p2877_p11 = pnand %p2876_p10, %p3186_p1  ;;  %s6113_s22 = smov (%p33_p12, %s31_s22), 0 }
  0x1a   : > { %5882 = sst [smem:[#allocation22_spill]] %s6113_s22  ;;  %p3225_p3 = por %p69_p0, %p68_p13 }
  0x1b   : > { %p3231_p5 = por %p3190_p2, %p68_p13  ;;  %s56_s29 = ssub.s32 %s3104_s13, %s6113_s22 }
  0x1c   : > { %p2889_p7 = scmp.lt.s32.totalorder %s3108_s14, 2  ;;  %p59_p10 = scmp.eq.s32.totalorder %s56_s29, 0 }
  0x1d   : > { %s5884_s28 = scalar_select %p3231_p5, 1, 0 }
  0x1e   : > { %2879 = dma.hbm_to_smem (!%p2877_p11), %s5881_s0, 16, %s3110_s24, [#allocation9]  }
  0x1f   : > { %5885 = sst [smem:[#allocation23_spill]] %s5884_s28  ;;  %s133_s30 = sand.u32 1, %s3096_s11  }
  0x20   : > { %s2755_s3 = sshll.u32 %s133_s30, 3  ;;  %s2866_s5 = sshll.u32 %s3104_s13, 7 }
  0x21   : > { %s3240_s4 = scalar_select %p59_p10, %s3096_s11, %s61_s23  }
  0x22   : > { %s5887_s1 = sld [smem:[#allocation62_spill]]  ;;  %s137_s15 = scalar_lea.vmem [#allocation10], %s2755_s3 }
  0x23   : > { %5886 = sst [smem:[#allocation24_spill]] %s3240_s4  ;;  %s147_s16 = sshll.u32 %s137_s15, 4  ;;  %s148_s16 = int_to_ptr.vmem [resolvable:$true] %s147_s16 }
  0x24   : > { %p3248_p2 = pnand %p2889_p7, %p3225_p3  ;;  %s134_s24 = scalar_lea.sflag [#allocation7], %s133_s30 }
  0x25   : > { %s3009_s25 = scalar_lea.vmem %s148_s16, 128  ;;  %s3111_s23 = smov [#allocation10]  }
  0x26   : > { %p2998_p11 = pneg %p3248_p2  ;;  %p3010_p12 = scmp.ne.s32.totalorder %s148_s16, %s3009_s25 }
  0x27   : > { %s3014_s26 = sshll.u32 %s3111_s23, 4  ;;  %s3015_s26 = int_to_ptr.vmem [resolvable:$false] %s3014_s26 }
  0x28   : > { %s145_s8 = scalar_lea.hbm %s5887_s1, %s2866_s5  ;;  %p3012_p13 = pnand %p3010_p12, %p2998_p11 }
  0x29   : > { %s3016_s29 = scalar_lea.vmem %s3015_s26, 256  ;;  %p3017_p10 = scmp.lt.s32.totalorder %s148_s16, %s3015_s26 }
  0x2a   : > { %p3013_p0 = pneg %p3012_p13  ;;  %p3018_p9 = scmp.lt.s32.totalorder %s3016_s29, %s3009_s25 }
  0x2c   : > { %p3019_p6 = por %p3018_p9, %p3017_p10 }
  0x2e   : > { %p3020_p5 = pnand %p3019_p6, %p3013_p0 }
  0x30   : > { %3023 = shalt.err (!%p3020_p5)
}
  0x31   : > { %2883 = dma.hbm_to_vmem [thread:$0]  (!%p3248_p2), %s145_s8, 128, %s148_s16, %s134_s24  }
  0x32   : > { %156 = sbr.rel (%p3206_p8) target bundleno = 975 (0x3cf), region = 28 }
  0x37   : > { %3075 = dma.done.wait (%p3186_p1), [#allocation9], 16  }
  0x38   : > { %3077 = vsyncadd (%p3186_p1), [#allocation9], 4294967280  ;;  %s3263_s27 = sand.u32 1, %s3092_s10  }
  0x39   : > { %s2760_s30 = sshll.u32 %s3263_s27, 3  ;;  %s163_s3 = scalar_lea.sflag [#allocation7], %s3263_s27 }
  0x3a   : > { %s166_s5 = scalar_lea.vmem [#allocation10], %s2760_s30 }
  0x3b   : > { %3079 = dma.done.wait (%p3196_p4), %s163_s3, 128  }
  0x3c   : > { %3081 = vsyncadd (%p3196_p4), %s163_s3, 4294967168 }
  0x3d   : > { %171 = sfence }
  0x3e   : > { %v5818_v0 = vlaneseq  ;;  %v200_v1 = vld [vmem:[%s166_s5] sm:$0xff]  ;;  %vm204_vm0 = vcmask 1043456   ;;  %v3112_v6 = vmov -inf   ;;  %v3113_v8 = vmov 0.0   ;;  %s5787_s17 = smov 96   ;;  %s5785_s19 = smov 112  }
  0x3f   : > { %v202_v2 = vcombine.high %v200_v1, %v200_v1  ;;  %v238_v3 = vsel %vm204_vm0, %v200_v1, -inf  ;;  %v205_v5 = vsel %vm204_vm0, %v200_v1, 0.0  ;;  %v3114_v15 = vmov 1966171168   ;;  %s5793_s21 = smov 64   ;;  %s5789_s6 = smov 80  }
  0x40   : > { %vm194_vm1 = vcmp.lt.s32.totalorder %v5818_v0, 256  ;;  %v239_v4 = vrot.slane %v238_v3, 4  ;;  %v206_v9 = vrot.slane %v205_v5, 4  ;;  %v223_v16 = vunpack.c.l.s4 %v3114_v15  ;;  %s5795_s7 = smov 32   ;;  %s5791_s8 = smov 48  }
  0x41   : > { %197 = vst.msk [vmem:[#allocation3] sm:$0x3] %vm194_vm1, %v3112_v6  ;;  %v245_v7 = vsel %vm204_vm0, %v202_v2, -inf  ;;  %196 = vst.msk [vmem:[#allocation2] sm:$0x3] %vm194_vm1, %v3113_v8  ;;  %v212_v10 = vsel %vm204_vm0, %v202_v2, 0.0 }
  0x42   : > { %v240_v11 = vmax.f32 %v238_v3, %v239_v4  ;;  %v246_v12 = vrot.slane %v245_v7, 4  ;;  %v213_v13 = vrot.slane %v212_v10, 4  ;;  %v207_v14 = vadd.f32 %v206_v9, %v205_v5  ;;  %s5797_s15 = smov 16   ;;  %s3122_s16 = smov 3  }
  0x43   : > { %v226_v24 = vshrl.u32 %v5818_v0, 7  ;;  %v224_v26 = vunpack.c.0.s8 %v223_v16  ;;  %vm285_vm2 = vcmask 179200   ;;  %s3123_s18 = smov 115   ;;  %s3124_s24 = smov 99   ;;  %vm288_vm3 = vcmask 177152  }
  0x44   : > { %v241_v17 = vrot.slane %v240_v11, 2  ;;  %v247_v18 = vmax.f32 %v245_v7, %v246_v12  ;;  %v214_v19 = vadd.f32 %v213_v13, %v212_v10  ;;  %v208_v20 = vrot.slane %v207_v14, 2  ;;  %290 = vst.msk [vmem:[#allocation5] sm:$0xff] %vm285_vm2, %v3113_v8  ;;  %286 = vst.msk [vmem:[#allocation4] sm:$0xff] %vm285_vm2, %v3113_v8  ;;  %s3125_s25 = smov 83   ;;  %s3126_s23 = smov 67  }
  0x45   : > { %v3278_v35 = vsub.s32 %v224_v26, %v226_v24  ;;  %287 = vst.msk [vmem:[#allocation4 + $0x8] sm:$0xff] %vm285_vm2, %v3113_v8  ;;  %291 = vst.msk [vmem:[#allocation5 + $0x8] sm:$0xff] %vm285_vm2, %v3113_v8  ;;  %v3307_v49 = vsub.s32 0, %v226_v24  ;;  %s3127_s26 = smov 51   ;;  %s3128_s29 = smov 35   ;;  %vm301_vm4 = vcmask 147480  }
  0x46   : > { %v242_v21 = vmax.f32 %v240_v11, %v241_v17  ;;  %v248_v22 = vrot.slane %v247_v18, 2  ;;  %v215_v23 = vrot.slane %v214_v19, 2  ;;  %v209_v25 = vadd.f32 %v208_v20, %v207_v14  ;;  %s3129_s30 = smov 19   ;;  %292 = vst.msk [vmem:[#allocation5 + $0x10] sm:$0x3f] %vm288_vm3, %v3113_v8  ;;  %s3361_s3 = sld [smem:[#allocation6 + $0x32]] }
  0x47   : > { %5889 = vst [vmem:[#allocation25_spill] sm:$0xff] %v3278_v35  ;;  %289 = vst.msk [vmem:[#allocation4 + $0x10] sm:$0x3f] %vm288_vm3, %v3113_v8  ;;  %s3363_s5 = sld [smem:[#allocation6 + $0x33]]  ;;  %vm661_vm5 = vcmask 1046528   ;;  %vm694_vm6 = vcmask 1045504  }
  0x48   : > { %v243_v27 = vrot.slane %v242_v21, 1  ;;  %v249_v28 = vmax.f32 %v247_v18, %v248_v22  ;;  %v216_v29 = vadd.f32 %v215_v23, %v214_v19  ;;  %v210_v30 = vrot.slane %v209_v25, 1  ;;  %v199_v41 = vld [vmem:[#allocation3] sm:$0x3]  ;;  %v198_v46 = vld [vmem:[#allocation2] sm:$0x3] }
  0x49   : > { %s3451_s0 = sld [smem:[#allocation6 + $0x55]]  ;;  %vm727_vm7 = vcmask 1044480   ;;  %vm792_vm8 = vcmask 1042432   ;;  %vm825_vm9 = vcmask 1041408  }
  0x4a   : > { %v244_v31 = vmax.f32 %v242_v21, %v243_v27  ;;  %v250_v32 = vrot.slane %v249_v28, 1  ;;  %v217_v33 = vrot.slane %v216_v29, 1  ;;  %v211_v34 = vadd.f32 %v210_v30, %v209_v25  ;;  %s3455_s1 = sld [smem:[#allocation6 + $0x3a]] }
  0x4b   : > { %s3457_s22 = sld [smem:[#allocation6 + $0x41]] }
  0x4c   : > { %v251_v36 = vmax.f32 %v249_v28, %v250_v32  ;;  %v218_v37 = vadd.f32 %v217_v33, %v216_v29  ;;  %s3465_s13 = sld [smem:[#allocation6 + $0x56]] }
  0x4d   : > { %s3467_s4 = sld [smem:[#allocation6 + $0x7]] }
  0x4e   : > { %v254_v38 = vcombine.low %v244_v31, %v251_v36  ;;  %v221_v39 = vcombine.low %v211_v34, %v218_v37  ;;  %s3469_s11 = sld [smem:[#allocation6 + $0xe]] }
  0x4f   : > { %s3473_s10 = sld [smem:[#allocation6 + $0x15]] }
  0x50   : > { %v261_v40 = vrot.slane %v254_v38, %v3278_v35  ;;  %v228_v43 = vrot.slane %v221_v39, %v3278_v35  ;;  %s3475_s14 = sld [smem:[#allocation6 + $0x1c]] }
  0x51   : > { %s3477_s20 = sld [smem:[#allocation6 + $0x23]] }
  0x52   : > { %v268_v42 = vrot.slane %v261_v40, %v3278_v35  ;;  %v235_v45 = vrot.slane %v228_v43, %v3278_v35  ;;  %s3481_s9 = sld [smem:[#allocation6 + $0x2a]] }
  0x53   : > { %s3485_s2 = sld [smem:[#allocation6 + $0x38]] }
  0x54   : > { %v3283_v44 = vmax.f32 %v199_v41, %v268_v42  ;;  %v237_v47 = vadd.f32 %v235_v45, %v198_v46  ;;  %s3487_s28 = sld [smem:[#allocation6 + $0x3f]] }
  0x55   : > { %s3491_s12 = sld [smem:[#allocation6 + $0x46]] }
  0x56   : > { %419 = vrot.lane.b32.xlu0 %v3283_v44, %s5787_s17  ;;  %397 = vrot.lane.b32.xlu1 %v3283_v44, %s5785_s19  ;;  %v284_v48 = vmul.f32 0.25, %v237_v47  ;;  %v307_v50 = vrot.slane %v3283_v44, %v3307_v49  ;;  %v377_v54 = vrot.slane %v3283_v44, 1 }
  0x58   : > { %v297_v51 = vrot.slane %v284_v48, %v3307_v49  ;;  %v368_v52 = vrot.slane %v284_v48, 1  ;;  %v381_v55 = vrot.slane %v377_v54, %v3307_v49 }
  0x5a   : > { %463 = vrot.lane.b32.xlu0 %v3283_v44, %s5793_s21  ;;  %441 = vrot.lane.b32.xlu1 %v3283_v44, %s5789_s6  ;;  %v372_v53 = vrot.slane %v368_v52, %v3307_v49 }
  0x5e   : > { %507 = vrot.lane.b32.xlu0 %v3283_v44, %s5795_s7  ;;  %485 = vrot.lane.b32.xlu1 %v3283_v44, %s5791_s8 }
  0x62   : > { %529 = vrot.lane.b32.xlu1 %v3283_v44, %s5797_s15  ;;  %386 = vrot.lane.b32.xlu0 %v284_v48, %s5785_s19  ;;  %s5804_s19 = smov 125  }
  0x66   : > { %430 = vrot.lane.b32.xlu1 %v284_v48, %s5789_s6  ;;  %408 = vrot.lane.b32.xlu0 %v284_v48, %s5787_s17  ;;  %s3420_s17 = sld [smem:[#allocation6 + $0x3]]  ;;  %s5806_s6 = smov 124  }
  0x6a   : > { %452 = vrot.lane.b32.xlu1 %v284_v48, %s5793_s21  ;;  %474 = vrot.lane.b32.xlu0 %v284_v48, %s5791_s8  ;;  %s3428_s8 = sld [smem:[#allocation6 + $0x4]] }
  0x6b   : > { %s2818_s21 = sld [smem:[#allocation6 + $0x39]] }
  0x6e   : > { %496 = vrot.lane.b32.xlu1 %v284_v48, %s5795_s7  ;;  %518 = vrot.lane.b32.xlu0 %v284_v48, %s5797_s15  ;;  %v864_v48 = vstv %s3361_s3  ;;  %s3445_s7 = sld [smem:[#allocation6 + $0x40]] }
  0x6f   : > { %s3447_s15 = sld [smem:[#allocation6 + $0x47]] }
  0x70   : > { %s2804_s3 = sld [smem:[#allocation6 + $0x2b]] }
  0x72   : > { %308 = vrot.lane.b32.xlu1 %v307_v50, %s3122_s16  ;;  %298 = vrot.lane.b32.xlu0 %v297_v51, %s3122_s16 }
  0x76   : > { %316 = vrot.lane.b32.xlu1 %v307_v50, %s3123_s18  ;;  %312 = vrot.lane.b32.xlu0 %v297_v51, %s3123_s18  ;;  %s3369_s18 = sld [smem:[#allocation6]] }
  0x7a   : > { %324 = vrot.lane.b32.xlu1 %v307_v50, %s3124_s24  ;;  %320 = vrot.lane.b32.xlu0 %v297_v51, %s3124_s24  ;;  %s3373_s24 = sld [smem:[#allocation6 + $0x31]] }
  0x7e   : > { %332 = vrot.lane.b32.xlu1 %v307_v50, %s3125_s25  ;;  %328 = vrot.lane.b32.xlu0 %v297_v51, %s3125_s25  ;;  %s3379_s25 = sld [smem:[#allocation6 + $0x35]] }
  0x82   : > { %340 = vrot.lane.b32.xlu1 %v307_v50, %s3126_s23  ;;  %336 = vrot.lane.b32.xlu0 %v297_v51, %s3126_s23  ;;  %s5799_s23 = smov 127  }
  0x86   : > { %344 = vrot.lane.b32.xlu0 %v297_v51, %s3127_s26  ;;  %348 = vrot.lane.b32.xlu1 %v307_v50, %s3127_s26  ;;  %s3391_s26 = sld [smem:[#allocation6 + $0x1]] }
  0x8a   : > { %352 = vrot.lane.b32.xlu0 %v297_v51, %s3128_s29  ;;  %356 = vrot.lane.b32.xlu1 %v307_v50, %s3128_s29  ;;  %s5801_s29 = smov 126  }
  0x8e   : > { %360 = vrot.lane.b32.xlu0 %v297_v51, %s3129_s30  ;;  %364 = vrot.lane.b32.xlu1 %v307_v50, %s3129_s30  ;;  %v1130_v50 = vstv %s3363_s5  ;;  %s3404_s30 = sld [smem:[#allocation6 + $0x2]] }
  0x8f   : > { %s2770_s5 = sld [smem:[#allocation6 + $0x9]] }
  0x92   : > { %373 = vrot.lane.b32.xlu0 %v372_v53, %s3122_s16 }
  0x96   : > { %382 = vrot.lane.b32.xlu0 %v381_v55, %s3122_s16 }
  0xc8   : > { %v420_v56 = vpop.permute.xlu0 %419  ;;  %v398_v57 = vpop.permute.xlu1 %397 }
  0xc9   : > { %v421_v58 = vrot.slane %v420_v56, 1  ;;  %v399_v59 = vrot.slane %v398_v57, 1 }
  0xcb   : > { %v425_v60 = vrot.slane %v421_v58, %v3307_v49  ;;  %v403_v61 = vrot.slane %v399_v59, %v3307_v49  ;;  %v5821_v58 = vstv %s3369_s18  ;;  %v5820_v59 = vstv %s3373_s24 }
  0xcc   : > { %v464_v62 = vpop.permute.xlu0 %463  ;;  %v442_v63 = vpop.permute.xlu1 %441 }
  0xcd   : > { %v465_v1 = vrot.slane %v464_v62, 1  ;;  %v443_v2 = vrot.slane %v442_v63, 1  ;;  %404 = vrot.lane.b32.xlu1 %v403_v61, %s3122_s16  ;;  %426 = vrot.lane.b32.xlu0 %v425_v60, %s3122_s16  ;;  %v1662_v62 = vstv %s3379_s25  ;;  %s2784_s25 = sld [smem:[#allocation6 + $0x17]] }
  0xcf   : > { %v469_v3 = vrot.slane %v465_v1, %v3307_v49  ;;  %v447_v4 = vrot.slane %v443_v2, %v3307_v49 }
  0xd0   : > { %v508_v5 = vpop.permute.xlu0 %507  ;;  %v486_v6 = vpop.permute.xlu1 %485 }
  0xd1   : > { %v509_v7 = vrot.slane %v508_v5, 1  ;;  %v487_v8 = vrot.slane %v486_v6, 1  ;;  %448 = vrot.lane.b32.xlu1 %v447_v4, %s3122_s16  ;;  %470 = vrot.lane.b32.xlu0 %v469_v3, %s3122_s16  ;;  %v851_v5 = vstv %s3391_s26  ;;  %s2798_s26 = sld [smem:[#allocation6 + $0x25]] }
  0xd3   : > { %v513_v9 = vrot.slane %v509_v7, %v3307_v49  ;;  %v491_v10 = vrot.slane %v487_v8, %v3307_v49  ;;  %v1117_v8 = vstv %s3404_s30  ;;  %s2771_s30 = sld [smem:[#allocation6 + $0xa]] }
  0xd4   : > { %v530_v11 = vpop.permute.xlu1 %529  ;;  %v387_v12 = vpop.permute.xlu0 %386 }
  0xd5   : > { %v531_v13 = vrot.slane %v530_v11, 1  ;;  %492 = vrot.lane.b32.xlu1 %v491_v10, %s3122_s16  ;;  %514 = vrot.lane.b32.xlu0 %v513_v9, %s3122_s16  ;;  %v388_v15 = vrot.slane %v387_v12, 1  ;;  %v5827_v10 = vstv %s3420_s17  ;;  %v5826_v12 = vstv %s3428_s8 }
  0xd7   : > { %v535_v14 = vrot.slane %v531_v13, %v3307_v49  ;;  %v392_v19 = vrot.slane %v388_v15, %v3307_v49 }
  0xd8   : > { %v431_v16 = vpop.permute.xlu1 %430  ;;  %v409_v17 = vpop.permute.xlu0 %408 }
  0xd9   : > { %v410_v18 = vrot.slane %v409_v17, 1  ;;  %536 = vrot.lane.b32.xlu1 %v535_v14, %s3122_s16  ;;  %v432_v20 = vrot.slane %v431_v16, 1 }
  0xdb   : > { %v414_v21 = vrot.slane %v410_v18, %v3307_v49  ;;  %v436_v26 = vrot.slane %v432_v20, %v3307_v49  ;;  %v3479_v20 = vstv %s2818_s21  ;;  %s3501_s21 = sld [smem:[#allocation6 + $0x4d]] }
  0xdc   : > { %v453_v22 = vpop.permute.xlu1 %452  ;;  %v475_v23 = vpop.permute.xlu0 %474 }
  0xdd   : > { %v454_v24 = vrot.slane %v453_v22, 1  ;;  %393 = vrot.lane.b32.xlu1 %v392_v19, %s3122_s16  ;;  %415 = vrot.lane.b32.xlu0 %v414_v21, %s3122_s16  ;;  %v476_v25 = vrot.slane %v475_v23, 1 }
  0xdf   : > { %v458_v27 = vrot.slane %v454_v24, %v3307_v49  ;;  %v480_v31 = vrot.slane %v476_v25, %v3307_v49  ;;  %v3496_v24 = vstv %s3445_s7  ;;  %v3499_v25 = vstv %s3447_s15  ;;  %s5890_s7 = smov 127   ;;  %s3534_s15 = sld [smem:[#allocation6 + $0x54]] }
  0xe0   : > { %v497_v28 = vpop.permute.xlu1 %496  ;;  %v519_v29 = vpop.permute.xlu0 %518 }
  0xe1   : > { %v498_v30 = vrot.slane %v497_v28, 1  ;;  %437 = vrot.lane.b32.xlu1 %v436_v26, %s3122_s16  ;;  %459 = vrot.lane.b32.xlu0 %v458_v27, %s3122_s16  ;;  %v520_v32 = vrot.slane %v519_v29, 1 }
  0xe3   : > { %v502_v33 = vrot.slane %v498_v30, %v3307_v49  ;;  %v524_v37 = vrot.slane %v520_v32, %v3307_v49  ;;  %v3519_v30 = vstv %s3451_s0  ;;  %v3525_v32 = vstv %s3455_s1  ;;  %s3545_s0 = sld [smem:[#allocation6 + $0x5b]]  ;;  %s5892_s1 = smov 126  }
  0xe4   : > { %v309_v34 = vpop.permute.xlu1 %308  ;;  %v299_v36 = vpop.permute.xlu0 %298 }
  0xe5   : > { %311 = vst.msk [vmem:[#allocation5 + $0x3] sm:$0x1] %vm301_vm4, %v309_v34  ;;  %481 = vrot.lane.b32.xlu1 %v480_v31, %s3122_s16  ;;  %503 = vrot.lane.b32.xlu0 %v502_v33, %s3122_s16  ;;  %302 = vst.msk [vmem:[#allocation4 + $0x3] sm:$0x1] %vm301_vm4, %v299_v36 }
  0xe8   : > { %v317_v38 = vpop.permute.xlu1 %316  ;;  %v313_v39 = vpop.permute.xlu0 %312 }
  0xe9   : > { %319 = vst.msk [vmem:[#allocation5 + $0x4] sm:$0x1] %vm301_vm4, %v317_v38  ;;  %525 = vrot.lane.b32.xlu1 %v524_v37, %s3122_s16  ;;  %315 = vst.msk [vmem:[#allocation4 + $0x4] sm:$0x1] %vm301_vm4, %v313_v39  ;;  %s3367_s16 = sld [smem:[#allocation6 + $0x34]]  ;;  %v3532_v37 = vstv %s3457_s22 }
  0xea   : > { %s2855_s22 = sld [smem:[#allocation6 + $0x5e]] }
  0xec   : > { %v325_v40 = vpop.permute.xlu1 %324  ;;  %v321_v41 = vpop.permute.xlu0 %320 }
  0xed   : > { %327 = vst.msk [vmem:[#allocation5 + $0x5] sm:$0x1] %vm301_vm4, %v325_v40  ;;  %323 = vst.msk [vmem:[#allocation4 + $0x5] sm:$0x1] %vm301_vm4, %v321_v41 }
  0xef   : > { %v1396_v55 = vstv %s3367_s16  ;;  %s2777_s16 = sld [smem:[#allocation6 + $0x10]] }
  0xf0   : > { %v333_v42 = vpop.permute.xlu1 %332  ;;  %v329_v43 = vpop.permute.xlu0 %328 }
  0xf1   : > { %335 = vst.msk [vmem:[#allocation5 + $0x6] sm:$0x1] %vm301_vm4, %v333_v42  ;;  %331 = vst.msk [vmem:[#allocation4 + $0x6] sm:$0x1] %vm301_vm4, %v329_v43  ;;  %v3543_v42 = vstv %s3465_s13  ;;  %v3548_v43 = vstv %s3467_s4  ;;  %s2834_s13 = sld [smem:[#allocation6 + $0x49]] }
  0xf2   : > { %s2769_s4 = sld [smem:[#allocation6 + $0x8]] }
  0xf4   : > { %v341_v44 = vpop.permute.xlu1 %340  ;;  %v337_v45 = vpop.permute.xlu0 %336 }
  0xf5   : > { %343 = vst.msk [vmem:[#allocation5 + $0x7] sm:$0x1] %vm301_vm4, %v341_v44  ;;  %339 = vst.msk [vmem:[#allocation4 + $0x7] sm:$0x1] %vm301_vm4, %v337_v45 }
  0xf8   : > { %v345_v46 = vpop.permute.xlu0 %344  ;;  %v349_v47 = vpop.permute.xlu1 %348 }
  0xf9   : > { %347 = vst.msk [vmem:[#allocation4 + $0x8] sm:$0x1] %vm301_vm4, %v345_v46  ;;  %351 = vst.msk [vmem:[#allocation5 + $0x8] sm:$0x1] %vm301_vm4, %v349_v47 }
  0xfc   : > { %v3376_v49 = vld [vmem:[#allocation5] sm:$0xff]  ;;  %v353_v51 = vpop.permute.xlu0 %352  ;;  %v357_v52 = vpop.permute.xlu1 %356  ;;  %v3398_v60 = vld [vmem:[#allocation4] sm:$0xff] }
  0xfd   : > { %v865_v53 = vmul.f32 %v864_v48, %v3376_v49  ;;  %355 = vst.msk [vmem:[#allocation4 + $0x9] sm:$0x1] %vm301_vm4, %v353_v51  ;;  %359 = vst.msk [vmem:[#allocation5 + $0x9] sm:$0x1] %vm301_vm4, %v357_v52  ;;  %v1131_v54 = vmul.f32 %v1130_v50, %v3376_v49  ;;  %v1397_v61 = vmul.f32 %v1396_v55, %v3376_v49  ;;  %v3568_v51 = vstv %s3473_s10  ;;  %s3813_s10 = sld [smem:[#allocation6 + $0x5d]] }
  0xfe   : > { %v645_v1 = vmul.f32 %v5821_v58, %v3398_v60  ;;  %v650_v2 = vmul.f32 %v5820_v59, %v3376_v49  ;;  %v1663_v4 = vmul.f32 %v1662_v62, %v3376_v49  ;;  %v852_v7 = vmul.f32 %v851_v5, %v3398_v60  ;;  %5891 = vst [vmem:[#allocation26_spill] sm:$0xff] %v3568_v51 }
  0xff   : > { %869 = vrot.lane.b32.xlu0 %v865_v53, %s5799_s23  ;;  %v1118_v9 = vmul.f32 %v1117_v8, %v3398_v60  ;;  %v1384_v11 = vmul.f32 %v5827_v10, %v3398_v60  ;;  %v1650_v13 = vmul.f32 %v5826_v12, %v3398_v60  ;;  %v898_v21 = vmul.f32 %v3479_v20, %v3376_v49 }
 0x100   : > { %v361_v56 = vpop.permute.xlu0 %360  ;;  %v365_v57 = vpop.permute.xlu1 %364  ;;  %v3413_v3 = vadd.f32 %v650_v2, %v645_v1  ;;  %v938_v36 = vmul.f32 %v3496_v24, %v3376_v49  ;;  %v3571_v52 = vstv %s3475_s14  ;;  %v978_v53 = vmul.f32 %v3499_v25, %v3376_v49  ;;  %s2841_s14 = sld [smem:[#allocation6 + $0x50]] }
 0x101   : > { %363 = vst.msk [vmem:[#allocation4 + $0xa] sm:$0x1] %vm301_vm4, %v361_v56  ;;  %367 = vst.msk [vmem:[#allocation5 + $0xa] sm:$0x1] %vm301_vm4, %v365_v57  ;;  %v904_v33 = vrot.slane %v898_v21, 1  ;;  %v3580_v56 = vstv %s3481_s9  ;;  %v3586_v1 = vstv %s3487_s28  ;;  %v3589_v2 = vstv %s3491_s12  ;;  %s5897_s9 = smov 124  }
 0x102   : > { %5893 = vst [vmem:[#allocation27_spill] sm:$0xff] %v3586_v1  ;;  %v3702_v58 = vmul.f32 %v3571_v52, %v3398_v60  ;;  %s2827_s12 = sld [smem:[#allocation6 + $0x42]] }
 0x103   : > { %1135 = vrot.lane.b32.xlu0 %v1131_v54, %s5801_s29  ;;  %v3577_v54 = vstv %s3477_s20  ;;  %s2848_s20 = sld [smem:[#allocation6 + $0x57]] }
 0x104   : > { %v374_v63 = vpop.permute.xlu0 %373  ;;  %s2821_s28 = sld [smem:[#allocation6 + $0x3c]] }
 0x105   : > { %376 = vst.msk [vmem:[#allocation4 + $0xb] sm:$0x1] %vm301_vm4, %v374_v63  ;;  %v3583_v63 = vstv %s3485_s2  ;;  %s5895_s2 = smov 125  }
 0x107   : > { %1401 = vrot.lane.b32.xlu0 %v1397_v61, %s5804_s19 }
 0x108   : > { %v383_v6 = vpop.permute.xlu0 %382 }
 0x109   : > { %385 = vst.msk [vmem:[#allocation5 + $0xb] sm:$0x1] %vm301_vm4, %v383_v6 }
 0x10b   : > { %1667 = vrot.lane.b32.xlu0 %v1663_v4, %s5806_s6  ;;  %v3592_v4 = vstv %s3501_s21  ;;  %s2778_s21 = sld [smem:[#allocation6 + $0x11]] }
 0x10c   : > { %5894 = vst [vmem:[#allocation28_spill] sm:$0xff] %v3592_v4 }
 0x10f   : > { %856 = vrot.lane.b32.xlu0 %v852_v7, %s5799_s23  ;;  %s3449_s23 = sld [smem:[#allocation6 + $0x4e]] }
 0x113   : > { %1122 = vrot.lane.b32.xlu0 %v1118_v9, %s5801_s29  ;;  %s3453_s29 = sld [smem:[#allocation6 + $0x5c]] }
 0x115   : > { %v3516_v29 = vstv %s3449_s23  ;;  %s2791_s23 = sld [smem:[#allocation6 + $0x1e]] }
 0x117   : > { %1388 = vrot.lane.b32.xlu0 %v1384_v11, %s5804_s19  ;;  %s3459_s19 = sld [smem:[#allocation6 + $0x48]] }
 0x119   : > { %v3522_v31 = vstv %s3453_s29  ;;  %s2805_s29 = sld [smem:[#allocation6 + $0x2c]] }
 0x11b   : > { %1654 = vrot.lane.b32.xlu0 %v1650_v13, %s5806_s6  ;;  %s3463_s6 = sld [smem:[#allocation6 + $0x4f]]  ;;  %v1018_v13 = vmul.f32 %v3516_v29, %v3376_v49 }
 0x11d   : > { %v3537_v40 = vstv %s3459_s19  ;;  %s2783_s19 = sld [smem:[#allocation6 + $0x16]] }
 0x121   : > { %v3540_v41 = vstv %s3463_s6  ;;  %s2790_s6 = sld [smem:[#allocation6 + $0x1d]] }
 0x13f   : > { %v405_v14 = vpop.permute.xlu1 %404  ;;  %v427_v15 = vpop.permute.xlu0 %426 }
 0x140   : > { %407 = vst.msk [vmem:[#allocation5 + $0xc] sm:$0x1] %vm301_vm4, %v405_v14  ;;  %429 = vst.msk [vmem:[#allocation5 + $0xd] sm:$0x1] %vm301_vm4, %v427_v15  ;;  %v1058_v14 = vmul.f32 %v3519_v30, %v3376_v49  ;;  %v984_v15 = vrot.slane %v978_v53, 3 }
 0x143   : > { %v449_v16 = vpop.permute.xlu1 %448  ;;  %v471_v17 = vpop.permute.xlu0 %470 }
 0x144   : > { %451 = vst.msk [vmem:[#allocation5 + $0xe] sm:$0x1] %vm301_vm4, %v449_v16  ;;  %473 = vst.msk [vmem:[#allocation5 + $0xf] sm:$0x1] %vm301_vm4, %v471_v17  ;;  %v3619_v16 = vmul.f32 %v3525_v32, %v3376_v49  ;;  %v3623_v17 = vmul.f32 %v3532_v37, %v3376_v49 }
 0x147   : > { %v493_v18 = vpop.permute.xlu1 %492  ;;  %v515_v19 = vpop.permute.xlu0 %514 }
 0x148   : > { %495 = vst.msk [vmem:[#allocation5 + $0x10] sm:$0x1] %vm301_vm4, %v493_v18  ;;  %517 = vst.msk [vmem:[#allocation5 + $0x11] sm:$0x1] %vm301_vm4, %v515_v19  ;;  %v3626_v18 = vstv %s3534_s15  ;;  %s2785_s15 = sld [smem:[#allocation6 + $0x18]] }
 0x14b   : > { %v3493_v22 = vld [vmem:[#allocation5 + $0x8] sm:$0xff]  ;;  %v537_v23 = vpop.permute.xlu1 %536 }
 0x14c   : > { %539 = vst.msk [vmem:[#allocation5 + $0x12] sm:$0x1] %vm301_vm4, %v537_v23  ;;  %v866_v26 = vmul.f32 %v864_v48, %v3493_v22  ;;  %v3509_v27 = vmul.f32 %v3479_v20, %v3493_v22  ;;  %v3513_v28 = vmul.f32 %v3496_v24, %v3493_v22  ;;  %v1132_v45 = vmul.f32 %v1130_v50, %v3493_v22 }
 0x14d   : > { %v3561_v47 = vmul.f32 %v3499_v25, %v3493_v22  ;;  %v3565_v48 = vstv %s3469_s11  ;;  %v944_v50 = vrot.slane %v938_v36, 2  ;;  %v1398_v7 = vmul.f32 %v1396_v55, %v3493_v22  ;;  %s3855_s11 = sld [smem:[#allocation6 + $0x3b]] }
 0x14e   : > { %871 = vrot.lane.b32.xlu1 %v866_v26, %s5890_s7  ;;  %v5825_v34 = vrot.slane %v3509_v27, 1  ;;  %v5824_v46 = vrot.slane %v3513_v28, 2  ;;  %v3605_v11 = vmul.f32 %v3516_v29, %v3493_v22  ;;  %v3614_v55 = vmul.f32 %v3522_v31, %v3376_v49 }
 0x14f   : > { %v394_v38 = vpop.permute.xlu1 %393  ;;  %v416_v39 = vpop.permute.xlu0 %415  ;;  %v5823_v9 = vrot.slane %v3561_v47, 3  ;;  %v3630_v23 = vmul.f32 %v3537_v40, %v3376_v49  ;;  %v655_v26 = vmul.f32 %v3548_v43, %v3398_v60  ;;  %v3727_v12 = vmul.f32 %v3525_v32, %v3493_v22 }
 0x150   : > { %396 = vst.msk [vmem:[#allocation4 + $0xc] sm:$0x1] %vm301_vm4, %v394_v38  ;;  %418 = vst.msk [vmem:[#allocation4 + $0xd] sm:$0x1] %vm301_vm4, %v416_v39  ;;  %v906_v44 = vsel %vm661_vm5, %v904_v33, %v5825_v34  ;;  %v946_v6 = vsel %vm694_vm6, %v944_v50, %v5824_v46  ;;  %v3635_v33 = vstv %s3545_s0  ;;  %v1664_v38 = vmul.f32 %v1662_v62, %v3493_v22  ;;  %s2792_s0 = sld [smem:[#allocation6 + $0x1f]] }
 0x151   : > { %909 = vrot.lane.b32.xlu0 %v906_v44, %s5890_s7  ;;  %5896 = vst [vmem:[#allocation29_spill] sm:$0xff] %v3635_v33  ;;  %v986_v36 = vsel %vm727_vm7, %v984_v15, %v5823_v9  ;;  %v5822_v39 = vrot.slane %v3605_v11, 4  ;;  %v3648_v44 = vmul.f32 %v3519_v30, %v3493_v22  ;;  %v1064_v50 = vrot.slane %v1058_v14, 5 }
 0x152   : > { %1137 = vrot.lane.b32.xlu1 %v1132_v45, %s5892_s1  ;;  %v1024_v45 = vrot.slane %v1018_v13, 4  ;;  %v1104_v53 = vrot.slane %v3614_v55, 6  ;;  %v662_v15 = vrot.slane %v655_v26, 1  ;;  %v3666_v55 = vmul.f32 %v3583_v63, %v3493_v22 }
 0x153   : > { %v438_v57 = vpop.permute.xlu1 %437  ;;  %v460_v61 = vpop.permute.xlu0 %459  ;;  %v3680_v26 = vmul.f32 %v3522_v31, %v3493_v22  ;;  %v3752_v46 = vmul.f32 %v3589_v2, %v3493_v22 }
 0x154   : > { %440 = vst.msk [vmem:[#allocation4 + $0xe] sm:$0x1] %vm301_vm4, %v438_v57  ;;  %462 = vst.msk [vmem:[#allocation4 + $0xf] sm:$0x1] %vm301_vm4, %v460_v61  ;;  %v3657_v61 = vmul.f32 %v3540_v41, %v3376_v49 }
 0x155   : > { %949 = vrot.lane.b32.xlu0 %v946_v6, %s5890_s7  ;;  %v672_v6 = vmul.f32 %v3583_v63, %v3376_v49 }
 0x156   : > { %1403 = vrot.lane.b32.xlu1 %v1398_v7, %s5895_s2 }
 0x157   : > { %v482_v19 = vpop.permute.xlu1 %481  ;;  %v504_v21 = vpop.permute.xlu0 %503  ;;  %v678_v59 = vrot.slane %v672_v6, 1  ;;  %v3716_v6 = vmul.f32 %v3577_v54, %v3398_v60 }
 0x158   : > { %484 = vst.msk [vmem:[#allocation4 + $0x10] sm:$0x1] %vm301_vm4, %v482_v19  ;;  %506 = vst.msk [vmem:[#allocation4 + $0x11] sm:$0x1] %vm301_vm4, %v504_v21  ;;  %v688_v19 = vmul.f32 %v3565_v48, %v3398_v60  ;;  %v1026_v21 = vsel %vm204_vm0, %v1024_v45, %v5822_v39  ;;  %v721_v45 = vmul.f32 %v3568_v51, %v3398_v60 }
 0x159   : > { %989 = vrot.lane.b32.xlu0 %v986_v36, %s5890_s7  ;;  %v3706_v39 = vmul.f32 %v3592_v4, %v3376_v49 }
 0x15a   : > { %1669 = vrot.lane.b32.xlu1 %v1664_v38, %s5897_s9  ;;  %v5828_v38 = vrot.slane %v3648_v44, 5  ;;  %v695_v10 = vrot.slane %v688_v19, 2  ;;  %v728_v35 = vrot.slane %v721_v45, 3 }
 0x15b   : > { %v3661_v7 = vld [vmem:[#allocation4 + $0x8] sm:$0xff]  ;;  %v526_v13 = vpop.permute.xlu1 %525 }
 0x15c   : > { %528 = vst.msk [vmem:[#allocation4 + $0x12] sm:$0x1] %vm301_vm4, %v526_v13  ;;  %v853_v36 = vmul.f32 %v851_v5, %v3661_v7  ;;  %v3685_v0 = vmul.f32 %v3548_v43, %v3661_v7  ;;  %v705_v13 = vmul.f32 %v3586_v1, %v3376_v49  ;;  %v3693_v5 = vmul.f32 %v3589_v2, %v3376_v49 }
 0x15d   : > { %1029 = vrot.lane.b32.xlu0 %v1026_v21, %s5890_s7  ;;  %v3698_v21 = vmul.f32 %v3565_v48, %v3661_v7  ;;  %v1066_v14 = vsel %vm792_vm8, %v1064_v50, %v5828_v38  ;;  %v1119_v34 = vmul.f32 %v1117_v8, %v3661_v7  ;;  %v3736_v50 = vmul.f32 %v3568_v51, %v3661_v7  ;;  %v3738_v8 = vld [vmem:[#allocation5 + $0x10] sm:$0x3f] }
 0x15e   : > { %858 = vrot.lane.b32.xlu1 %v853_v36, %s5890_s7  ;;  %v5831_v9 = vrot.slane %v3685_v0, 1  ;;  %v3712_v36 = vmul.f32 %v3586_v1, %v3493_v22  ;;  %v3743_v38 = vmul.f32 %v3532_v37, %v3493_v22  ;;  %v711_v57 = vrot.slane %v705_v13, 2 }
 0x15f   : > { %v5899_v51 = vrot.slane %v3680_v26, 6  ;;  %v5835_v13 = vrot.slane %v3727_v12, 1 }
 0x160   : > { %v664_v62 = vsel %vm661_vm5, %v662_v15, %v5831_v9  ;;  %v5898_v15 = vrot.slane %v3666_v55, 1 }
 0x161   : > { %1069 = vrot.lane.b32.xlu0 %v1066_v14, %s5890_s7  ;;  %v669_v14 = vadd.f32 %v664_v62, %v3413_v3  ;;  %v1106_v1 = vsel %vm825_vm9, %v1104_v53, %v5899_v51  ;;  %v5900_v3 = vstv %s3420_s17  ;;  %v3771_v51 = vmul.f32 %v3571_v52, %v3661_v7  ;;  %s2776_s17 = sld [smem:[#allocation6 + $0xf]] }
 0x162   : > { %1124 = vrot.lane.b32.xlu1 %v1119_v34, %s5892_s1  ;;  %v680_v19 = vsel %vm661_vm5, %v678_v59, %v5898_v15  ;;  %v744_v34 = vrot.slane %v3693_v5, 3  ;;  %v1385_v62 = vmul.f32 %v5900_v3, %v3661_v7  ;;  %v900_v59 = vmul.f32 %v3479_v20, %v3738_v8 }
 0x163   : > { %v685_v45 = vadd.f32 %v680_v19, %v669_v14  ;;  %v5901_v15 = vrot.slane %v3698_v21, 2  ;;  %v776_v19 = vrot.slane %v3706_v39, 4  ;;  %v3779_v20 = vmul.f32 %v3537_v40, %v3493_v22 }
 0x164   : > { %v940_v53 = vmul.f32 %v3496_v24, %v3738_v8 }
 0x165   : > { %1109 = vrot.lane.b32.xlu0 %v1106_v1, %s5890_s7  ;;  %v697_v5 = vsel %vm694_vm6, %v695_v10, %v5901_v15  ;;  %v760_v1 = vrot.slane %v3702_v58, 4  ;;  %v5902_v10 = vrot.slane %v3712_v36, 2  ;;  %v5903_v58 = vrot.slane %v3619_v16, 1 }
 0x166   : > { %1390 = vrot.lane.b32.xlu1 %v1385_v62, %s5895_s2  ;;  %v702_v14 = vadd.f32 %v697_v5, %v685_v45  ;;  %v3787_v62 = vmul.f32 %v3592_v4, %v3493_v22  ;;  %v5904_v45 = vstv %s3428_s8  ;;  %v3806_v16 = vmul.f32 %v3577_v54, %v3661_v7  ;;  %s2797_s8 = sld [smem:[#allocation6 + $0x24]] }
 0x167   : > { %v713_v3 = vsel %vm694_vm6, %v711_v57, %v5902_v10  ;;  %v1172_v39 = vsel %vm661_vm5, %v5903_v58, %v5835_v13  ;;  %v1651_v5 = vmul.f32 %v5904_v45, %v3661_v7  ;;  %v907_v57 = vrot.slane %v900_v59, 1 }
 0x168   : > { %v718_v9 = vadd.f32 %v713_v3, %v702_v14  ;;  %v5905_v10 = vrot.slane %v3736_v50, 3  ;;  %v3811_v58 = vmul.f32 %v3540_v41, %v3493_v22  ;;  %v793_v59 = vrot.slane %v3716_v6, 5 }
 0x169   : > { %1175 = vrot.lane.b32.xlu0 %v1172_v39, %s5892_s1  ;;  %v5906_v14 = vrot.slane %v3743_v38, 2  ;;  %v5907_v3 = vrot.slane %v3623_v17, 2  ;;  %v5908_v45 = vrot.slane %v3752_v46, 3  ;;  %v980_v13 = vmul.f32 %v3499_v25, %v3738_v8 }
 0x16a   : > { %v730_v15 = vsel %vm727_vm7, %v728_v35, %v5905_v10  ;;  %1656 = vrot.lane.b32.xlu1 %v1651_v5, %s5897_s9  ;;  %v803_v35 = vmul.f32 %v3626_v18, %v3376_v49  ;;  %v5836_v10 = vrot.slane %v3787_v62, 4  ;;  %v5909_v17 = vrot.slane %v3509_v27, 1 }
 0x16b   : > { %v735_v24 = vadd.f32 %v730_v15, %v718_v9  ;;  %v1212_v39 = vsel %vm694_vm6, %v5907_v3, %v5906_v14  ;;  %v746_v5 = vsel %vm727_vm7, %v744_v34, %v5908_v45  ;;  %v3829_v9 = vmul.f32 %v3626_v18, %v3493_v22 }
 0x16c   : > { %v947_v15 = vrot.slane %v940_v53, 2  ;;  %v908_v14 = vsel %vm661_vm5, %v5909_v17, %v907_v57  ;;  %v5910_v34 = vrot.slane %v3771_v51, 4  ;;  %v5840_v45 = vrot.slane %v3806_v16, 5 }
 0x16d   : > { %v751_v4 = vadd.f32 %v746_v5, %v735_v24  ;;  %1215 = vrot.lane.b32.xlu0 %v1212_v39, %s5892_s1  ;;  %v3844_v6 = vmul.f32 %v3580_v56, %v3661_v7  ;;  %v809_v53 = vrot.slane %v803_v35, 5  ;;  %v819_v24 = vmul.f32 %v3580_v56, %v3398_v60 }
 0x16e   : > { %v762_v3 = vsel %vm204_vm0, %v760_v1, %v5910_v34  ;;  %911 = vrot.lane.b32.xlu1 %v908_v14, %s5890_s7  ;;  %v836_v27 = vmul.f32 %v3635_v33, %v3376_v49  ;;  %v3853_v57 = vmul.f32 %v3543_v42, %v3493_v22  ;;  %v778_v1 = vsel %vm204_vm0, %v776_v19, %v5836_v10 }
 0x16f   : > { %5911 = vst [vmem:[#allocation30_spill] sm:$0xff] %v3844_v6  ;;  %v767_v25 = vadd.f32 %v762_v3, %v751_v4  ;;  %v3863_v35 = vmul.f32 %v3635_v33, %v3493_v22  ;;  %v5913_v39 = vrot.slane %v3779_v20, 3  ;;  %v5914_v5 = vrot.slane %v3630_v23, 3 }
 0x170   : > { %v1291_v14 = vrot.slane %v3811_v58, 4  ;;  %v1020_v34 = vmul.f32 %v3516_v29, %v3738_v8  ;;  %v5915_v19 = vrot.slane %v3513_v28, 2  ;;  %v987_v4 = vrot.slane %v980_v13, 3 }
 0x171   : > { %5912 = vst [vmem:[#allocation31_spill] sm:$0xff] %v3863_v35  ;;  %v1252_v17 = vsel %vm727_vm7, %v5914_v5, %v5913_v39  ;;  %v783_v3 = vadd.f32 %v778_v1, %v767_v25  ;;  %v795_v33 = vsel %vm792_vm8, %v793_v59, %v5840_v45  ;;  %v5839_v23 = vrot.slane %v3844_v6, 6 }
 0x172   : > { %1255 = vrot.lane.b32.xlu0 %v1252_v17, %s5892_s1  ;;  %v948_v10 = vsel %vm694_vm6, %v5915_v19, %v947_v15  ;;  %v1290_v39 = vrot.slane %v3657_v61, 4  ;;  %v1324_v29 = vmul.f32 %v3543_v42, %v3376_v49  ;;  %v3886_v25 = vstv %s3813_s10  ;;  %s2799_s10 = sld [smem:[#allocation6 + $0x26]] }
 0x173   : > { %951 = vrot.lane.b32.xlu1 %v948_v10, %s5890_s7  ;;  %v800_v1 = vadd.f32 %v795_v33, %v783_v3  ;;  %v5916_v28 = vrot.slane %v3829_v9, 5  ;;  %v826_v15 = vrot.slane %v819_v24, 6  ;;  %v842_v5 = vrot.slane %v836_v27, 6 }
 0x174   : > { %v5838_v59 = vrot.slane %v3863_v35, 6  ;;  %v1292_v61 = vsel %vm204_vm0, %v1290_v39, %v1291_v14  ;;  %v1331_v10 = vrot.slane %v3853_v57, 5  ;;  %v3898_v17 = vmul.f32 %v3886_v25, %v3493_v22 }
 0x175   : > { %v811_v13 = vsel %vm792_vm8, %v809_v53, %v5916_v28  ;;  %v5917_v53 = vrot.slane %v3561_v47, 3  ;;  %v1027_v27 = vrot.slane %v1020_v34, 4  ;;  %v1060_v3 = vmul.f32 %v3519_v30, %v3738_v8 }
 0x176   : > { %v816_v33 = vadd.f32 %v811_v13, %v800_v1  ;;  %1295 = vrot.lane.b32.xlu0 %v1292_v61, %s5892_s1  ;;  %v828_v19 = vsel %vm825_vm9, %v826_v15, %v5839_v23  ;;  %v1330_v39 = vrot.slane %v1324_v29, 5  ;;  %v1364_v1 = vmul.f32 %v3886_v25, %v3376_v49 }
 0x177   : > { %v988_v24 = vsel %vm727_vm7, %v5917_v53, %v987_v4  ;;  %v3913_v13 = vstv %s3855_s11  ;;  %v844_v47 = vsel %vm825_vm9, %v842_v5, %v5838_v59  ;;  %v1371_v4 = vrot.slane %v3898_v17, 6  ;;  %s2806_s11 = sld [smem:[#allocation6 + $0x2d]] }
 0x178   : > { %991 = vrot.lane.b32.xlu1 %v988_v24, %s5890_s7  ;;  %v833_v28 = vadd.f32 %v828_v19, %v816_v33  ;;  %v1332_v30 = vsel %vm792_vm8, %v1330_v39, %v1331_v10  ;;  %v3924_v34 = vmul.f32 %v3913_v13, %v3493_v22  ;;  %v5918_v15 = vrot.slane %v3605_v11, 4 }
 0x179   : > { %v1067_v5 = vrot.slane %v1060_v3, 5  ;;  %v1100_v33 = vmul.f32 %v3522_v31, %v3738_v8  ;;  %v1370_v53 = vrot.slane %v1364_v1, 6  ;;  %v1430_v24 = vmul.f32 %v3913_v13, %v3376_v49 }
 0x17a   : > { %v3926_v29 = vadd.f32 %v844_v47, %v833_v28  ;;  %1335 = vrot.lane.b32.xlu0 %v1332_v30, %s5892_s1  ;;  %v1028_v61 = vsel %vm204_vm0, %v5918_v15, %v1027_v27  ;;  %v3937_v19 = vstv %s2827_s12  ;;  %v1437_v11 = vrot.slane %v3924_v34, 1  ;;  %s2779_s12 = sld [smem:[#allocation6 + $0x12]] }
 0x17b   : > { %v1372_v39 = vsel %vm825_vm9, %v1370_v53, %v1371_v4  ;;  %v3945_v27 = vmul.f32 %v3937_v19, %v3493_v22  ;;  %v5919_v31 = vrot.slane %v3648_v44, 5  ;;  %v1107_v1 = vrot.slane %v1100_v33, 6 }
 0x17c   : > { %1031 = vrot.lane.b32.xlu1 %v1028_v61, %s5890_s7  ;;  %v1166_v28 = vmul.f32 %v3525_v32, %v3738_v8  ;;  %v1436_v47 = vrot.slane %v1430_v24, 1  ;;  %v1470_v30 = vmul.f32 %v3937_v19, %v3376_v49  ;;  %v3956_v15 = vstv %s2834_s13  ;;  %s2828_s13 = sld [smem:[#allocation6 + $0x43]] }
 0x17d   : > { %v1068_v3 = vsel %vm792_vm8, %v5919_v31, %v1067_v5  ;;  %v1477_v44 = vrot.slane %v3945_v27, 2  ;;  %v3964_v5 = vmul.f32 %v3956_v15, %v3493_v22  ;;  %v5920_v32 = vrot.slane %v3680_v26, 6 }
 0x17e   : > { %1375 = vrot.lane.b32.xlu0 %v1372_v39, %s5892_s1  ;;  %v1438_v61 = vsel %vm661_vm5, %v1436_v47, %v1437_v11  ;;  %v1173_v53 = vrot.slane %v1166_v28, 1  ;;  %v1206_v24 = vmul.f32 %v3532_v37, %v3738_v8  ;;  %v1476_v39 = vrot.slane %v1470_v30, 2 }
 0x17f   : > { %v1108_v33 = vsel %vm825_vm9, %v5920_v32, %v1107_v1  ;;  %v1510_v31 = vmul.f32 %v3956_v15, %v3376_v49  ;;  %v1517_v26 = vrot.slane %v3964_v5, 3  ;;  %v5921_v37 = vrot.slane %v3727_v12, 1 }
 0x180   : > { %1071 = vrot.lane.b32.xlu1 %v1068_v3, %s5890_s7  ;;  %v3975_v3 = vstv %s2841_s14  ;;  %v1478_v47 = vsel %vm694_vm6, %v1476_v39, %v1477_v44  ;;  %v1213_v30 = vrot.slane %v1206_v24, 2  ;;  %v3994_v39 = vstv %s2848_s20  ;;  %s2786_s14 = sld [smem:[#allocation6 + $0x19]] }
 0x181   : > { %v3983_v1 = vmul.f32 %v3975_v3, %v3493_v22  ;;  %v1174_v28 = vsel %vm661_vm5, %v5921_v37, %v1173_v53  ;;  %v1516_v32 = vrot.slane %v1510_v31, 3  ;;  %v4002_v53 = vmul.f32 %v3994_v39, %v3493_v22  ;;  %s2835_s20 = sld [smem:[#allocation6 + $0x4a]] }
 0x182   : > { %1441 = vrot.lane.b32.xlu0 %v1438_v61, %s5895_s2  ;;  %v1246_v61 = vmul.f32 %v3537_v40, %v3738_v8  ;;  %v5922_v40 = vrot.slane %v3743_v38, 2  ;;  %v1286_v37 = vmul.f32 %v3540_v41, %v3738_v8  ;;  %v4013_v59 = vstv %s2855_s22  ;;  %s2793_s22 = sld [smem:[#allocation6 + $0x20]] }
 0x183   : > { %v1557_v12 = vrot.slane %v3983_v1, 4  ;;  %v1597_v38 = vrot.slane %v4002_v53, 5  ;;  %v5923_v41 = vrot.slane %v3779_v20, 3  ;;  %v4032_v23 = vstv %s2821_s28  ;;  %s4566_s28 = sld [smem:[#allocation6 + $0x27]] }
 0x184   : > { %1111 = vrot.lane.b32.xlu1 %v1108_v33, %s5890_s7  ;;  %v1550_v33 = vmul.f32 %v3975_v3, %v3376_v49  ;;  %v1214_v24 = vsel %vm694_vm6, %v5922_v40, %v1213_v30  ;;  %v1253_v31 = vrot.slane %v1246_v61, 3  ;;  %v4021_v30 = vmul.f32 %v4013_v59, %v3493_v22 }
 0x185   : > { %v1326_v40 = vmul.f32 %v3543_v42, %v3738_v8  ;;  %v4133_v45 = vstv %s2797_s8  ;;  %s4805_s8 = sld [smem:[#allocation6 + $0x13]] }
 0x186   : > { %1481 = vrot.lane.b32.xlu0 %v1478_v47, %s5895_s2  ;;  %v1518_v47 = vsel %vm727_vm7, %v1516_v32, %v1517_v26  ;;  %v1590_v32 = vmul.f32 %v3994_v39, %v3376_v49  ;;  %v1254_v61 = vsel %vm727_vm7, %v5923_v41, %v1253_v31  ;;  %v1637_v20 = vrot.slane %v4021_v30, 6 }
 0x187   : > { %v4040_v31 = vmul.f32 %v4032_v23, %v3493_v22 }
 0x188   : > { %1177 = vrot.lane.b32.xlu1 %v1174_v28, %s5892_s1  ;;  %v1556_v28 = vrot.slane %v1550_v33, 4  ;;  %v1293_v33 = vrot.slane %v1286_v37, 4  ;;  %v1333_v37 = vrot.slane %v1326_v40, 5 }
 0x189   : > { %v1703_v58 = vrot.slane %v4040_v31, 1 }
 0x18a   : > { %1521 = vrot.lane.b32.xlu0 %v1518_v47, %s5895_s2  ;;  %v1558_v47 = vsel %vm204_vm0, %v1556_v28, %v1557_v12  ;;  %v1630_v28 = vmul.f32 %v4013_v59, %v3376_v49  ;;  %v1294_v42 = vsel %vm204_vm0, %v1291_v14, %v1293_v33  ;;  %v1432_v33 = vmul.f32 %v3913_v13, %v3738_v8 }
 0x18c   : > { %1217 = vrot.lane.b32.xlu1 %v1214_v24, %s5892_s1  ;;  %v1596_v24 = vrot.slane %v1590_v32, 5  ;;  %v1366_v32 = vmul.f32 %v3886_v25, %v3738_v8  ;;  %v1636_v41 = vrot.slane %v1630_v28, 6  ;;  %v1334_v25 = vsel %vm792_vm8, %v1331_v10, %v1333_v37 }
 0x18e   : > { %1561 = vrot.lane.b32.xlu0 %v1558_v47, %s5895_s2  ;;  %v1598_v47 = vsel %vm792_vm8, %v1596_v24, %v1597_v38  ;;  %v4051_v24 = vstv %s2769_s4  ;;  %v1638_v22 = vsel %vm825_vm9, %v1636_v41, %v1637_v20  ;;  %v1472_v41 = vmul.f32 %v3937_v19, %v3738_v8  ;;  %s4599_s4 = sld [smem:[#allocation6 + $0x58]] }
 0x18f   : > { %v4059_v14 = vmul.f32 %v4051_v24, %v3661_v7  ;;  %v878_v28 = vmul.f32 %v4051_v24, %v3398_v60 }
 0x190   : > { %1257 = vrot.lane.b32.xlu1 %v1254_v61, %s5892_s1  ;;  %v1696_v61 = vmul.f32 %v4032_v23, %v3376_v49  ;;  %v1373_v49 = vrot.slane %v1366_v32, 6  ;;  %v1439_v32 = vrot.slane %v1432_v33, 1  ;;  %v1479_v33 = vrot.slane %v1472_v41, 2 }
 0x191   : > { %v885_v10 = vrot.slane %v4059_v14, 1  ;;  %v1552_v41 = vmul.f32 %v3975_v3, %v3738_v8  ;;  %v4141_v3 = vmul.f32 %v4133_v45, %v3661_v7 }
 0x192   : > { %1601 = vrot.lane.b32.xlu0 %v1598_v47, %s5895_s2  ;;  %v1702_v40 = vrot.slane %v1696_v61, 1  ;;  %v4070_v47 = vpop.permute.xlu0 %869  ;;  %v1374_v37 = vsel %vm825_vm9, %v1371_v4, %v1373_v49  ;;  %v884_v61 = vrot.slane %v878_v28, 1  ;;  %v1440_v49 = vsel %vm661_vm5, %v1437_v11, %v1439_v32 }
 0x193   : > { %v1512_v28 = vmul.f32 %v3956_v15, %v3738_v8  ;;  %v1480_v15 = vsel %vm694_vm6, %v1477_v44, %v1479_v33  ;;  %v5842_v5 = vrot.slane %v4141_v3, 5 }
 0x194   : > { %1297 = vrot.lane.b32.xlu1 %v1294_v42, %s5892_s1  ;;  %v4072_v42 = vstv %s2776_s17  ;;  %v1704_v57 = vsel %vm661_vm5, %v1702_v40, %v1703_v58  ;;  %v886_v40 = vsel %vm661_vm5, %v884_v61, %v885_v10  ;;  %v4112_v61 = vstv %s2790_s6  ;;  %s4747_s17 = sld [smem:[#allocation6 + $0xc]] }
 0x195   : > { %v4080_v13 = vmul.f32 %v4072_v42, %v3661_v7  ;;  %v4120_v11 = vmul.f32 %v4112_v61, %v3661_v7  ;;  %v1519_v32 = vrot.slane %v1512_v28, 3  ;;  %v1559_v28 = vrot.slane %v1552_v41, 4  ;;  %s4776_s6 = sld [smem:[#allocation6 + $0x3d]] }
 0x196   : > { %1641 = vrot.lane.b32.xlu0 %v1638_v22, %s5895_s2  ;;  %v918_v22 = vmul.f32 %v4072_v42, %v3398_v60  ;;  %v4101_v19 = vpop.permute.xlu0 %1135 }
 0x197   : > { %v925_v17 = vrot.slane %v4080_v13, 2  ;;  %5924 = vst [vmem:[#allocation32_spill] sm:$0xff] %v4101_v19  ;;  %v5841_v44 = vrot.slane %v4120_v11, 4  ;;  %v1520_v33 = vsel %vm727_vm7, %v1517_v26, %v1519_v32  ;;  %v1560_v32 = vsel %vm204_vm0, %v1557_v12, %v1559_v28 }
 0x198   : > { %1337 = vrot.lane.b32.xlu1 %v1334_v25, %s5892_s1  ;;  %v4091_v25 = vstv %s2783_s19  ;;  %s4751_s19 = sld [smem:[#allocation6 + $0x36]] }
 0x199   : > { %v4099_v4 = vmul.f32 %v4091_v25, %v3661_v7 }
 0x19a   : > { %1707 = vrot.lane.b32.xlu0 %v1704_v57, %s5897_s9  ;;  %v924_v57 = vrot.slane %v918_v22, 2 }
 0x19b   : > { %v5843_v34 = vrot.slane %v4099_v4, 3 }
 0x19c   : > { %1377 = vrot.lane.b32.xlu1 %v1374_v37, %s5892_s1  ;;  %v958_v37 = vmul.f32 %v4091_v25, %v3398_v60 }
 0x19e   : > { %889 = vrot.lane.b32.xlu0 %v886_v40, %s5890_s7  ;;  %v926_v40 = vsel %vm694_vm6, %v924_v57, %v925_v17  ;;  %v964_v22 = vrot.slane %v958_v37, 3  ;;  %v4131_v57 = vpop.permute.xlu0 %1401  ;;  %v1592_v37 = vmul.f32 %v3994_v39, %v3738_v8 }
 0x19f   : > { %5925 = vst [vmem:[#allocation33_spill] sm:$0xff] %v4131_v57 }
 0x1a0   : > { %1443 = vrot.lane.b32.xlu1 %v1440_v49, %s5895_s2  ;;  %v998_v49 = vmul.f32 %v4112_v61, %v3398_v60  ;;  %v966_v27 = vsel %vm727_vm7, %v964_v22, %v5843_v34  ;;  %v4152_v22 = vstv %s2804_s3  ;;  %v1599_v41 = vrot.slane %v1592_v37, 5  ;;  %s3134_s3 = smov 123  }
 0x1a1   : > { %v4160_v26 = vmul.f32 %v4152_v22, %v3661_v7  ;;  %v1698_v37 = vmul.f32 %v4032_v23, %v3738_v8  ;;  %v4196_v34 = vstv %s2777_s16  ;;  %s4864_s16 = sld [smem:[#allocation6 + $0x1a]] }
 0x1a2   : > { %929 = vrot.lane.b32.xlu0 %v926_v40, %s5890_s7  ;;  %v1004_v40 = vrot.slane %v998_v49, 4  ;;  %v4162_v39 = vpop.permute.xlu0 %1667  ;;  %v1632_v49 = vmul.f32 %v4013_v59, %v3738_v8  ;;  %v1600_v59 = vsel %vm792_vm8, %v1597_v38, %v1599_v41  ;;  %v4204_v23 = vmul.f32 %v4196_v34, %v3661_v7 }
 0x1a3   : > { %5926 = vst [vmem:[#allocation34_spill] sm:$0xff] %v4162_v39  ;;  %v5844_v1 = vrot.slane %v4160_v26, 6 }
 0x1a4   : > { %1483 = vrot.lane.b32.xlu1 %v1480_v15, %s5895_s2  ;;  %v1038_v15 = vmul.f32 %v4133_v45, %v3398_v60  ;;  %v1639_v28 = vrot.slane %v1632_v49, 6  ;;  %v1705_v49 = vrot.slane %v1698_v37, 1 }
 0x1a6   : > { %969 = vrot.lane.b32.xlu0 %v966_v27, %s5890_s7  ;;  %v1006_v27 = vsel %vm204_vm0, %v1004_v40, %v5841_v44  ;;  %v1078_v40 = vmul.f32 %v4152_v22, %v3398_v60  ;;  %v4173_v44 = vstv %s2770_s5  ;;  %v1640_v41 = vsel %vm825_vm9, %v1637_v20, %v1639_v28  ;;  %s4834_s5 = sld [smem:[#allocation6 + $0x44]] }
 0x1a7   : > { %v4181_v12 = vmul.f32 %v4173_v44, %v3661_v7  ;;  %v5845_v20 = vrot.slane %v4204_v23, 2  ;;  %v1706_v28 = vsel %vm661_vm5, %v1703_v58, %v1705_v49 }
 0x1a8   : > { %1523 = vrot.lane.b32.xlu1 %v1520_v33, %s5895_s2  ;;  %v1044_v33 = vrot.slane %v1038_v15, 5  ;;  %v4189_v15 = vld [vmem:[#allocation4 + $0x10] sm:$0x3f] }
 0x1a9   : > { %v5848_v38 = vrot.slane %v4181_v12, 1  ;;  %v1080_v39 = vmul.f32 %v4152_v22, %v4189_v15 }
 0x1aa   : > { %1009 = vrot.lane.b32.xlu0 %v1006_v27, %s5890_s7  ;;  %v1046_v27 = vsel %vm792_vm8, %v1044_v33, %v5842_v5  ;;  %v1144_v33 = vmul.f32 %v4173_v44, %v3398_v60  ;;  %v4194_v5 = vpop.permute.xlu0 %856 }
 0x1ac   : > { %1563 = vrot.lane.b32.xlu1 %v1560_v32, %s5895_s2  ;;  %v1084_v32 = vrot.slane %v1078_v40, 6  ;;  %v880_v40 = vmul.f32 %v4051_v24, %v4189_v15 }
 0x1ae   : > { %1049 = vrot.lane.b32.xlu0 %v1046_v27, %s5890_s7  ;;  %v1086_v53 = vsel %vm825_vm9, %v1084_v32, %v5844_v1  ;;  %v1150_v27 = vrot.slane %v1144_v33, 1  ;;  %v4215_v32 = vpop.permute.xlu0 %1122  ;;  %v4217_v1 = vstv %s2784_s25  ;;  %v887_v37 = vrot.slane %v880_v40, 1  ;;  %s4894_s25 = sld [smem:[#allocation6 + $0x4b]] }
 0x1af   : > { %5927 = vst [vmem:[#allocation35_spill] sm:$0xff] %v4215_v32  ;;  %v4225_v24 = vmul.f32 %v4217_v1, %v3661_v7  ;;  %v920_v33 = vmul.f32 %v4072_v42, %v4189_v15 }
 0x1b0   : > { %1603 = vrot.lane.b32.xlu1 %v1600_v59, %s5895_s2  ;;  %v1184_v59 = vmul.f32 %v4196_v34, %v3398_v60  ;;  %v1152_v30 = vsel %vm661_vm5, %v1150_v27, %v5848_v38  ;;  %v4236_v27 = vstv %s2791_s23  ;;  %v888_v49 = vsel %vm661_vm5, %v885_v10, %v887_v37  ;;  %s4922_s23 = sld [smem:[#allocation6 + $0x21]] }
 0x1b1   : > { %v5846_v31 = vrot.slane %v4225_v24, 3  ;;  %v4244_v58 = vmul.f32 %v4236_v27, %v3661_v7  ;;  %v927_v40 = vrot.slane %v920_v33, 2  ;;  %v1000_v33 = vmul.f32 %v4112_v61, %v4189_v15 }
 0x1b2   : > { %1089 = vrot.lane.b32.xlu0 %v1086_v53, %s5890_s7  ;;  %v1190_v53 = vrot.slane %v1184_v59, 2  ;;  %v4246_v42 = vpop.permute.xlu0 %1388  ;;  %v960_v59 = vmul.f32 %v4091_v25, %v4189_v15 }
 0x1b3   : > { %5928 = vst [vmem:[#allocation36_spill] sm:$0xff] %v4246_v42  ;;  %v5847_v14 = vrot.slane %v4244_v58, 4  ;;  %v928_v25 = vsel %vm694_vm6, %v925_v17, %v927_v40  ;;  %v4303_v17 = vstv %s2771_s30  ;;  %v1226_v42 = vmul.f32 %v4217_v1, %v4189_v15  ;;  %s5002_s30 = sld [smem:[#allocation6 + $0x59]] }
 0x1b4   : > { %1643 = vrot.lane.b32.xlu1 %v1640_v41, %s5895_s2  ;;  %v1224_v41 = vmul.f32 %v4217_v1, %v3398_v60  ;;  %v967_v37 = vrot.slane %v960_v59, 3  ;;  %v1007_v59 = vrot.slane %v1000_v33, 4 }
 0x1b6   : > { %1155 = vrot.lane.b32.xlu0 %v1152_v30, %s5892_s1  ;;  %v1192_v30 = vsel %vm694_vm6, %v1190_v53, %v5845_v20  ;;  %v1264_v53 = vmul.f32 %v4236_v27, %v3398_v60  ;;  %v4257_v20 = vstv %s2798_s26  ;;  %s4950_s26 = sld [smem:[#allocation6 + $0x52]] }
 0x1b7   : > { %v4265_v10 = vmul.f32 %v4257_v20, %v3661_v7 }
 0x1b8   : > { %1709 = vrot.lane.b32.xlu1 %v1706_v28, %s5897_s9  ;;  %v1230_v28 = vrot.slane %v1224_v41, 3  ;;  %v1270_v41 = vrot.slane %v1264_v53, 4  ;;  %v1040_v53 = vmul.f32 %v4133_v45, %v4189_v15  ;;  %v4326_v45 = vstv %s2778_s21  ;;  %s5047_s21 = sld [smem:[#allocation6 + $0x60]] }
 0x1b9   : > { %v4336_v22 = vmul.f32 %v4326_v45, %v3661_v7 }
 0x1ba   : > { %1195 = vrot.lane.b32.xlu0 %v1192_v30, %s5892_s1  ;;  %v1232_v30 = vsel %vm727_vm7, %v1230_v28, %v5846_v31  ;;  %v4276_v28 = vpop.permute.xlu0 %1654  ;;  %v4278_v31 = vstv %s2805_s29  ;;  %v1272_v13 = vsel %vm204_vm0, %v1270_v41, %v5847_v14  ;;  %v4297_v41 = vld [vmem:[#allocation4] sm:$0xff]  ;;  %s4974_s29 = sld [smem:[#allocation6 + $0x28]] }
 0x1bb   : > { %5929 = vst [vmem:[#allocation37_spill] sm:$0xff] %v4276_v28  ;;  %v4288_v61 = vmul.f32 %v4278_v31, %v3661_v7  ;;  %v1344_v14 = vmul.f32 %v4297_v41, %v4278_v31 }
 0x1bc   : > { %891 = vrot.lane.b32.xlu1 %v888_v49, %s5890_s7  ;;  %v1304_v49 = vmul.f32 %v4257_v20, %v3398_v60  ;;  %v5931_v60 = vrot.slane %v4099_v4, 3 }
 0x1bd   : > { %v1350_v28 = vrot.slane %v1344_v14, 6  ;;  %v5937_v14 = vrot.slane %v4141_v3, 5 }
 0x1be   : > { %1235 = vrot.lane.b32.xlu0 %v1232_v30, %s5892_s1  ;;  %v968_v40 = vsel %vm727_vm7, %v5931_v60, %v967_v37  ;;  %v5933_v37 = vrot.slane %v4265_v10, 5 }
 0x1c0   : > { %931 = vrot.lane.b32.xlu1 %v928_v25, %s5890_s7  ;;  %v4280_v30 = vpop.permute.xlu1 %871  ;;  %v1310_v25 = vrot.slane %v1304_v49, 5  ;;  %v4313_v49 = vmul.f32 %v4303_v17, %v3661_v7 }
 0x1c1   : > { %5930 = vst [vmem:[#allocation38_spill] sm:$0xff] %v4280_v30 }
 0x1c2   : > { %1275 = vrot.lane.b32.xlu0 %v1272_v13, %s5892_s1  ;;  %v1312_v33 = vsel %vm792_vm8, %v1310_v25, %v5933_v37  ;;  %v5934_v13 = vrot.slane %v4120_v11, 4  ;;  %v1410_v25 = vmul.f32 %v4297_v41, %v4303_v17  ;;  %v5936_v11 = vrot.slane %v4288_v61, 6 }
 0x1c3   : > { %v4301_v38 = vpop.permute.xlu0 %909  ;;  %v5939_v3 = vrot.slane %v4313_v49, 1 }
 0x1c4   : > { %971 = vrot.lane.b32.xlu1 %v968_v40, %s5890_s7  ;;  %v4305_v4 = vpop.permute.xlu1 %1137  ;;  %v1008_v60 = vsel %vm204_vm0, %v5934_v13, %v1007_v59  ;;  %v1047_v40 = vrot.slane %v1040_v53, 5  ;;  %v1352_v59 = vsel %vm825_vm9, %v1350_v28, %v5936_v11  ;;  %v1450_v28 = vmul.f32 %v4297_v41, %v4326_v45 }
 0x1c5   : > { %5932 = vst [vmem:[#allocation39_spill] sm:$0xff] %v4305_v4  ;;  %v1416_v4 = vrot.slane %v1410_v25, 1  ;;  %v4349_v53 = vstv %s2785_s15  ;;  %v5940_v25 = vrot.slane %v4160_v26, 6  ;;  %v5942_v26 = vrot.slane %v4336_v22, 2  ;;  %s5103_s15 = sld [smem:[#allocation6 + $0x6]] }
 0x1c6   : > { %1315 = vrot.lane.b32.xlu0 %v1312_v33, %s5892_s1  ;;  %v1048_v13 = vsel %vm792_vm8, %v5937_v14, %v1047_v40  ;;  %v1456_v57 = vrot.slane %v1450_v28, 2  ;;  %v4372_v40 = vstv %s2792_s0  ;;  %v5943_v28 = vrot.slane %v4181_v12, 1  ;;  %s5116_s0 = sld [smem:[#allocation6 + $0xd]] }
 0x1c7   : > { %v4324_v37 = vpop.permute.xlu0 %949 }
 0x1c8   : > { %1011 = vrot.lane.b32.xlu1 %v1008_v60, %s5890_s7  ;;  %v4328_v33 = vpop.permute.xlu1 %1403  ;;  %v1087_v60 = vrot.slane %v1080_v39, 6  ;;  %v1418_v39 = vsel %vm661_vm5, %v1416_v4, %v5939_v3  ;;  %v1490_v4 = vmul.f32 %v4297_v41, %v4349_v53 }
 0x1c9   : > { %5935 = vst [vmem:[#allocation40_spill] sm:$0xff] %v4328_v33  ;;  %v1146_v33 = vmul.f32 %v4173_v44, %v4189_v15  ;;  %v4359_v44 = vmul.f32 %v4349_v53, %v3661_v7 }
 0x1ca   : > { %1355 = vrot.lane.b32.xlu0 %v1352_v59, %s5892_s1  ;;  %v1088_v14 = vsel %vm825_vm9, %v5940_v25, %v1087_v60  ;;  %v1496_v30 = vrot.slane %v1490_v4, 3  ;;  %v4395_v60 = vstv %s2799_s10  ;;  %v5947_v4 = vrot.slane %v4204_v23, 2  ;;  %s5122_s10 = sld [smem:[#allocation6 + $0x37]] }
 0x1cb   : > { %v4347_v11 = vpop.permute.xlu0 %989  ;;  %v5946_v12 = vrot.slane %v4359_v44, 3  ;;  %v4405_v1 = vmul.f32 %v4395_v60, %v3661_v7 }
 0x1cc   : > { %1051 = vrot.lane.b32.xlu1 %v1048_v13, %s5890_s7  ;;  %v4351_v59 = vpop.permute.xlu1 %1669  ;;  %v1153_v13 = vrot.slane %v1146_v33, 1  ;;  %v1458_v33 = vsel %vm694_vm6, %v1456_v57, %v5942_v26  ;;  %v1530_v57 = vmul.f32 %v4297_v41, %v4372_v40 }
 0x1cd   : > { %5938 = vst [vmem:[#allocation41_spill] sm:$0xff] %v4351_v59  ;;  %v1186_v59 = vmul.f32 %v4196_v34, %v4189_v15  ;;  %v4382_v34 = vmul.f32 %v4372_v40, %v3661_v7 }
 0x1ce   : > { %1421 = vrot.lane.b32.xlu0 %v1418_v39, %s5895_s2  ;;  %v1154_v25 = vsel %vm661_vm5, %v5943_v28, %v1153_v13  ;;  %v1536_v19 = vrot.slane %v1530_v57, 4  ;;  %v4418_v13 = vstv %s2806_s11  ;;  %v5951_v57 = vrot.slane %v4225_v24, 3  ;;  %s5133_s11 = sld [smem:[#allocation6 + $0x3e]] }
 0x1cf   : > { %v4370_v3 = vpop.permute.xlu0 %1029  ;;  %v5950_v23 = vrot.slane %v4382_v34, 4  ;;  %v5954_v24 = vrot.slane %v4405_v1, 5 }
 0x1d0   : > { %1091 = vrot.lane.b32.xlu1 %v1088_v14, %s5890_s7  ;;  %v4374_v39 = vpop.permute.xlu1 %858  ;;  %v1193_v14 = vrot.slane %v1186_v59, 2  ;;  %s2772_s7 = sld [smem:[#allocation6 + $0xb]]  ;;  %v1498_v59 = vsel %vm727_vm7, %v1496_v30, %v5946_v12  ;;  %v1570_v30 = vmul.f32 %v4297_v41, %v4395_v60 }
 0x1d1   : > { %5941 = vst [vmem:[#allocation42_spill] sm:$0xff] %v4374_v39 }
 0x1d2   : > { %1461 = vrot.lane.b32.xlu0 %v1458_v33, %s5895_s2  ;;  %v1194_v28 = vsel %vm694_vm6, %v5947_v4, %v1193_v14  ;;  %v1576_v32 = vrot.slane %v1570_v30, 5  ;;  %v5955_v30 = vrot.slane %v4244_v58, 4 }
 0x1d3   : > { %v4393_v26 = vpop.permute.xlu0 %1069 }
 0x1d4   : > { %1157 = vrot.lane.b32.xlu1 %v1154_v25, %s5892_s1  ;;  %5944 = vst [vmem:[#allocation43_spill] sm:$0xff] %v4393_v26  ;;  %v4397_v33 = vpop.permute.xlu1 %1124  ;;  %v1233_v25 = vrot.slane %v1226_v42, 3  ;;  %v1538_v42 = vsel %vm204_vm0, %v1536_v19, %v5950_v23  ;;  %v1610_v19 = vmul.f32 %v4297_v41, %v4418_v13 }
 0x1d5   : > { %5945 = vst [vmem:[#allocation44_spill] sm:$0xff] %v4397_v33  ;;  %v1266_v33 = vmul.f32 %v4236_v27, %v4189_v15  ;;  %v4428_v27 = vmul.f32 %v4418_v13, %v3661_v7 }
 0x1d6   : > { %1501 = vrot.lane.b32.xlu0 %v1498_v59, %s5895_s2  ;;  %v1234_v4 = vsel %vm727_vm7, %v5951_v57, %v1233_v25  ;;  %v4441_v14 = vstv %s2772_s7  ;;  %v4464_v25 = vstv %s2779_s12  ;;  %s5158_s7 = sld [smem:[#allocation6 + $0x14]]  ;;  %s3135_s12 = smov 122  }
 0x1d7   : > { %v4416_v12 = vpop.permute.xlu0 %1109  ;;  %v5958_v58 = vrot.slane %v4428_v27, 6 }
 0x1d8   : > { %1197 = vrot.lane.b32.xlu1 %v1194_v28, %s5892_s1  ;;  %5948 = vst [vmem:[#allocation45_spill] sm:$0xff] %v4416_v12  ;;  %v4420_v59 = vpop.permute.xlu1 %1390  ;;  %v1273_v28 = vrot.slane %v1266_v33, 4  ;;  %v1578_v33 = vsel %vm792_vm8, %v1576_v32, %v5954_v24  ;;  %v1676_v32 = vmul.f32 %v4297_v41, %v4441_v14  ;;  %v4514_v12 = vstv %s2786_s14  ;;  %s5203_s14 = sld [smem:[#allocation6 + $0x1b]] }
 0x1d9   : > { %5949 = vst [vmem:[#allocation46_spill] sm:$0xff] %v4420_v59  ;;  %v1306_v59 = vmul.f32 %v4257_v20, %v4189_v15  ;;  %v4451_v20 = vmul.f32 %v4441_v14, %v3661_v7 }
 0x1da   : > { %1541 = vrot.lane.b32.xlu0 %v1538_v42, %s5895_s2  ;;  %v1274_v57 = vsel %vm204_vm0, %v5955_v30, %v1273_v28  ;;  %v4487_v28 = vstv %s2828_s13  ;;  %s5182_s13 = sld [smem:[#allocation6 + $0x45]] }
 0x1db   : > { %v4439_v23 = vpop.permute.xlu0 %1175 }
 0x1dc   : > { %1237 = vrot.lane.b32.xlu1 %v1234_v4, %s5892_s1  ;;  %5952 = vst [vmem:[#allocation47_spill] sm:$0xff] %v4439_v23  ;;  %v4443_v42 = vpop.permute.xlu1 %1656  ;;  %v1313_v4 = vrot.slane %v1306_v59, 5  ;;  %v1616_v23 = vrot.slane %v1610_v19, 6  ;;  %v5959_v19 = vrot.slane %v4265_v10, 5  ;;  %v5962_v10 = vrot.slane %v4451_v20, 1 }
 0x1dd   : > { %5953 = vst [vmem:[#allocation48_spill] sm:$0xff] %v4443_v42  ;;  %v1346_v42 = vmul.f32 %v4278_v31, %v4189_v15  ;;  %v4474_v31 = vmul.f32 %v4464_v25, %v3661_v7 }
 0x1de   : > { %1581 = vrot.lane.b32.xlu0 %v1578_v33, %s5895_s2  ;;  %v1618_v59 = vsel %vm825_vm9, %v1616_v23, %v5958_v58  ;;  %v1314_v30 = vsel %vm792_vm8, %v5959_v19, %v1313_v4  ;;  %v1716_v23 = vmul.f32 %v4297_v41, %v4464_v25  ;;  %v5963_v19 = vrot.slane %v4288_v61, 6 }
 0x1df   : > { %v4462_v24 = vpop.permute.xlu0 %1215 }
 0x1e0   : > { %1277 = vrot.lane.b32.xlu1 %v1274_v57, %s5892_s1  ;;  %5956 = vst [vmem:[#allocation49_spill] sm:$0xff] %v4462_v24  ;;  %v4466_v33 = vpop.permute.xlu1 %911  ;;  %v1353_v57 = vrot.slane %v1346_v42, 6  ;;  %v1412_v24 = vmul.f32 %v4303_v17, %v4189_v15  ;;  %v4495_v17 = vld [vmem:[#allocation5 + $0x8] sm:$0xff] }
 0x1e1   : > { %5957 = vst [vmem:[#allocation50_spill] sm:$0xff] %v4466_v33  ;;  %v1682_v33 = vrot.slane %v1676_v32, 1  ;;  %v4499_v32 = vmul.f32 %v4495_v17, %v4487_v28 }
 0x1e2   : > { %1621 = vrot.lane.b32.xlu0 %v1618_v59, %s5895_s2 }
 0x1e3   : > { %v1684_v42 = vsel %vm661_vm5, %v1682_v33, %v5962_v10  ;;  %v1722_v33 = vrot.slane %v1716_v23, 2  ;;  %v4508_v10 = vld [vmem:[#allocation5] sm:$0xff]  ;;  %v4524_v23 = vmul.f32 %v4514_v12, %v3661_v7  ;;  %v4537_v7 = vstv %s2835_s20  ;;  %s5227_s20 = sld [smem:[#allocation6 + $0x4c]] }
 0x1e4   : > { %1317 = vrot.lane.b32.xlu1 %v1314_v30, %s5892_s1  ;;  %v4485_v58 = vpop.permute.xlu0 %1255  ;;  %v1354_v30 = vsel %vm825_vm9, %v5963_v19, %v1353_v57  ;;  %v1736_v4 = vmul.f32 %v4508_v10, %v4487_v28 }
 0x1e5   : > { %5960 = vst [vmem:[#allocation51_spill] sm:$0xff] %v4485_v58  ;;  %v4489_v59 = vpop.permute.xlu1 %951  ;;  %v1419_v58 = vrot.slane %v1412_v24, 1  ;;  %v5966_v24 = vrot.slane %v4474_v31, 2 }
 0x1e6   : > { %5961 = vst [vmem:[#allocation52_spill] sm:$0xff] %v4489_v59  ;;  %1687 = vrot.lane.b32.xlu0 %v1684_v42, %s5897_s9  ;;  %v1452_v59 = vmul.f32 %v4326_v45, %v4189_v15  ;;  %v5849_v45 = vrot.slane %v4499_v32, 2  ;;  %v5967_v42 = vrot.slane %v4313_v49, 1 }
 0x1e7   : > { %v1724_v57 = vsel %vm694_vm6, %v1722_v33, %v5966_v24  ;;  %v1756_v33 = vmul.f32 %v4297_v41, %v4514_v12 }
 0x1e8   : > { %1357 = vrot.lane.b32.xlu1 %v1354_v30, %s5892_s1  ;;  %v4512_v39 = vpop.permute.xlu0 %1295  ;;  %v1420_v19 = vsel %vm661_vm5, %v5967_v42, %v1419_v58  ;;  %v1459_v30 = vrot.slane %v1452_v59, 2  ;;  %s4539_s1 = sld [smem:[#allocation6 + $0x51]]  ;;  %v4549_v58 = vmul.f32 %v4495_v17, %v4537_v7  ;;  %v5970_v59 = vrot.slane %v4336_v22, 2 }
 0x1e9   : > { %5964 = vst [vmem:[#allocation53_spill] sm:$0xff] %v4512_v39  ;;  %v1492_v39 = vmul.f32 %v4349_v53, %v4189_v15 }
 0x1ea   : > { %v4516_v61 = vpop.permute.xlu1 %991  ;;  %1727 = vrot.lane.b32.xlu0 %v1724_v57, %s5897_s9 }
 0x1eb   : > { %5965 = vst [vmem:[#allocation54_spill] sm:$0xff] %v4516_v61  ;;  %v1742_v61 = vrot.slane %v1736_v4, 2  ;;  %v1460_v4 = vsel %vm694_vm6, %v5970_v59, %v1459_v30  ;;  %v1499_v42 = vrot.slane %v1492_v39, 3  ;;  %v4574_v30 = vld [vmem:[#allocation4 + $0x8] sm:$0xff]  ;;  %v5974_v59 = vrot.slane %v4359_v44, 3 }
 0x1ec   : > { %1423 = vrot.lane.b32.xlu1 %v1420_v19, %s5895_s2  ;;  %v4535_v24 = vpop.permute.xlu0 %1335  ;;  %v1532_v19 = vmul.f32 %v4372_v40, %v4189_v15  ;;  %v5973_v40 = vrot.slane %v4524_v23, 3 }
 0x1ed   : > { %5968 = vst [vmem:[#allocation55_spill] sm:$0xff] %v4535_v24  ;;  %v1744_v49 = vsel %vm694_vm6, %v1742_v61, %v5849_v45  ;;  %v657_v24 = vmul.f32 %v3548_v43, %v4189_v15  ;;  %v1762_v61 = vrot.slane %v1756_v33, 3  ;;  %v1776_v45 = vmul.f32 %v4508_v10, %v4537_v7 }
 0x1ee   : > { %v4541_v57 = vpop.permute.xlu1 %1031  ;;  %1747 = vrot.lane.b32.xlu0 %v1744_v49, %s5897_s9  ;;  %v4564_v49 = vstv %s2793_s22  ;;  %s5251_s22 = sld [smem:[#allocation6 + $0x22]] }
 0x1ef   : > { %5969 = vst [vmem:[#allocation56_spill] sm:$0xff] %v4541_v57  ;;  %v1764_v43 = vsel %vm727_vm7, %v1762_v61, %v5973_v40  ;;  %v4578_v33 = vmul.f32 %v4574_v30, %v4564_v49  ;;  %v665_v61 = vrot.slane %v657_v24, 1  ;;  %v1782_v40 = vrot.slane %v1776_v45, 3 }
 0x1f0   : > { %1463 = vrot.lane.b32.xlu1 %v1460_v4, %s5895_s2  ;;  %v4562_v53 = vpop.permute.xlu0 %1375  ;;  %v1500_v4 = vsel %vm727_vm7, %v5974_v59, %v1499_v42  ;;  %v1796_v39 = vmul.f32 %v4297_v41, %v4564_v49  ;;  %v674_v57 = vmul.f32 %v3583_v63, %v3738_v8  ;;  %v4597_v42 = vstv %s4539_s1  ;;  %s5275_s1 = sld [smem:[#allocation6 + $0x53]] }
 0x1f1   : > { %5971 = vst [vmem:[#allocation57_spill] sm:$0xff] %v4562_v53  ;;  %v1539_v53 = vrot.slane %v1532_v19, 4  ;;  %v5978_v24 = vrot.slane %v4549_v58, 3  ;;  %v4609_v63 = vmul.f32 %v4495_v17, %v4597_v42  ;;  %v5979_v8 = vstv %s3373_s24  ;;  %s4666_s24 = sld [smem:[#allocation6 + $0x5f]] }
 0x1f2   : > { %v4568_v22 = vpop.permute.xlu1 %1071  ;;  %1767 = vrot.lane.b32.xlu0 %v1764_v43, %s5897_s9  ;;  %v5975_v43 = vstv %s3369_s18  ;;  %v651_v59 = vmul.f32 %v4495_v17, %v5979_v8  ;;  %v1802_v19 = vrot.slane %v1796_v39, 4  ;;  %v1816_v8 = vmul.f32 %v4508_v10, %v4597_v42  ;;  %s4631_s18 = sld [smem:[#allocation6 + $0x2e]] }
 0x1f3   : > { %5972 = vst [vmem:[#allocation58_spill] sm:$0xff] %v4568_v22  ;;  %v1572_v22 = vmul.f32 %v4395_v60, %v4189_v15  ;;  %v646_v44 = vmul.f32 %v4574_v30, %v5975_v43  ;;  %v1784_v45 = vsel %vm727_vm7, %v1782_v40, %v5978_v24  ;;  %v5981_v40 = vrot.slane %v3685_v0, 1 }
 0x1f4   : > { %1503 = vrot.lane.b32.xlu1 %v1500_v4, %s5895_s2  ;;  %v4594_v35 = vpop.permute.xlu0 %1441  ;;  %v5980_v4 = vrot.slane %v4382_v34, 4  ;;  %v681_v26 = vrot.slane %v674_v57, 1  ;;  %v4629_v34 = vstv %s4566_s28  ;;  %v5852_v39 = vrot.slane %v4609_v63, 4  ;;  %s5301_s28 = sld [smem:[#allocation6 + $0x29]] }
 0x1f5   : > { %5976 = vst [vmem:[#allocation59_spill] sm:$0xff] %v4594_v35  ;;  %v1579_v35 = vrot.slane %v1572_v22, 5  ;;  %v666_v24 = vsel %vm661_vm5, %v5981_v40, %v665_v61  ;;  %v4643_v57 = vmul.f32 %v4574_v30, %v4629_v34  ;;  %v5984_v40 = vrot.slane %v3666_v55, 1 }
 0x1f6   : > { %v4601_v60 = vpop.permute.xlu1 %1111  ;;  %1787 = vrot.lane.b32.xlu0 %v1784_v45, %s5897_s9  ;;  %v1540_v43 = vsel %vm204_vm0, %v5980_v4, %v1539_v53  ;;  %v653_v45 = vadd.f32 %v651_v59, %v646_v44  ;;  %v5982_v53 = vrot.slane %v4578_v33, 4  ;;  %v5983_v44 = vrot.slane %v4405_v1, 5 }
 0x1f7   : > { %5977 = vst [vmem:[#allocation60_spill] sm:$0xff] %v4601_v60  ;;  %v1612_v60 = vmul.f32 %v4418_v13, %v4189_v15  ;;  %v690_v13 = vmul.f32 %v3565_v48, %v4189_v15  ;;  %v1678_v4 = vmul.f32 %v4441_v14, %v4189_v15 }
 0x1f8   : > { %1543 = vrot.lane.b32.xlu1 %v1540_v43, %s5895_s2  ;;  %v4626_v6 = vpop.permute.xlu0 %1481  ;;  %v1804_v22 = vsel %vm204_vm0, %v1802_v19, %v5982_v53  ;;  %v670_v61 = vadd.f32 %v666_v24, %v653_v45  ;;  %v1580_v48 = vsel %vm792_vm8, %v5983_v44, %v1579_v35  ;;  %v1822_v19 = vrot.slane %v1816_v8, 4  ;;  %v4657_v45 = vld [vmem:[#allocation5 + $0x10] sm:$0x3f]  ;;  %v5985_v53 = vld [vmem:[#allocation27_spill] sm:$0xff] }
 0x1f9   : > { %v1619_v59 = vrot.slane %v1612_v60, 6  ;;  %v1836_v43 = vmul.f32 %v4297_v41, %v4629_v34  ;;  %v682_v24 = vsel %vm661_vm5, %v5984_v40, %v681_v26  ;;  %v707_v1 = vmul.f32 %v4657_v45, %v5985_v53 }
 0x1fa   : > { %v4635_v0 = vpop.permute.xlu1 %1177  ;;  %1807 = vrot.lane.b32.xlu0 %v1804_v22, %s5897_s9  ;;  %v4664_v60 = vstv %s4599_s4  ;;  %v698_v14 = vrot.slane %v690_v13, 2  ;;  %v1824_v55 = vsel %vm204_vm0, %v1822_v19, %v5852_v39  ;;  %v686_v44 = vadd.f32 %v682_v24, %v670_v61  ;;  %s5328_s4 = sld [smem:[#allocation6 + $0x5a]] }
 0x1fb   : > { %v4676_v22 = vmul.f32 %v4495_v17, %v4664_v60  ;;  %v1685_v40 = vrot.slane %v1678_v4, 1  ;;  %v1718_v53 = vmul.f32 %v4464_v25, %v4189_v15  ;;  %v1842_v19 = vrot.slane %v1836_v43, 5 }
 0x1fc   : > { %1583 = vrot.lane.b32.xlu1 %v1580_v48, %s5895_s2  ;;  %v4661_v35 = vpop.permute.xlu0 %1521  ;;  %v5987_v48 = vrot.slane %v4428_v27, 6  ;;  %v1856_v39 = vmul.f32 %v4508_v10, %v4664_v60  ;;  %v714_v26 = vrot.slane %v707_v1, 2  ;;  %v5989_v27 = vrot.slane %v3698_v21, 2 }
 0x1fd   : > { %5986 = vst [vmem:[#allocation27_spill] sm:$0xff] %v4661_v35  ;;  %v5988_v35 = vld [vmem:[#allocation26_spill] sm:$0xff]  ;;  %v5990_v4 = vrot.slane %v4643_v57, 5  ;;  %v5991_v21 = vrot.slane %v4451_v20, 1  ;;  %v5992_v1 = vrot.slane %v3712_v36, 2 }
 0x1fe   : > { %v4668_v8 = vpop.permute.xlu1 %1217  ;;  %1827 = vrot.lane.b32.xlu0 %v1824_v55, %s5897_s9  ;;  %v1620_v13 = vsel %vm825_vm9, %v5987_v48, %v1619_v59  ;;  %v723_v61 = vmul.f32 %v5988_v35, %v4189_v15  ;;  %v4692_v55 = vstv %s4631_s18  ;;  %v699_v59 = vsel %vm694_vm6, %v5989_v27, %v698_v14  ;;  %s5352_s18 = sld [smem:[#allocation6 + $0x30]] }
 0x1ff   : > { %v1844_v43 = vsel %vm792_vm8, %v1842_v19, %v5990_v4  ;;  %v4705_v35 = vmul.f32 %v4574_v30, %v4692_v55  ;;  %v703_v48 = vadd.f32 %v699_v59, %v686_v44  ;;  %v1686_v14 = vsel %vm661_vm5, %v5991_v21, %v1685_v40 }
 0x200   : > { %1623 = vrot.lane.b32.xlu1 %v1620_v13, %s5895_s2  ;;  %v4689_v24 = vpop.permute.xlu0 %1561  ;;  %v1725_v13 = vrot.slane %v1718_v53, 2  ;;  %v1738_v27 = vmul.f32 %v4657_v45, %v4487_v28  ;;  %v1862_v19 = vrot.slane %v1856_v39, 5  ;;  %v1876_v4 = vmul.f32 %v4297_v41, %v4692_v55  ;;  %s4726_s2 = sld [smem:[#allocation6 + $0x5]] }
 0x201   : > { %v715_v44 = vsel %vm694_vm6, %v5992_v1, %v714_v26  ;;  %v740_v59 = vmul.f32 %v4657_v45, %v3589_v2  ;;  %v4724_v40 = vstv %s4666_s24  ;;  %v731_v28 = vrot.slane %v723_v61, 3  ;;  %s5371_s24 = sld [smem:[#allocation6 + $0x61]] }
 0x202   : > { %v4697_v25 = vpop.permute.xlu1 %1257  ;;  %1847 = vrot.lane.b32.xlu0 %v1844_v43, %s5897_s9  ;;  %v5993_v39 = vrot.slane %v4676_v22, 5  ;;  %v4736_v26 = vmul.f32 %v4495_v17, %v4724_v40  ;;  %v719_v2 = vadd.f32 %v715_v44, %v703_v48  ;;  %v5994_v1 = vrot.slane %v4474_v31, 2 }
 0x203   : > { %v1745_v61 = vrot.slane %v1738_v27, 2  ;;  %v747_v36 = vrot.slane %v740_v59, 3  ;;  %v5995_v31 = vrot.slane %v3736_v50, 3 }
 0x204   : > { %1689 = vrot.lane.b32.xlu1 %v1686_v14, %s5897_s9  ;;  %v4721_v20 = vpop.permute.xlu0 %1601  ;;  %v1864_v43 = vsel %vm792_vm8, %v1862_v19, %v5993_v39  ;;  %v1726_v21 = vsel %vm694_vm6, %v5994_v1, %v1725_v13  ;;  %v1758_v14 = vmul.f32 %v4514_v12, %v4189_v15  ;;  %v1882_v19 = vrot.slane %v1876_v4, 6 }
 0x205   : > { %v1896_v39 = vmul.f32 %v4508_v10, %v4724_v40  ;;  %v732_v13 = vsel %vm727_vm7, %v5995_v31, %v731_v28  ;;  %v756_v12 = vmul.f32 %v3571_v52, %v4189_v15  ;;  %v5996_v4 = vrot.slane %v4705_v35, 6 }
 0x206   : > { %v4728_v53 = vpop.permute.xlu1 %1297  ;;  %1867 = vrot.lane.b32.xlu0 %v1864_v43, %s5897_s9  ;;  %v1903_v59 = vrot.slane %v4736_v26, 6  ;;  %v736_v43 = vadd.f32 %v732_v13, %v719_v2  ;;  %v5997_v1 = vrot.slane %v4499_v32, 2  ;;  %v1778_v28 = vmul.f32 %v4657_v45, %v4537_v7 }
 0x207   : > { %v1884_v44 = vsel %vm825_vm9, %v1882_v19, %v5996_v4  ;;  %v862_v52 = vadd.f32 %v4194_v5, %v3926_v29  ;;  %v1902_v31 = vrot.slane %v1896_v39, 6  ;;  %v1915_v4 = vstv %s4726_s2  ;;  %s2761_s2 = sshll.u32 %s3263_s27, 1 }
 0x208   : > { %1729 = vrot.lane.b32.xlu1 %v1726_v21, %s5897_s9  ;;  %v4749_v48 = vpop.permute.xlu0 %1641  ;;  %v1746_v50 = vsel %vm694_vm6, %v5997_v1, %v1745_v61  ;;  %v1765_v21 = vrot.slane %v1758_v14, 3  ;;  %v5998_v32 = vrot.slane %v3752_v46, 3  ;;  %v5999_v61 = vld [vmem:[#allocation28_spill] sm:$0xff]  ;;  %v763_v14 = vrot.slane %v756_v12, 4 }
 0x209   : > { %v772_v7 = vmul.f32 %v4657_v45, %v5999_v61  ;;  %v1904_v5 = vsel %vm825_vm9, %v1902_v31, %v1903_v59  ;;  %v6000_v13 = vrot.slane %v4524_v23, 3  ;;  %v875_v1 = vadd.f32 %v4070_v47, %v862_v52 }
 0x20a   : > { %v4758_v27 = vpop.permute.xlu1 %1337  ;;  %1887 = vrot.lane.b32.xlu0 %v1884_v44, %s5897_s9  ;;  %v748_v2 = vsel %vm727_vm7, %v5998_v32, %v747_v36  ;;  %v1785_v44 = vrot.slane %v1778_v28, 3  ;;  %v1798_v36 = vmul.f32 %v4564_v49, %v4189_v15  ;;  %v788_v12 = vmul.f32 %v3577_v54, %v4189_v15 }
 0x20b   : > { %v752_v39 = vadd.f32 %v748_v2, %v736_v43  ;;  %v1766_v46 = vsel %vm727_vm7, %v6000_v13, %v1765_v21  ;;  %v1916_v43 = vmul.f32 %v4297_v41, %v1915_v4  ;;  %v1928_v31 = vstv %s4751_s19  ;;  %s6055_s19 = smov 16  }
 0x20c   : > { %1749 = vrot.lane.b32.xlu1 %v1746_v50, %s5897_s9  ;;  %v4773_v19 = vpop.permute.xlu0 %1707  ;;  %v4803_v32 = vstv %s4747_s17  ;;  %v779_v23 = vrot.slane %v772_v7, 4  ;;  %v6001_v21 = vrot.slane %v3771_v51, 4  ;;  %v6002_v2 = vrot.slane %v4549_v58, 3  ;;  %s5519_s17 = scalar_lea.vmem [#allocation11], %s2761_s2 }
 0x20d   : > { %v4814_v54 = vmul.f32 %v4574_v30, %v4803_v32  ;;  %v1805_v51 = vrot.slane %v1798_v36, 4  ;;  %v1818_v7 = vmul.f32 %v4657_v45, %v4597_v42  ;;  %v796_v13 = vrot.slane %v788_v12, 5 }
 0x20e   : > { %v4783_v29 = vpop.permute.xlu1 %1377  ;;  %1907 = vrot.lane.b32.xlu0 %v1904_v5, %s5897_s9  ;;  %v764_v49 = vsel %vm204_vm0, %v6001_v21, %v763_v14  ;;  %v1786_v61 = vsel %vm727_vm7, %v6002_v2, %v1785_v44  ;;  %v1942_v5 = vmul.f32 %v4297_v41, %v4803_v32  ;;  %v1929_v58 = vmul.f32 %v4508_v10, %v1928_v31 }
 0x20f   : > { %v768_v52 = vadd.f32 %v764_v49, %v752_v39  ;;  %v805_v39 = vmul.f32 %v4657_v45, %v3626_v18  ;;  %v4832_v44 = vstv %s4776_s6  ;;  %v6003_v42 = vrot.slane %v3787_v62, 4  ;;  %s6056_s6 = smov 32  }
 0x210   : > { %1769 = vrot.lane.b32.xlu1 %v1766_v46, %s5897_s9  ;;  %v890_v50 = vpop.permute.xlu0 %889  ;;  %v4844_v18 = vmul.f32 %v4495_v17, %v4832_v44  ;;  %v1825_v62 = vrot.slane %v1818_v7, 4  ;;  %v1962_v2 = vmul.f32 %v4508_v10, %v4832_v44  ;;  %v4862_v7 = vstv %s4805_s8  ;;  %s6057_s8 = smov 64  }
 0x211   : > { %v895_v47 = vadd.f32 %v890_v50, %v875_v1  ;;  %v1949_v50 = vrot.slane %v4814_v54, 1 }
 0x212   : > { %v4810_v28 = vpop.permute.xlu1 %1443  ;;  %1920 = vrot.lane.b32.xlu0 %v1916_v43, %s3134_s3  ;;  %v6004_v43 = vrot.slane %v4578_v33, 4  ;;  %v821_v33 = vmul.f32 %v3580_v56, %v4189_v15 }
 0x213   : > { %v915_v14 = vadd.f32 %v4301_v38, %v895_v47  ;;  %v780_v38 = vsel %vm204_vm0, %v6003_v42, %v779_v23  ;;  %v1838_v23 = vmul.f32 %v4629_v34, %v4189_v15  ;;  %v1948_v47 = vrot.slane %v1942_v5, 1 }
 0x214   : > { %1789 = vrot.lane.b32.xlu1 %v1786_v61, %s5897_s9  ;;  %v930_v46 = vpop.permute.xlu0 %929  ;;  %v784_v12 = vadd.f32 %v780_v38, %v768_v52  ;;  %v1806_v21 = vsel %vm204_vm0, %v6004_v43, %v1805_v51  ;;  %v812_v61 = vrot.slane %v805_v39, 5  ;;  %v6005_v52 = vrot.slane %v3806_v16, 5 }
 0x215   : > { %v935_v36 = vadd.f32 %v930_v46, %v915_v14  ;;  %v1950_v5 = vsel %vm661_vm5, %v1948_v47, %v1949_v50  ;;  %v1969_v16 = vrot.slane %v4844_v18, 1  ;;  %v4874_v39 = vmul.f32 %v4574_v30, %v4862_v7 }
 0x216   : > { %v4839_v1 = vpop.permute.xlu1 %1483  ;;  %1933 = vrot.lane.b32.xlu0 %v1929_v58, %s3134_s3  ;;  %v797_v14 = vsel %vm792_vm8, %v6005_v52, %v796_v13  ;;  %v6006_v13 = vrot.slane %v4609_v63, 4  ;;  %v1845_v58 = vrot.slane %v1838_v23, 5  ;;  %v1858_v42 = vmul.f32 %v4657_v45, %v4664_v60 }
 0x217   : > { %v955_v49 = vadd.f32 %v4324_v37, %v935_v36  ;;  %v801_v56 = vadd.f32 %v797_v14, %v784_v12  ;;  %v1968_v36 = vrot.slane %v1962_v2, 1  ;;  %v1982_v43 = vmul.f32 %v4297_v41, %v4862_v7 }
 0x218   : > { %1809 = vrot.lane.b32.xlu1 %v1806_v21, %s5897_s9  ;;  %v970_v51 = vpop.permute.xlu0 %969  ;;  %v1826_v46 = vsel %vm204_vm0, %v6006_v13, %v1825_v62  ;;  %v6007_v12 = vrot.slane %v3829_v9, 5  ;;  %v829_v62 = vrot.slane %v821_v33, 6  ;;  %v4892_v47 = vstv %s4834_s5  ;;  %s6059_s5 = smov 80  }
 0x219   : > { %v975_v37 = vadd.f32 %v970_v51, %v955_v49  ;;  %v6008_v49 = vld [vmem:[#allocation29_spill] sm:$0xff]  ;;  %v1970_v2 = vsel %vm661_vm5, %v1968_v36, %v1969_v16  ;;  %v1989_v9 = vrot.slane %v4874_v39, 2  ;;  %v6009_v14 = vrot.slane %v4643_v57, 5 }
 0x21a   : > { %v4866_v34 = vpop.permute.xlu1 %1523  ;;  %1953 = vrot.lane.b32.xlu0 %v1950_v5, %s3134_s3  ;;  %v813_v21 = vsel %vm792_vm8, %v6007_v12, %v812_v61  ;;  %v838_v63 = vmul.f32 %v4657_v45, %v6008_v49  ;;  %v4904_v61 = vmul.f32 %v4495_v17, %v4892_v47  ;;  %v1865_v51 = vrot.slane %v1858_v42, 5 }
 0x21b   : > { %v995_v38 = vadd.f32 %v4347_v11, %v975_v37  ;;  %v817_v52 = vadd.f32 %v813_v21, %v801_v56  ;;  %v1846_v33 = vsel %vm792_vm8, %v6009_v14, %v1845_v58  ;;  %v1878_v37 = vmul.f32 %v4692_v55, %v4189_v15  ;;  %v6010_v56 = vld [vmem:[#allocation30_spill] sm:$0xff] }
 0x21c   : > { %1829 = vrot.lane.b32.xlu1 %v1826_v46, %s5897_s9  ;;  %v1010_v23 = vpop.permute.xlu0 %1009  ;;  %v1988_v13 = vrot.slane %v1982_v43, 2  ;;  %v2002_v46 = vmul.f32 %v4508_v10, %v4892_v47  ;;  %v6011_v36 = vrot.slane %v6010_v56, 6  ;;  %v4920_v21 = vstv %s4864_s16  ;;  %s6060_s16 = smov 96  }
 0x21d   : > { %v1015_v11 = vadd.f32 %v1010_v23, %v995_v38  ;;  %v845_v38 = vrot.slane %v838_v63, 6  ;;  %v2009_v42 = vrot.slane %v4904_v61, 2  ;;  %v4932_v43 = vmul.f32 %v4574_v30, %v4920_v21 }
 0x21e   : > { %v4896_v60 = vpop.permute.xlu1 %1563  ;;  %1973 = vrot.lane.b32.xlu0 %v1970_v2, %s3134_s3  ;;  %v830_v12 = vsel %vm825_vm9, %v6011_v36, %v829_v62  ;;  %v6012_v63 = vrot.slane %v4676_v22, 5  ;;  %v1885_v23 = vrot.slane %v1878_v37, 6  ;;  %v6013_v2 = vld [vmem:[#allocation43_spill] sm:$0xff]  ;;  %v4948_v22 = vstv %s4894_s25  ;;  %s6061_s25 = smov 112  }
 0x21f   : > { %v1035_v5 = vadd.f32 %v4370_v3, %v1015_v11  ;;  %v1990_v3 = vsel %vm694_vm6, %v1988_v13, %v1989_v9  ;;  %v834_v49 = vadd.f32 %v830_v12, %v817_v52  ;;  %v1898_v11 = vmul.f32 %v4657_v45, %v4724_v40  ;;  %v6014_v13 = vld [vmem:[#allocation31_spill] sm:$0xff] }
 0x220   : > { %1849 = vrot.lane.b32.xlu1 %v1846_v33, %s5897_s9  ;;  %v1050_v57 = vpop.permute.xlu0 %1049  ;;  %v1866_v62 = vsel %vm792_vm8, %v6012_v63, %v1865_v51  ;;  %v2008_v33 = vrot.slane %v2002_v46, 2  ;;  %v6015_v52 = vrot.slane %v6014_v13, 6  ;;  %v5855_v46 = vrot.slane %v4932_v43, 3  ;;  %v6017_v63 = vld [vmem:[#allocation45_spill] sm:$0xff] }
 0x221   : > { %v1055_v58 = vadd.f32 %v1050_v57, %v1035_v5  ;;  %v2022_v5 = vmul.f32 %v4297_v41, %v4920_v21  ;;  %v4960_v12 = vmul.f32 %v4495_v17, %v4948_v22  ;;  %v6016_v57 = vrot.slane %v4705_v35, 6  ;;  %v6019_v35 = vld [vmem:[#allocation35_spill] sm:$0xff] }
 0x222   : > { %v4924_v55 = vpop.permute.xlu1 %1603  ;;  %1993 = vrot.lane.b32.xlu0 %v1990_v3, %s3134_s3  ;;  %v846_v56 = vsel %vm825_vm9, %v6015_v52, %v845_v38  ;;  %v2010_v37 = vsel %vm694_vm6, %v2008_v33, %v2009_v42  ;;  %v1905_v3 = vrot.slane %v1898_v11, 6  ;;  %v6018_v33 = vld [vmem:[#allocation42_spill] sm:$0xff] }
 0x223   : > { %v1075_v14 = vadd.f32 %v6013_v2, %v1055_v58  ;;  %v850_v38 = vadd.f32 %v846_v56, %v834_v49  ;;  %v1886_v58 = vsel %vm825_vm9, %v6016_v57, %v1885_v23  ;;  %v2028_v2 = vrot.slane %v2022_v5, 3 }
 0x224   : > { %1869 = vrot.lane.b32.xlu1 %v1866_v62, %s5897_s9  ;;  %v1090_v36 = vpop.permute.xlu0 %1089  ;;  %v4972_v49 = vstv %s4922_s23  ;;  %v5853_v56 = vrot.slane %v4960_v12, 3  ;;  %s6090_s23 = sld [smem:[#allocation18_spill]] }
 0x225   : > { %v1095_v51 = vadd.f32 %v1090_v36, %v1075_v14  ;;  %v2042_v14 = vmul.f32 %v4508_v10, %v4948_v22  ;;  %v863_v13 = vadd.f32 %v6018_v33, %v850_v38  ;;  %v2030_v5 = vsel %vm727_vm7, %v2028_v2, %v5855_v46 }
 0x226   : > { %v4952_v40 = vpop.permute.xlu1 %1643  ;;  %2013 = vrot.lane.b32.xlu0 %v2010_v37, %s3134_s3  ;;  %v4985_v36 = vmul.f32 %v4574_v30, %v4972_v49  ;;  %v6020_v37 = vld [vmem:[#allocation32_spill] sm:$0xff]  ;;  %v1917_v33 = vmul.f32 %v4574_v30, %v1915_v4  ;;  %v1944_v4 = vmul.f32 %v4803_v32, %v4189_v15  ;;  %v5045_v46 = vstv %s5002_s30  ;;  %s2657_s30 = sshll.u32 %s5519_s17, 4  ;;  %s2658_s30 = int_to_ptr.vmem [resolvable:$true] %s2657_s30 }
 0x227   : > { %v1115_v62 = vadd.f32 %v6017_v63, %v1095_v51  ;;  %v1906_v51 = vsel %vm825_vm9, %v1903_v59, %v1905_v3  ;;  %v2048_v57 = vrot.slane %v2042_v14, 3  ;;  %v6021_v63 = vld [vmem:[#allocation38_spill] sm:$0xff] }
 0x228   : > { %1889 = vrot.lane.b32.xlu1 %v1886_v58, %s5897_s9  ;;  %v1156_v52 = vpop.permute.xlu0 %1155  ;;  %v2062_v58 = vmul.f32 %v4297_v41, %v4972_v49  ;;  %v5854_v14 = vrot.slane %v4985_v36, 4 }
 0x229   : > { %v1128_v23 = vadd.f32 %v6019_v35, %v1115_v62  ;;  %v876_v62 = vadd.f32 %v6021_v63, %v863_v13  ;;  %v5000_v35 = vstv %s4950_s26  ;;  %v2050_v3 = vsel %vm727_vm7, %v2048_v57, %v5853_v56  ;;  %s6094_s26 = sld [smem:[#allocation23_spill]] }
 0x22a   : > { %v4977_v11 = vpop.permute.xlu1 %1709  ;;  %2033 = vrot.lane.b32.xlu0 %v2030_v5, %s3134_s3  ;;  %v5010_v13 = vmul.f32 %v4495_v17, %v5000_v35  ;;  %v6022_v5 = vld [vmem:[#allocation47_spill] sm:$0xff]  ;;  %v1930_v56 = vmul.f32 %v4495_v17, %v1928_v31  ;;  %v1951_v31 = vrot.slane %v1944_v4, 1 }
 0x22b   : > { %v1141_v38 = vadd.f32 %v6020_v37, %v1128_v23  ;;  %v2082_v37 = vmul.f32 %v4508_v10, %v5000_v35 }
 0x22c   : > { %1909 = vrot.lane.b32.xlu1 %v1906_v51, %s5897_s9  ;;  %v1196_v2 = vpop.permute.xlu0 %1195  ;;  %s5026_s9 = sld [smem:[#allocation6 + $0x2f]] }
 0x22d   : > { %v1161_v26 = vadd.f32 %v1156_v52, %v1141_v38  ;;  %v2068_v52 = vrot.slane %v2062_v58, 4  ;;  %v6023_v38 = vld [vmem:[#allocation50_spill] sm:$0xff] }
 0x22e   : > { %v892_v59 = vpop.permute.xlu1 %891  ;;  %2053 = vrot.lane.b32.xlu0 %v2050_v3, %s3134_s3  ;;  %v1964_v3 = vmul.f32 %v4657_v45, %v4832_v44 }
 0x22f   : > { %v896_v23 = vadd.f32 %v892_v59, %v876_v62  ;;  %v1181_v51 = vadd.f32 %v6022_v5, %v1161_v26  ;;  %v5024_v62 = vstv %s4974_s29  ;;  %v2070_v58 = vsel %vm204_vm0, %v2068_v52, %v5854_v14  ;;  %v6025_v52 = vld [vmem:[#allocation52_spill] sm:$0xff]  ;;  %s2867_s29 = sshll.u32 %s6090_s23, 5  ;;  %p6101_p4 = scmp.ne.s32.totalorder %s6094_s26, 0 }
 0x230   : > { %1922 = vrot.lane.b32.xlu1 %v1917_v33, %s3134_s3  ;;  %v1236_v63 = vpop.permute.xlu0 %1235  ;;  %v5857_v33 = vrot.slane %v5010_v13, 4  ;;  %v5034_v26 = vmul.f32 %v4574_v30, %v5024_v62  ;;  %v2088_v5 = vrot.slane %v2082_v37, 4  ;;  %v5055_v37 = vmul.f32 %v4495_v17, %v5045_v46 }
 0x231   : > { %v916_v57 = vadd.f32 %v6023_v38, %v896_v23  ;;  %v1201_v15 = vadd.f32 %v1196_v2, %v1181_v51  ;;  %v6024_v23 = vld [vmem:[#allocation49_spill] sm:$0xff]  ;;  %v2102_v51 = vmul.f32 %v4297_v41, %v5024_v62 }
 0x232   : > { %v932_v32 = vpop.permute.xlu1 %931  ;;  %2073 = vrot.lane.b32.xlu0 %v2070_v58, %s3134_s3  ;;  %v2090_v44 = vsel %vm204_vm0, %v2088_v5, %v5857_v33  ;;  %v5061_v58 = vld [vmem:[#allocation4 + $0x10] sm:$0x3f]  ;;  %v5071_v54 = vstv %s5026_s9 }
 0x233   : > { %v936_v59 = vadd.f32 %v932_v32, %v916_v57  ;;  %v1221_v2 = vadd.f32 %v6024_v23, %v1201_v15  ;;  %v1952_v32 = vsel %vm661_vm5, %v1949_v50, %v1951_v31  ;;  %v6026_v23 = vld [vmem:[#allocation51_spill] sm:$0xff]  ;;  %v2108_v5 = vrot.slane %v2102_v51, 5 }
 0x234   : > { %1935 = vrot.lane.b32.xlu1 %v1930_v56, %s3134_s3  ;;  %v1276_v14 = vpop.permute.xlu0 %1275  ;;  %v5856_v56 = vrot.slane %v5034_v26, 5  ;;  %v5079_v51 = vmul.f32 %v4574_v30, %v5071_v54 }
 0x235   : > { %v956_v38 = vadd.f32 %v6025_v52, %v936_v59  ;;  %v1241_v57 = vadd.f32 %v1236_v63, %v1221_v2  ;;  %v1971_v63 = vrot.slane %v1964_v3, 1  ;;  %v1984_v59 = vmul.f32 %v5061_v58, %v4862_v7 }
 0x236   : > { %v972_v4 = vpop.permute.xlu1 %971  ;;  %2093 = vrot.lane.b32.xlu0 %v2090_v44, %s3134_s3  ;;  %v2122_v52 = vmul.f32 %v4508_v10, %v5045_v46  ;;  %v2110_v7 = vsel %vm792_vm8, %v2108_v5, %v5856_v56  ;;  %v2129_v3 = vrot.slane %v5055_v37, 5  ;;  %v6029_v56 = vld [vmem:[#allocation56_spill] sm:$0xff] }
 0x237   : > { %v976_v15 = vadd.f32 %v972_v4, %v956_v38  ;;  %v1261_v2 = vadd.f32 %v6026_v23, %v1241_v57  ;;  %v6027_v38 = vld [vmem:[#allocation54_spill] sm:$0xff]  ;;  %v6028_v23 = vld [vmem:[#allocation53_spill] sm:$0xff] }
 0x238   : > { %1955 = vrot.lane.b32.xlu1 %v1952_v32, %s3134_s3  ;;  %v1316_v44 = vpop.permute.xlu0 %1315  ;;  %v2004_v32 = vmul.f32 %v4657_v45, %v4892_v47  ;;  %v2128_v5 = vrot.slane %v2122_v52, 5  ;;  %v2149_v47 = vrot.slane %v5079_v51, 6  ;;  %v2024_v52 = vmul.f32 %v5061_v58, %v4920_v21  ;;  %v6045_v51 = vld [vmem:[#allocation37_spill] sm:$0xff] }
 0x239   : > { %v996_v4 = vadd.f32 %v6027_v38, %v976_v15  ;;  %v1281_v50 = vadd.f32 %v1276_v14, %v1261_v2  ;;  %v1972_v15 = vsel %vm661_vm5, %v1969_v16, %v1971_v63  ;;  %v1991_v14 = vrot.slane %v1984_v59, 2 }
 0x23a   : > { %v1012_v31 = vpop.permute.xlu1 %1011  ;;  %2113 = vrot.lane.b32.xlu0 %v2110_v7, %s3134_s3  ;;  %v2142_v38 = vmul.f32 %v4297_v41, %v5071_v54  ;;  %v5093_v7 = vstv %s5047_s21  ;;  %v2130_v16 = vsel %vm792_vm8, %v2128_v5, %v2129_v3  ;;  %v2011_v59 = vrot.slane %v2004_v32, 2 }
 0x23b   : > { %v1016_v57 = vadd.f32 %v1012_v31, %v996_v4  ;;  %v1301_v2 = vadd.f32 %v6028_v23, %v1281_v50  ;;  %v5101_v63 = vmul.f32 %v4495_v17, %v5093_v7  ;;  %v6031_v23 = vld [vmem:[#allocation58_spill] sm:$0xff] }
 0x23c   : > { %1975 = vrot.lane.b32.xlu1 %v1972_v15, %s3134_s3  ;;  %v1356_v31 = vpop.permute.xlu0 %1355  ;;  %v2162_v15 = vmul.f32 %v4508_v10, %v5093_v7  ;;  %v2012_v32 = vsel %vm694_vm6, %v2009_v42, %v2011_v59  ;;  %v6035_v59 = vld [vmem:[#allocation44_spill] sm:$0xff] }
 0x23d   : > { %v1036_v4 = vadd.f32 %v6029_v56, %v1016_v57  ;;  %v1321_v18 = vadd.f32 %v1316_v44, %v1301_v2  ;;  %v1992_v56 = vsel %vm694_vm6, %v1989_v9, %v1991_v14  ;;  %v6030_v44 = vld [vmem:[#allocation55_spill] sm:$0xff]  ;;  %v2148_v57 = vrot.slane %v2142_v38, 6 }
 0x23e   : > { %v1052_v33 = vpop.permute.xlu1 %1051  ;;  %2133 = vrot.lane.b32.xlu0 %v2130_v16, %s3134_s3  ;;  %v2169_v21 = vrot.slane %v5101_v63, 6  ;;  %v2031_v38 = vrot.slane %v2024_v52, 3  ;;  %v2168_v16 = vrot.slane %v2162_v15, 6  ;;  %v6036_v15 = vrot.slane %v4932_v43, 3 }
 0x23f   : > { %v1056_v41 = vadd.f32 %v1052_v33, %v1036_v4  ;;  %v1341_v50 = vadd.f32 %v6030_v44, %v1321_v18  ;;  %v2150_v9 = vsel %vm825_vm9, %v2148_v57, %v2149_v47  ;;  %v2044_v4 = vmul.f32 %v4657_v45, %v4948_v22 }
 0x240   : > { %1995 = vrot.lane.b32.xlu1 %v1992_v56, %s3134_s3  ;;  %v1422_v2 = vpop.permute.xlu0 %1421  ;;  %v2170_v42 = vsel %vm825_vm9, %v2168_v16, %v2169_v21  ;;  %v2181_v22 = vstv %s5103_s15  ;;  %s6099_s15 = sld [smem:[#allocation63_spill]] }
 0x241   : > { %v1076_v33 = vadd.f32 %v6031_v23, %v1056_v41  ;;  %v1361_v39 = vadd.f32 %v1356_v31, %v1341_v50  ;;  %v6032_v31 = vld [vmem:[#allocation57_spill] sm:$0xff]  ;;  %v6033_v41 = vld [vmem:[#allocation60_spill] sm:$0xff]  ;;  %v2032_v23 = vsel %vm727_vm7, %v6036_v15, %v2031_v38  ;;  %v2194_v38 = vstv %s5122_s10  ;;  %s2643_s10 = scalar_lea.sflag [#allocation8], %s3263_s27 }
 0x242   : > { %v1092_v5 = vpop.permute.xlu1 %1091  ;;  %2153 = vrot.lane.b32.xlu0 %v2150_v9, %s3134_s3  ;;  %v6034_v50 = vld [vmem:[#allocation36_spill] sm:$0xff] }
 0x243   : > { %v1096_v14 = vadd.f32 %v1092_v5, %v1076_v33  ;;  %v1381_v18 = vadd.f32 %v6032_v31, %v1361_v39  ;;  %v2051_v33 = vrot.slane %v2044_v4, 3  ;;  %v2064_v39 = vmul.f32 %v5061_v58, %v4972_v49  ;;  %v6037_v5 = vld [vmem:[#allocation33_spill] sm:$0xff] }
 0x244   : > { %2015 = vrot.lane.b32.xlu1 %v2012_v32, %s3134_s3  ;;  %v1462_v44 = vpop.permute.xlu0 %1461 }
 0x245   : > { %v1116_v56 = vadd.f32 %v6033_v41, %v1096_v14  ;;  %v1394_v61 = vadd.f32 %v6034_v50, %v1381_v18  ;;  %v6038_v14 = vld [vmem:[#allocation39_spill] sm:$0xff]  ;;  %v5150_v18 = vld [vmem:[#allocation4] sm:$0xff]  ;;  %v5156_v41 = vstv %s5116_s0  ;;  %v6039_v50 = vrot.slane %v4960_v12, 3 }
 0x246   : > { %v1158_v57 = vpop.permute.xlu1 %1157  ;;  %2173 = vrot.lane.b32.xlu0 %v2170_v42, %s3134_s3  ;;  %v2182_v16 = vmul.f32 %v5150_v18, %v2181_v22  ;;  %v5163_v4 = vmul.f32 %v4574_v30, %v5156_v41  ;;  %v2071_v42 = vrot.slane %v2064_v39, 4  ;;  %v2208_v15 = vmul.f32 %v5150_v18, %v5156_v41  ;;  %s5733_s0 = scalar_lea.hbm %s6099_s15, %s2867_s29 }
 0x247   : > { %v1129_v52 = vadd.f32 %v6035_v59, %v1116_v56  ;;  %v1407_v9 = vadd.f32 %v6037_v5, %v1394_v61  ;;  %v2052_v61 = vsel %vm727_vm7, %v6039_v50, %v2051_v33  ;;  %v2084_v59 = vmul.f32 %v4657_v45, %v5000_v35 }
 0x248   : > { %2035 = vrot.lane.b32.xlu1 %v2032_v23, %s3134_s3  ;;  %v1502_v31 = vpop.permute.xlu0 %1501  ;;  %v2195_v5 = vmul.f32 %v4508_v10, %v2194_v38  ;;  %v5180_v12 = vstv %s5133_s11  ;;  %v2215_v39 = vrot.slane %v5163_v4, 1  ;;  %s3024_s11 = scalar_lea.vmem %s2658_s30, 32 }
 0x249   : > { %v1142_v32 = vadd.f32 %v6038_v14, %v1129_v52  ;;  %v1427_v43 = vadd.f32 %v1422_v2, %v1407_v9  ;;  %v6040_v2 = vld [vmem:[#allocation59_spill] sm:$0xff]  ;;  %v5187_v9 = vmul.f32 %v4495_v17, %v5180_v12  ;;  %v2228_v50 = vmul.f32 %v4508_v10, %v5180_v12  ;;  %p3025_p1 = scmp.ne.s32.totalorder %s2658_s30, %s3024_s11 }
 0x24a   : > { %v1198_v49 = vpop.permute.xlu1 %1197  ;;  %2186 = vrot.lane.b32.xlu0 %v2182_v16, %s3135_s12  ;;  %v2091_v16 = vrot.slane %v2084_v59, 4 }
 0x24b   : > { %v1162_v56 = vadd.f32 %v1158_v57, %v1142_v32  ;;  %v1447_v52 = vadd.f32 %v6040_v2, %v1427_v43  ;;  %v2104_v43 = vmul.f32 %v5061_v58, %v5024_v62  ;;  %v5201_v2 = vstv %s5158_s7  ;;  %p3026_p6 = pnand %p3025_p1, %p6101_p4  ;;  %s3136_s7 = smov [#allocation11]  }
 0x24c   : > { %2055 = vrot.lane.b32.xlu1 %v2052_v61, %s3134_s3  ;;  %v1542_v23 = vpop.permute.xlu0 %1541  ;;  %v2235_v62 = vrot.slane %v5187_v9, 1  ;;  %v5211_v59 = vmul.f32 %v4574_v30, %v5201_v2  ;;  %v5418_v9 = vstv %s5371_s24 }
 0x24d   : > { %v1182_v57 = vadd.f32 %v4635_v0, %v1162_v56  ;;  %v1467_v33 = vadd.f32 %v1462_v44, %v1447_v52  ;;  %v6041_v0 = vrot.slane %v4985_v36, 4  ;;  %v2214_v56 = vrot.slane %v2208_v15, 1  ;;  %p3027_p8 = pneg %p3026_p6 }
 0x24e   : > { %v1238_v35 = vpop.permute.xlu1 %1237  ;;  %2199 = vrot.lane.b32.xlu0 %v2195_v5, %s3135_s12  ;;  %v6043_v5 = vld [vmem:[#allocation27_spill] sm:$0xff] }
 0x24f   : > { %v1202_v14 = vadd.f32 %v1198_v49, %v1182_v57  ;;  %v2072_v32 = vsel %vm204_vm0, %v6041_v0, %v2071_v42  ;;  %v1487_v44 = vadd.f32 %v4626_v6, %v1467_v33  ;;  %v2216_v6 = vsel %vm661_vm5, %v2214_v56, %v2215_v39 }
 0x250   : > { %2075 = vrot.lane.b32.xlu1 %v2072_v32, %s3134_s3  ;;  %v1582_v61 = vpop.permute.xlu0 %1581  ;;  %v2124_v57 = vmul.f32 %v4657_v45, %v5045_v46  ;;  %v2248_v0 = vmul.f32 %v5150_v18, %v5201_v2 }
 0x251   : > { %v1222_v49 = vadd.f32 %v4668_v8, %v1202_v14  ;;  %v1507_v36 = vadd.f32 %v1502_v31, %v1487_v44  ;;  %v6042_v8 = vrot.slane %v5010_v13, 4  ;;  %v2111_v31 = vrot.slane %v2104_v43, 5 }
 0x252   : > { %v1278_v42 = vpop.permute.xlu1 %1277  ;;  %2219 = vrot.lane.b32.xlu0 %v2216_v6, %s3135_s12  ;;  %v2234_v14 = vrot.slane %v2228_v50, 1  ;;  %v5225_v44 = vstv %s5182_s13  ;;  %v2255_v43 = vrot.slane %v5211_v59, 2 }
 0x253   : > { %v1242_v52 = vadd.f32 %v1238_v35, %v1222_v49  ;;  %v2092_v15 = vsel %vm204_vm0, %v6042_v8, %v2091_v16  ;;  %v1527_v33 = vadd.f32 %v6043_v5, %v1507_v36  ;;  %v5235_v56 = vmul.f32 %v4495_v17, %v5225_v44 }
 0x254   : > { %2095 = vrot.lane.b32.xlu1 %v2092_v15, %s3134_s3  ;;  %v1622_v32 = vpop.permute.xlu0 %1621  ;;  %v2236_v46 = vsel %vm661_vm5, %v2234_v14, %v2235_v62  ;;  %v2144_v36 = vmul.f32 %v5061_v58, %v5071_v54  ;;  %v2268_v17 = vmul.f32 %v4508_v10, %v5225_v44  ;;  %v5249_v15 = vstv %s5203_s14 }
 0x255   : > { %v1262_v35 = vadd.f32 %v4697_v25, %v1242_v52  ;;  %v1547_v13 = vadd.f32 %v1542_v23, %v1527_v33  ;;  %v6044_v25 = vrot.slane %v5034_v26, 5  ;;  %v2131_v23 = vrot.slane %v2124_v57, 5 }
 0x256   : > { %v1318_v16 = vpop.permute.xlu1 %1317  ;;  %2239 = vrot.lane.b32.xlu0 %v2236_v46, %s3135_s12  ;;  %v2254_v52 = vrot.slane %v2248_v0, 2  ;;  %v2275_v54 = vrot.slane %v5235_v56, 2  ;;  %v5259_v57 = vmul.f32 %v4574_v30, %v5249_v15  ;;  %v2164_v5 = vmul.f32 %v4657_v45, %v5093_v7  ;;  %v5281_v46 = vld [vmem:[#allocation5 + $0x8] sm:$0xff] }
 0x257   : > { %v1282_v50 = vadd.f32 %v1278_v42, %v1262_v35  ;;  %v2112_v49 = vsel %vm792_vm8, %v6044_v25, %v2111_v31  ;;  %v1567_v6 = vadd.f32 %v4689_v24, %v1547_v13  ;;  %v2274_v14 = vrot.slane %v2268_v17, 2 }
 0x258   : > { %2115 = vrot.lane.b32.xlu1 %v2112_v49, %s3134_s3  ;;  %v1688_v8 = vpop.permute.xlu0 %1687  ;;  %v2256_v24 = vsel %vm694_vm6, %v2254_v52, %v2255_v43  ;;  %v2288_v0 = vmul.f32 %v5150_v18, %v5249_v15  ;;  %v2295_v7 = vrot.slane %v5259_v57, 3  ;;  %v2171_v25 = vrot.slane %v2164_v5, 6 }
 0x259   : > { %v1302_v42 = vadd.f32 %v4728_v53, %v1282_v50  ;;  %v1587_v26 = vadd.f32 %v1582_v61, %v1567_v6  ;;  %v2132_v53 = vsel %vm792_vm8, %v2129_v3, %v2131_v23  ;;  %v2151_v61 = vrot.slane %v2144_v36, 6  ;;  %v5293_v36 = vld [vmem:[#allocation5] sm:$0xff] }
 0x25a   : > { %v1358_v31 = vpop.permute.xlu1 %1357  ;;  %2259 = vrot.lane.b32.xlu0 %v2256_v24, %s3135_s12  ;;  %v2294_v23 = vrot.slane %v2288_v0, 3  ;;  %v6048_v0 = vld [vmem:[#allocation40_spill] sm:$0xff] }
 0x25b   : > { %v1322_v10 = vadd.f32 %v1318_v16, %v1302_v42  ;;  %v1607_v33 = vadd.f32 %v4721_v20, %v1587_v26  ;;  %v5273_v16 = vstv %s5227_s20  ;;  %v2276_v20 = vsel %vm694_vm6, %v2274_v14, %v2275_v54 }
 0x25c   : > { %2135 = vrot.lane.b32.xlu1 %v2132_v53, %s3134_s3  ;;  %v1728_v13 = vpop.permute.xlu0 %1727  ;;  %v5285_v50 = vmul.f32 %v5281_v46, %v5273_v16  ;;  %v2308_v6 = vmul.f32 %v5293_v36, %v5273_v16  ;;  %v5299_v42 = vstv %s5251_s22  ;;  %v2296_v26 = vsel %vm727_vm7, %v2294_v23, %v2295_v7 }
 0x25d   : > { %v1342_v35 = vadd.f32 %v4758_v27, %v1322_v10  ;;  %v1627_v37 = vadd.f32 %v1622_v32, %v1607_v33  ;;  %v2152_v32 = vsel %vm825_vm9, %v2149_v47, %v2151_v61  ;;  %v5310_v24 = vmul.f32 %v4574_v30, %v5299_v42  ;;  %v6047_v61 = vld [vmem:[#allocation34_spill] sm:$0xff] }
 0x25e   : > { %v1424_v3 = vpop.permute.xlu1 %1423  ;;  %2279 = vrot.lane.b32.xlu0 %v2276_v20, %s3135_s12  ;;  %v2172_v53 = vsel %vm825_vm9, %v2169_v21, %v2171_v25  ;;  %v2314_v33 = vrot.slane %v2308_v6, 3  ;;  %v2328_v14 = vmul.f32 %v5150_v18, %v5299_v42  ;;  %v2183_v20 = vmul.f32 %v4574_v30, %v2181_v22 }
 0x25f   : > { %v1362_v27 = vadd.f32 %v1358_v31, %v1342_v35  ;;  %v1647_v49 = vadd.f32 %v4749_v48, %v1627_v37  ;;  %v2315_v31 = vrot.slane %v5285_v50, 3  ;;  %v2335_v25 = vrot.slane %v5310_v24, 4 }
 0x260   : > { %2155 = vrot.lane.b32.xlu1 %v2152_v32, %s3134_s3  ;;  %v1748_v17 = vpop.permute.xlu0 %1747  ;;  %v2210_v30 = vmul.f32 %v5061_v58, %v5156_v41 }
 0x261   : > { %v1382_v52 = vadd.f32 %v4783_v29, %v1362_v27  ;;  %v1660_v47 = vadd.f32 %v6045_v51, %v1647_v49  ;;  %v6046_v29 = vld [vmem:[#allocation46_spill] sm:$0xff]  ;;  %v5326_v27 = vstv %s5275_s1  ;;  %v2316_v32 = vsel %vm727_vm7, %v2314_v33, %v2315_v31 }
 0x262   : > { %v1464_v48 = vpop.permute.xlu1 %1463  ;;  %2299 = vrot.lane.b32.xlu0 %v2296_v26, %s3135_s12  ;;  %v5336_v49 = vmul.f32 %v5281_v46, %v5326_v27  ;;  %v2348_v6 = vmul.f32 %v5293_v36, %v5326_v27 }
 0x263   : > { %v1395_v10 = vadd.f32 %v6046_v29, %v1382_v52  ;;  %v1673_v5 = vadd.f32 %v6047_v61, %v1660_v47  ;;  %v2196_v47 = vmul.f32 %v5281_v46, %v2194_v38  ;;  %v2217_v38 = vrot.slane %v2210_v30, 1 }
 0x264   : > { %2175 = vrot.lane.b32.xlu1 %v2172_v53, %s3134_s3  ;;  %v1768_v37 = vpop.permute.xlu0 %1767  ;;  %v2355_v29 = vrot.slane %v5336_v49, 4  ;;  %v2230_v61 = vmul.f32 %v4657_v45, %v5180_v12  ;;  %s6058_s3 = smov 48  }
 0x265   : > { %v1408_v35 = vadd.f32 %v6048_v0, %v1395_v10  ;;  %v1693_v63 = vadd.f32 %v1688_v8, %v1673_v5  ;;  %v2334_v8 = vrot.slane %v2328_v14, 4  ;;  %v2983_v10 = vld [vmem:[#allocation4 + $0x8] sm:$0xff]  ;;  %v2354_v5 = vrot.slane %v2348_v6, 4 }
 0x266   : > { %v1504_v21 = vpop.permute.xlu1 %1503  ;;  %2319 = vrot.lane.b32.xlu0 %v2316_v32, %s3135_s12  ;;  %v2250_v32 = vmul.f32 %v5061_v58, %v5201_v2  ;;  %v5392_v6 = vstv %s5352_s18 }
 0x267   : > { %v1428_v23 = vadd.f32 %v1424_v3, %v1408_v35  ;;  %v1713_v22 = vadd.f32 %v4773_v19, %v1693_v63  ;;  %v5350_v3 = vstv %s5301_s28  ;;  %v2336_v19 = vsel %vm204_vm0, %v2334_v8, %v2335_v25 }
 0x268   : > { %2188 = vrot.lane.b32.xlu1 %v2183_v20, %s3135_s12  ;;  %v1788_v51 = vpop.permute.xlu0 %1787  ;;  %v2368_v33 = vmul.f32 %v5150_v18, %v5350_v3  ;;  %v5369_v35 = vstv %s5328_s4  ;;  %v2356_v45 = vsel %vm204_vm0, %v2354_v5, %v2355_v29  ;;  %v2370_v50 = vmul.f32 %v5061_v58, %v5350_v3 }
 0x269   : > { %v1448_v52 = vadd.f32 %v4810_v28, %v1428_v23  ;;  %v1733_v26 = vadd.f32 %v1728_v13, %v1713_v22  ;;  %v5359_v28 = vmul.f32 %v2983_v10, %v5350_v3  ;;  %v2388_v22 = vmul.f32 %v5293_v36, %v5369_v35 }
 0x26a   : > { %v1544_v41 = vpop.permute.xlu1 %1543  ;;  %2339 = vrot.lane.b32.xlu0 %v2336_v19, %s3135_s12  ;;  %v2374_v30 = vrot.slane %v2368_v33, 5  ;;  %v5405_v19 = vld [vmem:[#allocation5 + $0x10] sm:$0x3f]  ;;  %v5426_v33 = vmul.f32 %v5281_v46, %v5418_v9  ;;  %v2410_v49 = vmul.f32 %v5061_v58, %v5392_v6 }
 0x26b   : > { %v1468_v53 = vadd.f32 %v1464_v48, %v1448_v52  ;;  %v1753_v13 = vadd.f32 %v1748_v17, %v1733_v26  ;;  %v2375_v12 = vrot.slane %v5359_v28, 5  ;;  %v5379_v17 = vmul.f32 %v5281_v46, %v5369_v35 }
 0x26c   : > { %2201 = vrot.lane.b32.xlu1 %v2196_v47, %s3135_s12  ;;  %v1808_v0 = vpop.permute.xlu0 %1807  ;;  %v2257_v26 = vrot.slane %v2250_v32, 2  ;;  %v2350_v57 = vmul.f32 %v5405_v19, %v5326_v27  ;;  %v2390_v24 = vmul.f32 %v5405_v19, %v5369_v35 }
 0x26d   : > { %v1488_v14 = vadd.f32 %v4839_v1, %v1468_v53  ;;  %v1773_v48 = vadd.f32 %v1768_v37, %v1753_v13  ;;  %v2218_v1 = vsel %vm661_vm5, %v2215_v39, %v2217_v38  ;;  %v2237_v37 = vrot.slane %v2230_v61, 1 }
 0x26e   : > { %v1584_v20 = vpop.permute.xlu1 %1583  ;;  %2359 = vrot.lane.b32.xlu0 %v2356_v45, %s3135_s12  ;;  %v2376_v39 = vsel %vm792_vm8, %v2374_v30, %v2375_v12  ;;  %v2395_v2 = vrot.slane %v5379_v17, 5  ;;  %v2270_v53 = vmul.f32 %v5405_v19, %v5225_v44  ;;  %v2394_v61 = vrot.slane %v2388_v22, 5 }
 0x26f   : > { %v1508_v63 = vadd.f32 %v1504_v21, %v1488_v14  ;;  %v1793_v23 = vadd.f32 %v1788_v51, %v1773_v48  ;;  %v5399_v51 = vmul.f32 %v2983_v10, %v5392_v6  ;;  %v2428_v45 = vmul.f32 %v5293_v36, %v5418_v9 }
 0x270   : > { %2221 = vrot.lane.b32.xlu1 %v2218_v1, %s3135_s12  ;;  %v1828_v21 = vpop.permute.xlu0 %1827  ;;  %v2396_v5 = vsel %vm792_vm8, %v2394_v61, %v2395_v2 }
 0x271   : > { %v1528_v8 = vadd.f32 %v4866_v34, %v1508_v63  ;;  %v1813_v52 = vadd.f32 %v1808_v0, %v1793_v23  ;;  %v2238_v34 = vsel %vm661_vm5, %v2235_v62, %v2237_v37  ;;  %v2415_v44 = vrot.slane %v5399_v51, 6 }
 0x272   : > { %v1624_v4 = vpop.permute.xlu1 %1623  ;;  %2379 = vrot.lane.b32.xlu0 %v2376_v39, %s3135_s12  ;;  %v2290_v0 = vmul.f32 %v5061_v58, %v5249_v15  ;;  %v2434_v36 = vrot.slane %v2428_v45, 6 }
 0x273   : > { %v1548_v47 = vadd.f32 %v1544_v41, %v1528_v8  ;;  %v5409_v38 = vadd.f32 %v1828_v21, %v1813_v52  ;;  %v2408_v41 = vmul.f32 %v5150_v18, %v5392_v6  ;;  %v2277_v18 = vrot.slane %v2270_v53, 2  ;;  %v6049_v8 = vld [vmem:[#allocation48_spill] sm:$0xff] }
 0x274   : > { %2241 = vrot.lane.b32.xlu1 %v2238_v34, %s3135_s12  ;;  %v5415_v13 = vpop.permute.xlu0 %1847  ;;  %v2297_v37 = vrot.slane %v2290_v0, 3  ;;  %v2330_v21 = vmul.f32 %v5061_v58, %v5299_v42 }
 0x275   : > { %v1568_v10 = vadd.f32 %v4896_v60, %v1548_v47  ;;  %v2258_v60 = vsel %vm694_vm6, %v2255_v43, %v2257_v26  ;;  %v2414_v48 = vrot.slane %v2408_v41, 6  ;;  %v2435_v43 = vrot.slane %v5426_v33, 6 }
 0x276   : > { %v1690_v62 = vpop.permute.xlu1 %1689  ;;  %2399 = vrot.lane.b32.xlu0 %v2396_v5, %s3135_s12  ;;  %v2278_v15 = vsel %vm694_vm6, %v2275_v54, %v2277_v18  ;;  %v2298_v54 = vsel %vm727_vm7, %v2295_v7, %v2297_v37  ;;  %v2337_v26 = vrot.slane %v2330_v21, 4 }
 0x277   : > { %v1588_v14 = vadd.f32 %v1584_v20, %v1568_v10  ;;  %v2416_v59 = vsel %vm825_vm9, %v2414_v48, %v2415_v44  ;;  %v2436_v22 = vsel %vm825_vm9, %v2434_v36, %v2435_v43  ;;  %v2357_v10 = vrot.slane %v2350_v57, 4 }
 0x278   : > { %2261 = vrot.lane.b32.xlu1 %v2258_v60, %s3135_s12  ;;  %v5438_v63 = vpop.permute.xlu0 %1867  ;;  %v2338_v41 = vsel %vm204_vm0, %v2335_v25, %v2337_v26  ;;  %v2397_v48 = vrot.slane %v2390_v24, 5 }
 0x279   : > { %v1608_v46 = vadd.f32 %v4924_v55, %v1588_v14  ;;  %v2310_v55 = vmul.f32 %v5405_v19, %v5273_v16  ;;  %v2377_v14 = vrot.slane %v2370_v50, 5 }
 0x27a   : > { %v1730_v20 = vpop.permute.xlu1 %1729  ;;  %2419 = vrot.lane.b32.xlu0 %v2416_v59, %s3135_s12  ;;  %v2398_v35 = vsel %vm792_vm8, %v2395_v2, %v2397_v48  ;;  %v2430_v59 = vmul.f32 %v5405_v19, %v5418_v9 }
 0x27b   : > { %v1628_v1 = vadd.f32 %v1624_v4, %v1608_v46  ;;  %v2317_v16 = vrot.slane %v2310_v55, 3  ;;  %v2378_v0 = vsel %vm792_vm8, %v2375_v12, %v2377_v14 }
 0x27c   : > { %2281 = vrot.lane.b32.xlu1 %v2278_v15, %s3135_s12  ;;  %v5452_v23 = vpop.permute.xlu0 %1887  ;;  %v2437_v6 = vrot.slane %v2430_v59, 6 }
 0x27d   : > { %v1648_v32 = vadd.f32 %v4952_v40, %v1628_v1  ;;  %v6050_v40 = vld [vmem:[#allocation41_spill] sm:$0xff]  ;;  %v2318_v34 = vsel %vm727_vm7, %v2315_v31, %v2317_v16 }
 0x27e   : > { %v1750_v30 = vpop.permute.xlu1 %1749  ;;  %2439 = vrot.lane.b32.xlu0 %v2436_v22, %s3135_s12  ;;  %v2438_v17 = vsel %vm825_vm9, %v2435_v43, %v2437_v6 }
 0x27f   : > { %v1661_v56 = vadd.f32 %v6049_v8, %v1648_v32 }
 0x280   : > { %2301 = vrot.lane.b32.xlu1 %v2298_v54, %s3135_s12  ;;  %v5466_v4 = vpop.permute.xlu0 %1907 }
 0x281   : > { %v1674_v52 = vadd.f32 %v6050_v40, %v1661_v56  ;;  %v1853_v56 = vadd.f32 %v5415_v13, %v5409_v38 }
 0x282   : > { %v1770_v39 = vpop.permute.xlu1 %1769 }
 0x283   : > { %v1694_v47 = vadd.f32 %v1690_v62, %v1674_v52  ;;  %v1873_v43 = vadd.f32 %v5438_v63, %v1853_v56 }
 0x284   : > { %2321 = vrot.lane.b32.xlu1 %v2318_v34, %s3135_s12  ;;  %v1921_v42 = vpop.permute.xlu0 %1920 }
 0x285   : > { %v1714_v7 = vadd.f32 %v4977_v11, %v1694_v47  ;;  %v2358_v11 = vsel %vm204_vm0, %v2355_v29, %v2357_v10  ;;  %v1893_v16 = vadd.f32 %v5452_v23, %v1873_v43 }
 0x286   : > { %v1790_v53 = vpop.permute.xlu1 %1789 }
 0x287   : > { %v1734_v61 = vadd.f32 %v1730_v20, %v1714_v7  ;;  %v2417_v20 = vrot.slane %v2410_v49, 6  ;;  %v1913_v40 = vadd.f32 %v5466_v4, %v1893_v16 }
 0x288   : > { %2341 = vrot.lane.b32.xlu1 %v2338_v41, %s3135_s12  ;;  %v1934_v62 = vpop.permute.xlu0 %1933 }
 0x289   : > { %v1754_v31 = vadd.f32 %v1750_v30, %v1734_v61  ;;  %v2418_v58 = vsel %vm825_vm9, %v2415_v44, %v2417_v20 }
 0x28a   : > { %v1810_v27 = vpop.permute.xlu1 %1809 }
 0x28b   : > { %v1774_v5 = vadd.f32 %v1770_v39, %v1754_v31  ;;  %v1926_v39 = vadd.f32 %v1921_v42, %v1913_v40 }
 0x28c   : > { %2361 = vrot.lane.b32.xlu1 %v2358_v11, %s3135_s12  ;;  %v1954_v60 = vpop.permute.xlu0 %1953 }
 0x28d   : > { %v1794_v25 = vadd.f32 %v1790_v53, %v1774_v5  ;;  %v1939_v34 = vadd.f32 %v1934_v62, %v1926_v39 }
 0x28e   : > { %v1830_v18 = vpop.permute.xlu1 %1829 }
 0x28f   : > { %v1814_v3 = vadd.f32 %v1810_v27, %v1794_v25  ;;  %v1959_v57 = vadd.f32 %v1954_v60, %v1939_v34 }
 0x290   : > { %2381 = vrot.lane.b32.xlu1 %v2378_v0, %s3135_s12  ;;  %v1974_v45 = vpop.permute.xlu0 %1973 }
 0x291   : > { %v1834_v29 = vadd.f32 %v1830_v18, %v1814_v3  ;;  %v1979_v53 = vadd.f32 %v1974_v45, %v1959_v57 }
 0x292   : > { %v1850_v46 = vpop.permute.xlu1 %1849 }
 0x293   : > { %v1854_v14 = vadd.f32 %v1850_v46, %v1834_v29 }
 0x294   : > { %2401 = vrot.lane.b32.xlu1 %v2398_v35, %s3135_s12  ;;  %v1994_v28 = vpop.permute.xlu0 %1993 }
 0x295   : > { %v1999_v41 = vadd.f32 %v1994_v28, %v1979_v53 }
 0x296   : > { %v1870_v12 = vpop.permute.xlu1 %1869 }
 0x297   : > { %v1874_v60 = vadd.f32 %v1870_v12, %v1854_v14 }
 0x298   : > { %2421 = vrot.lane.b32.xlu1 %v2418_v58, %s3135_s12  ;;  %v2014_v1 = vpop.permute.xlu0 %2013 }
 0x299   : > { %v2019_v13 = vadd.f32 %v2014_v1, %v1999_v41 }
 0x29a   : > { %v1890_v15 = vpop.permute.xlu1 %1889 }
 0x29b   : > { %v1894_v3 = vadd.f32 %v1890_v15, %v1874_v60 }
 0x29c   : > { %2441 = vrot.lane.b32.xlu1 %v2438_v17, %s3135_s12  ;;  %v2034_v2 = vpop.permute.xlu0 %2033  ;;  %s3028_s12 = sshll.u32 %s3136_s7, 4  ;;  %s3029_s12 = int_to_ptr.vmem [resolvable:$false] %s3028_s12 }
 0x29d   : > { %v2039_v63 = vadd.f32 %v2034_v2, %v2019_v13  ;;  %s3030_s13 = scalar_lea.vmem %s3029_s12, 64  ;;  %p3031_p9 = scmp.lt.s32.totalorder %s2658_s30, %s3029_s12 }
 0x29e   : > { %v1910_v19 = vpop.permute.xlu1 %1909  ;;  %p3032_p3 = scmp.lt.s32.totalorder %s3030_s13, %s3024_s11 }
 0x29f   : > { %v1914_v45 = vadd.f32 %v1910_v19, %v1894_v3 }
 0x2a0   : > { %v2054_v9 = vpop.permute.xlu0 %2053  ;;  %p3033_p5 = por %p3032_p3, %p3031_p9 }
 0x2a1   : > { %v2059_v31 = vadd.f32 %v2054_v9, %v2039_v63 }
 0x2a2   : > { %v1923_v37 = vpop.permute.xlu1 %1922  ;;  %p3034_p7 = pnand %p3033_p5, %p3027_p8 }
 0x2a3   : > { %v1927_v20 = vadd.f32 %v1923_v37, %v1914_v45 }
 0x2a4   : > { %v2074_v55 = vpop.permute.xlu0 %2073 }
 0x2a5   : > { %v2079_v27 = vadd.f32 %v2074_v55, %v2059_v31 }
 0x2a6   : > { %v1936_v36 = vpop.permute.xlu1 %1935 }
 0x2a7   : > { %v1940_v6 = vadd.f32 %v1936_v36, %v1927_v20 }
 0x2a8   : > { %v2094_v51 = vpop.permute.xlu0 %2093 }
 0x2a9   : > { %v2099_v4 = vadd.f32 %v2094_v51, %v2079_v27 }
 0x2aa   : > { %v1956_v32 = vpop.permute.xlu1 %1955 }
 0x2ab   : > { %v1960_v17 = vadd.f32 %v1956_v32, %v1940_v6 }
 0x2ac   : > { %v2114_v44 = vpop.permute.xlu0 %2113 }
 0x2ad   : > { %v2119_v42 = vadd.f32 %v2114_v44, %v2099_v4 }
 0x2ae   : > { %v1976_v30 = vpop.permute.xlu1 %1975 }
 0x2af   : > { %v1980_v9 = vadd.f32 %v1976_v30, %v1960_v17 }
 0x2b0   : > { %v2134_v22 = vpop.permute.xlu0 %2133 }
 0x2b1   : > { %v2139_v24 = vadd.f32 %v2134_v22, %v2119_v42 }
 0x2b2   : > { %v1996_v8 = vpop.permute.xlu1 %1995 }
 0x2b3   : > { %v2000_v12 = vadd.f32 %v1996_v8, %v1980_v9 }
 0x2b4   : > { %v2154_v33 = vpop.permute.xlu0 %2153 }
 0x2b5   : > { %v2159_v18 = vadd.f32 %v2154_v33, %v2139_v24 }
 0x2b6   : > { %v2016_v54 = vpop.permute.xlu1 %2015 }
 0x2b7   : > { %v2020_v22 = vadd.f32 %v2016_v54, %v2000_v12 }
 0x2b8   : > { %v2174_v21 = vpop.permute.xlu0 %2173 }
 0x2b9   : > { %v2179_v48 = vadd.f32 %v2174_v21, %v2159_v18 }
 0x2ba   : > { %v2036_v52 = vpop.permute.xlu1 %2035 }
 0x2bb   : > { %v2040_v19 = vadd.f32 %v2036_v52, %v2020_v22 }
 0x2bc   : > { %v2187_v47 = vpop.permute.xlu0 %2186 }
 0x2bd   : > { %v2192_v35 = vadd.f32 %v2187_v47, %v2179_v48 }
 0x2be   : > { %v2056_v26 = vpop.permute.xlu1 %2055 }
 0x2bf   : > { %v2060_v16 = vadd.f32 %v2056_v26, %v2040_v19 }
 0x2c0   : > { %v2200_v7 = vpop.permute.xlu0 %2199 }
 0x2c1   : > { %v2205_v28 = vadd.f32 %v2200_v7, %v2192_v35 }
 0x2c2   : > { %v2076_v61 = vpop.permute.xlu1 %2075 }
 0x2c3   : > { %v2080_v36 = vadd.f32 %v2076_v61, %v2060_v16 }
 0x2c4   : > { %v2220_v38 = vpop.permute.xlu0 %2219 }
 0x2c5   : > { %v2225_v1 = vadd.f32 %v2220_v38, %v2205_v28  ;;  %v6051_v28 = vlaneseq }
 0x2c6   : > { %v2096_v10 = vpop.permute.xlu1 %2095 }
 0x2c7   : > { %v2100_v47 = vadd.f32 %v2096_v10, %v2080_v36  ;;  %vm5514_vm10 = vcmp.lt.s32.totalorder %v6051_v28, 16  ;;  %vm5553_vm11 = vcmp.ge.s32.totalorder %v6051_v28, 16  ;;  %vm5558_vm12 = vcmp.lt.s32.totalorder %v6051_v28, 32 }
 0x2c8   : > { %v2240_v50 = vpop.permute.xlu0 %2239  ;;  %vm5861_vm13 = vmand %vm5553_vm11, %vm5558_vm12  ;;  %vm5567_vm14 = vcmp.ge.s32.totalorder %v6051_v28, 32  ;;  %vm5572_vm15 = vcmp.lt.s32.totalorder %v6051_v28, 48  ;;  %vm5593_vm1 = vcmp.ge.s32.totalorder %v6051_v28, 48  ;;  %vm5598_vm2 = vcmp.lt.s32.totalorder %v6051_v28, 64 }
 0x2c9   : > { %v2245_v29 = vadd.f32 %v2240_v50, %v2225_v1  ;;  %v6054_v1 = vld [vmem:[#allocation25_spill] sm:$0xff]  ;;  %vm5860_vm0 = vmand %vm5567_vm14, %vm5572_vm15  ;;  %vm5603_vm3 = vcmp.ge.s32.totalorder %v6051_v28, 64  ;;  %vm5608_vm4 = vcmp.lt.s32.totalorder %v6051_v28, 80  ;;  %vm5621_vm7 = vcmp.ge.s32.totalorder %v6051_v28, 80 }
 0x2ca   : > { %v2116_v23 = vpop.permute.xlu1 %2115  ;;  %vm5858_vm5 = vmand %vm5593_vm1, %vm5598_vm2  ;;  %vm5626_vm8 = vcmp.lt.s32.totalorder %v6051_v28, 96 }
 0x2cb   : > { %v2120_v30 = vadd.f32 %v2116_v23, %v2100_v47  ;;  %vm5859_vm6 = vmand %vm5603_vm3, %vm5608_vm4 }
 0x2cc   : > { %v2260_v5 = vpop.permute.xlu0 %2259  ;;  %vm5862_vm9 = vmand %vm5621_vm7, %vm5626_vm8 }
 0x2cd   : > { %v2265_v55 = vadd.f32 %v2260_v5, %v2245_v29 }
 0x2ce   : > { %v2136_v11 = vpop.permute.xlu1 %2135 }
 0x2cf   : > { %v2140_v53 = vadd.f32 %v2136_v11, %v2120_v30 }
 0x2d0   : > { %v2280_v62 = vpop.permute.xlu0 %2279 }
 0x2d1   : > { %v2285_v15 = vadd.f32 %v2280_v62, %v2265_v55 }
 0x2d2   : > { %v2156_v25 = vpop.permute.xlu1 %2155 }
 0x2d3   : > { %v2160_v54 = vadd.f32 %v2156_v25, %v2140_v53 }
 0x2d4   : > { %v2300_v0 = vpop.permute.xlu0 %2299 }
 0x2d5   : > { %v2305_v56 = vadd.f32 %v2300_v0, %v2285_v15 }
 0x2d6   : > { %v2176_v49 = vpop.permute.xlu1 %2175 }
 0x2d7   : > { %v2180_v63 = vadd.f32 %v2176_v49, %v2160_v54 }
 0x2d8   : > { %v2320_v59 = vpop.permute.xlu0 %2319 }
 0x2d9   : > { %v2325_v37 = vadd.f32 %v2320_v59, %v2305_v56 }
 0x2da   : > { %v2189_v58 = vpop.permute.xlu1 %2188 }
 0x2db   : > { %v2193_v26 = vadd.f32 %v2189_v58, %v2180_v63 }
 0x2dc   : > { %v2340_v2 = vpop.permute.xlu0 %2339 }
 0x2dd   : > { %v2345_v21 = vadd.f32 %v2340_v2, %v2325_v37 }
 0x2de   : > { %v2202_v46 = vpop.permute.xlu1 %2201 }
 0x2df   : > { %v2206_v31 = vadd.f32 %v2202_v46, %v2193_v26 }
 0x2e0   : > { %v2360_v51 = vpop.permute.xlu0 %2359 }
 0x2e1   : > { %v2365_v32 = vadd.f32 %v2360_v51, %v2345_v21 }
 0x2e2   : > { %v2222_v44 = vpop.permute.xlu1 %2221 }
 0x2e3   : > { %v2226_v27 = vadd.f32 %v2222_v44, %v2206_v31 }
 0x2e4   : > { %v2380_v33 = vpop.permute.xlu0 %2379 }
 0x2e5   : > { %v2385_v34 = vadd.f32 %v2380_v33, %v2365_v32 }
 0x2e6   : > { %v2242_v43 = vpop.permute.xlu1 %2241 }
 0x2e7   : > { %v2246_v10 = vadd.f32 %v2242_v43, %v2226_v27 }
 0x2e8   : > { %v2400_v40 = vpop.permute.xlu0 %2399 }
 0x2e9   : > { %v2405_v8 = vadd.f32 %v2400_v40, %v2385_v34 }
 0x2ea   : > { %v2262_v39 = vpop.permute.xlu1 %2261 }
 0x2eb   : > { %v2266_v4 = vadd.f32 %v2262_v39, %v2246_v10 }
 0x2ec   : > { %v2420_v57 = vpop.permute.xlu0 %2419 }
 0x2ed   : > { %v2425_v41 = vadd.f32 %v2420_v57, %v2405_v8 }
 0x2ee   : > { %v2282_v7 = vpop.permute.xlu1 %2281 }
 0x2ef   : > { %v2286_v42 = vadd.f32 %v2282_v7, %v2266_v4 }
 0x2f0   : > { %v2440_v38 = vpop.permute.xlu0 %2439 }
 0x2f1   : > { %v2445_v52 = vadd.f32 %v2440_v38, %v2425_v41 }
 0x2f2   : > { %v2302_v13 = vpop.permute.xlu1 %2301 }
 0x2f3   : > { %v2859_v50 = vmul.f32 -1.442695, %v2445_v52  ;;  %v2306_v14 = vadd.f32 %v2302_v13, %v2286_v42  ;;  %v6084_v42 = vmov 0 }
 0x2f5   : > { %2966 = vpow2.f32 %v2859_v50 }
 0x2f6   : > { %v2322_v61 = vpop.permute.xlu1 %2321 }
 0x2f7   : > { %v2326_v24 = vadd.f32 %v2322_v61, %v2306_v14 }
 0x2fa   : > { %v2342_v5 = vpop.permute.xlu1 %2341 }
 0x2fb   : > { %v2346_v60 = vadd.f32 %v2342_v5, %v2326_v24 }
 0x2fe   : > { %v2362_v23 = vpop.permute.xlu1 %2361 }
 0x2ff   : > { %v2366_v3 = vadd.f32 %v2362_v23, %v2346_v60 }
 0x302   : > { %v2382_v11 = vpop.permute.xlu1 %2381  ;;  %v2967_v62 = vpop.eup %2966 }
 0x303   : > { %v2453_v25 = vadd.f32 1.0, %v2967_v62  ;;  %v2386_v0 = vadd.f32 %v2382_v11, %v2366_v3 }
 0x305   : > { %2968 = vrcp.f32 %v2453_v25 }
 0x306   : > { %v2402_v18 = vpop.permute.xlu1 %2401 }
 0x307   : > { %v2406_v49 = vadd.f32 %v2402_v18, %v2386_v0 }
 0x30a   : > { %v2422_v48 = vpop.permute.xlu1 %2421 }
 0x30b   : > { %v2426_v45 = vadd.f32 %v2422_v48, %v2406_v49 }
 0x30e   : > { %v2442_v35 = vpop.permute.xlu1 %2441 }
 0x30f   : > { %v2446_v20 = vadd.f32 %v2442_v35, %v2426_v45 }
 0x311   : > { %v2860_v59 = vmul.f32 -1.442695, %v2446_v20 }
 0x312   : > { %v2969_v6 = vpop.eup %2968 }
 0x313   : > { %2970 = vpow2.f32 %v2860_v59  ;;  %v2471_v17 = vrot.slane %v2969_v6, %v6054_v1  ;;  %2463 = vst.msk [vmem:[%s5519_s17] sm:$0x1] %vm5514_vm10, %v2969_v6  ;;  %v2510_v9 = vcombine.high %v2969_v6, %v2969_v6 }
 0x315   : > { %v2472_v2 = vcombine.high %v2471_v17, %v2471_v17  ;;  %v2479_v46 = vrot.slane %v2471_v17, %v6054_v1  ;;  %v2517_v12 = vrot.slane %v2510_v9, %v6054_v1 }
 0x317   : > { %v2486_v29 = vrot.slane %v2472_v2, %v6054_v1  ;;  %v2494_v55 = vcombine.high %v2479_v46, %v2479_v46  ;;  %v2524_v15 = vrot.slane %v2517_v12, %v6054_v1  ;;  %v2532_v56 = vcombine.high %v2517_v12, %v2517_v12 }
 0x319   : > { %2487 = vrot.lane.b32.xlu0 %v2486_v29, %s6055_s19  ;;  %v2502_v22 = vcombine.high %v2486_v29, %v2486_v29  ;;  %v2539_v19 = vrot.slane %v2532_v56, %v6054_v1  ;;  %v2547_v33 = vcombine.high %v2524_v15, %v2524_v15 }
 0x31b   : > { %v2555_v43 = vcombine.high %v2539_v19, %v2539_v19 }
 0x31d   : > { %2495 = vrot.lane.b32.xlu0 %v2494_v55, %s6056_s6 }
 0x320   : > { %v2971_v51 = vpop.eup %2970 }
 0x321   : > { %v2454_v44 = vadd.f32 1.0, %v2971_v51  ;;  %2525 = vrot.lane.b32.xlu0 %v2524_v15, %s6057_s8 }
 0x323   : > { %2972 = vrcp.f32 %v2454_v44 }
 0x325   : > { %2503 = vrot.lane.b32.xlu0 %v2502_v22, %s6058_s3 }
 0x329   : > { %2540 = vrot.lane.b32.xlu0 %v2539_v19, %s6059_s5 }
 0x32d   : > { %2548 = vrot.lane.b32.xlu0 %v2547_v33, %s6060_s16 }
 0x330   : > { %v2973_v37 = vpop.eup %2972 }
 0x331   : > { %v2571_v16 = vrot.slane %v2973_v37, %v6054_v1  ;;  %2563 = vst.msk [vmem:[%s5519_s17 + $0x1] sm:$0x1] %vm5514_vm10, %v2973_v37  ;;  %2556 = vrot.lane.b32.xlu0 %v2555_v43, %s6061_s25  ;;  %v2601_v32 = vcombine.high %v2973_v37, %v2973_v37  ;;  %vm5647_vm10 = vcmp.ge.s32.totalorder %v6051_v28, 96 }
 0x333   : > { %v2572_v21 = vcombine.high %v2571_v16, %v2571_v16  ;;  %v2579_v40 = vrot.slane %v2571_v16, %v6054_v1  ;;  %v2608_v47 = vrot.slane %v2601_v32, %v6054_v1 }
 0x335   : > { %v2586_v36 = vrot.slane %v2572_v21, %v6054_v1  ;;  %v2591_v39 = vcombine.high %v2579_v40, %v2579_v40  ;;  %v2615_v34 = vrot.slane %v2608_v47, %v6054_v1  ;;  %v2620_v57 = vcombine.high %v2608_v47, %v2608_v47 }
 0x337   : > { %2587 = vrot.lane.b32.xlu1 %v2586_v36, %s6055_s19  ;;  %v2596_v30 = vcombine.high %v2586_v36, %v2586_v36  ;;  %v2627_v8 = vrot.slane %v2620_v57, %v6054_v1  ;;  %v2632_v7 = vcombine.high %v2615_v34, %v2615_v34 }
 0x339   : > { %v2637_v53 = vcombine.high %v2627_v8, %v2627_v8 }
 0x33b   : > { %2592 = vrot.lane.b32.xlu1 %v2591_v39, %s6056_s6 }
 0x33f   : > { %2616 = vrot.lane.b32.xlu1 %v2615_v34, %s6057_s8 }
 0x343   : > { %2597 = vrot.lane.b32.xlu1 %v2596_v30, %s6058_s3 }
 0x347   : > { %2628 = vrot.lane.b32.xlu1 %v2627_v8, %s6059_s5 }
 0x34b   : > { %2633 = vrot.lane.b32.xlu1 %v2632_v7, %s6060_s16 }
 0x34f   : > { %2638 = vrot.lane.b32.xlu1 %v2637_v53, %s6061_s25 }
 0x38b   : > { %v2488_v13 = vpop.permute.xlu0 %2487 }
 0x38c   : > { %2493 = vst.msk [vmem:[%s5519_s17] sm:$0x1] %vm5861_vm13, %v2488_v13  ;;  %vm5672_vm13 = vcmp.lt.s32.totalorder %v6051_v28, 128 }
 0x38f   : > { %v2496_v63 = vpop.permute.xlu0 %2495 }
 0x390   : > { %2501 = vst.msk [vmem:[%s5519_s17] sm:$0x1] %vm5860_vm0, %v2496_v63  ;;  %vm5667_vm0 = vcmp.ge.s32.totalorder %v6051_v28, 112 }
 0x393   : > { %v2526_v61 = vpop.permute.xlu0 %2525 }
 0x397   : > { %v2504_v4 = vpop.permute.xlu0 %2503 }
 0x398   : > { %2509 = vst.msk [vmem:[%s5519_s17] sm:$0x1] %vm5858_vm5, %v2504_v4  ;;  %vm5652_vm5 = vcmp.lt.s32.totalorder %v6051_v28, 112 }
 0x399   : > { %2531 = vst.msk [vmem:[%s5519_s17] sm:$0x1] %vm5859_vm6, %v2526_v61  ;;  %v6085_v42 = vsel %vm5652_vm5, 4294967295, %v6084_v42  ;;  %vm5863_vm6 = vmand %vm5647_vm10, %vm5652_vm5 }
 0x39a   : > { %vm6092_vm5 = vmand %vm5567_vm14, %vm5572_vm15  ;;  %vm6097_vm14 = vnez %v6085_v42 }
 0x39b   : > { %v2541_v14 = vpop.permute.xlu0 %2540  ;;  %vm6098_vm15 = vmand %vm5647_vm10, %vm6097_vm14 }
 0x39c   : > { %2546 = vst.msk [vmem:[%s5519_s17] sm:$0x1] %vm5862_vm9, %v2541_v14  ;;  %vm5865_vm9 = vmand %vm5667_vm0, %vm5672_vm13 }
 0x39f   : > { %v2549_v24 = vpop.permute.xlu0 %2548 }
 0x3a0   : > { %2554 = vst.msk [vmem:[%s5519_s17] sm:$0x1] %vm5863_vm6, %v2549_v24  ;;  %vm6091_vm6 = vmand %vm5553_vm11, %vm5558_vm12 }
 0x3a1   : > { %vm6095_vm11 = vmand %vm5603_vm3, %vm5608_vm4 }
 0x3a2   : > { %vm6096_vm12 = vmand %vm5621_vm7, %vm5626_vm8 }
 0x3a3   : > { %v2557_v25 = vpop.permute.xlu0 %2556 }
 0x3a4   : > { %2562 = vst.msk [vmem:[%s5519_s17] sm:$0x1] %vm5865_vm9, %v2557_v25  ;;  %vm6093_vm9 = vmand %vm5593_vm1, %vm5598_vm2 }
 0x3a5   : > { %vm6100_vm1 = vmand %vm5667_vm0, %vm5672_vm13 }
 0x3a9   : > { %v2588_v60 = vpop.permute.xlu1 %2587 }
 0x3aa   : > { %2590 = vst.msk [vmem:[%s5519_s17 + $0x1] sm:$0x1] %vm6091_vm6, %v2588_v60 }
 0x3ad   : > { %v2593_v18 = vpop.permute.xlu1 %2592 }
 0x3ae   : > { %2595 = vst.msk [vmem:[%s5519_s17 + $0x1] sm:$0x1] %vm6092_vm5, %v2593_v18 }
 0x3b1   : > { %v2617_v3 = vpop.permute.xlu1 %2616 }
 0x3b5   : > { %v2598_v0 = vpop.permute.xlu1 %2597 }
 0x3b6   : > { %2600 = vst.msk [vmem:[%s5519_s17 + $0x1] sm:$0x1] %vm6093_vm9, %v2598_v0 }
 0x3b7   : > { %2619 = vst.msk [vmem:[%s5519_s17 + $0x1] sm:$0x1] %vm6095_vm11, %v2617_v3 }
 0x3b9   : > { %v2629_v48 = vpop.permute.xlu1 %2628 }
 0x3ba   : > { %2631 = vst.msk [vmem:[%s5519_s17 + $0x1] sm:$0x1] %vm6096_vm12, %v2629_v48 }
 0x3bd   : > { %v2634_v49 = vpop.permute.xlu1 %2633 }
 0x3be   : > { %2636 = vst.msk [vmem:[%s5519_s17 + $0x1] sm:$0x1] %vm6098_vm15, %v2634_v49 }
 0x3c1   : > { %v2639_v45 = vpop.permute.xlu1 %2638 }
 0x3c2   : > { %2641 = vst.msk [vmem:[%s5519_s17 + $0x1] sm:$0x1] %vm6100_vm1, %v2639_v45 }
 0x3c3   : > { %3037 = shalt.err (!%p3034_p7)
}
 0x3c4   : > { %s3038_s14 = scalar_lea.hbm %s5733_s0, 32  ;;  %s3042_s22 = scalar_lea.hbm %s6099_s15, 64 }
 0x3c5   : > { %p3039_p2 = scmp.ne.s32.totalorder %s5733_s0, %s3038_s14  ;;  %p3043_p13 = scmp.lt.s32.totalorder %s5733_s0, %s6099_s15 }
 0x3c6   : > { %p3044_p0 = scmp.lt.s32.totalorder %s3042_s22, %s3038_s14 }
 0x3c7   : > { %p3040_p11 = pnand %p3039_p2, %p6101_p4 }
 0x3c8   : > { %p3045_p10 = por %p3044_p0, %p3043_p13 }
 0x3c9   : > { %p3041_p12 = pneg %p3040_p11 }
 0x3cb   : > { %p3046_p1 = pnand %p3045_p10, %p3041_p12 }
 0x3cd   : > { %3049 = shalt.err (!%p3046_p1)
}
 0x3ce   : > { %2874 = dma.vmem_to_hbm [thread:$0]  (%p6101_p4), %s2658_s30, 32, %s5733_s0, %s2643_s10  }
 0x3cf PF: > { %s6102_s4 = sld [smem:[#allocation15_spill]] }
 0x3d0   : > { %s6103_s18 = sld [smem:[#allocation21_spill]] }
 0x3d1   : > { %s6104_s24 = sld [smem:[#allocation20_spill]] }
 0x3d5   : > { %s2669_s2 = sand.u32 1, %s6102_s4  }
 0x3d6   : > { %p6105_p6 = scmp.ne.s32.totalorder %s6103_s18, 0  ;;  %s2670_s17 = scalar_lea.sflag [#allocation8], %s2669_s2 }
 0x3d7   : > { %p6106_p8 = scmp.ge.s32.totalorder %s6104_s24, 2 }
 0x3d9   : > { %p2885_p9 = pnand %p6106_p8, %p6105_p6 }
 0x3db   : > { %p2886_p3 = pneg %p2885_p9 }
 0x3dd   : > { %3083 = dma.done.wait (%p2886_p3), %s2670_s17, 32  }
 0x3de   : > { %3085 = vsyncadd (%p2886_p3), %s2670_s17, 4294967264  ;;  %s19_s14 = sadd.s32 1, %s6104_s24   ;;  %s6107_s9 = sld [smem:[#allocation16_spill]] }
 0x3df   : > { %p16_p5 = scmp.ge.s32.totalorder %s19_s14, 4   ;;  %s6108_s10 = sld [smem:[#allocation17_spill]] }
 0x3e0   : > { %s6109_s11 = sld [smem:[#allocation24_spill]] }
 0x3e1   : > { %s6110_s12 = sld [smem:[#allocation19_spill]]  ;;  %18 = sbr.rel (!%p16_p5) target bundleno = 11 (0xb), region = 90 }
 0x3e2   : > { %s6111_s13 = sld [smem:[#allocation22_spill]] }
 0x3e6   :  { %2675 = vsyncpa [#allocation7], 1 }
 0x3e7   :  { %2677 = vsyncpa [#allocation7 + $0x1], 1 }
 0x3e8   :  { %2678 = vsyncpa [#allocation8], 1 }
 0x3e9   :  { %2680 = vsyncpa [#allocation8 + $0x1], 1 }
 0x3ea   :  { %2681 = vsyncpa [#allocation9], 1 }
 0x3eb   :  { %2683 = vsyncpa [#allocation9 + $0x1], 1 }

</bundles_post_ra>
